<compile_context>
chip_gen: v7x
topology: tpu7x:2x2x1
jax: 0.10.0
libtpu: 0.0.40
codegen_flags: <defaults>
</compile_context>

<pallas_src>
import functools

import numpy as np
import jax
import jax.numpy as jnp
from jax import lax
from jax.experimental import pallas as pl
from jax.experimental.pallas import tpu as pltpu

EPS = 1e-5  # nn.BatchNorm3d default eps


def _round_up(x, m):
    return (x + m - 1) // m * m


# ---------------------------------------------------------------------------
# Static tap tables: flat-index offsets of the 27 taps (kd-major == torch
# (kD,kH,kW) order) and 0/1 masks that zero out taps that would wrap across
# D/H/W boundaries (== the conv's zero padding).
# ---------------------------------------------------------------------------
def _tap_tables(D, H, W):
    HW = H * W
    DHW = D * HW
    idx = np.arange(DHW)
    d, r = np.divmod(idx, HW)
    h, w = np.divmod(r, W)
    masks, offsets = [], []
    for dd in (-1, 0, 1):
        for dh in (-1, 0, 1):
            for dw in (-1, 0, 1):
                offsets.append(dd * HW + dh * W + dw)
                ok = ((d + dd >= 0) & (d + dd < D) &
                      (h + dh >= 0) & (h + dh < H) &
                      (w + dw >= 0) & (w + dw < W))
                masks.append(ok.astype(np.float32))
    return np.stack(masks, axis=0), tuple(offsets)   # (27, DHW) f32, static ints


# ---------------------------------------------------------------------------
# Pallas kernels
# ---------------------------------------------------------------------------
def _conv_bn_stats_kernel(x_ref, m_ref, w_ref, b_ref, s_ref, sh_ref,   # inputs
                          y_ref, stats_ref,                            # outputs
                          xpad_ref, xcol_ref,                          # scratch
                          *, offsets, pad, dhw, cinp, apply_act):
    """One batch element: (optional fused BN+ReLU of the previous layer) ->
    3x3x3 conv as a single tap-stacked bf16 matmul -> bf16 conv output + f32
    per-channel BatchNorm statistics."""
    # (optional) previous layer's BN affine + ReLU fused into this conv's input.
    x = x_ref[0].astype(jnp.float32)                        # (Cin_pad, DHW)
    if apply_act:
        x = jnp.maximum(x * s_ref[...] + sh_ref[...], 0.0)

    # Zero-padded halo: only the two pad-column halos are written; the interior
    # [pad, pad+dhw) is fully overwritten every step.
    xpad_ref[:, pl.ds(0, pad)] = jnp.zeros((cinp, pad), jnp.float32)
    xpad_ref[:, pl.ds(pad + dhw, pad)] = jnp.zeros((cinp, pad), jnp.float32)
    xpad_ref[:, pl.ds(pad, dhw)] = x

    # Pack the 27 shifted, boundary-masked neighborhoods into the (27*Cin_pad,
    # DHW) bf16 column matrix (this becomes the MXU's K axis).
    masks = m_ref[...]                                      # (27, DHW) f32 0/1
    for t, off in enumerate(offsets):                       # unrolled, static
        xs = xpad_ref[:, pl.ds(pad + off, dhw)] * masks[t:t + 1, :]
        xcol_ref[pl.ds(t * cinp, cinp), :] = xs.astype(jnp.bfloat16)

    # One tap-stacked bf16 matmul with f32 accumulation, plus the conv bias.
    acc = jnp.dot(w_ref[...], xcol_ref[...],
                  preferred_element_type=jnp.float32)       # (Cout, DHW) f32
    acc = acc + b_ref[...]

    y_ref[0] = acc.astype(y_ref.dtype)                      # bf16 HBM intermediate
    # Per-(n, channel) sum / sum-of-squares for training-mode BatchNorm (f32).
    stats_ref[0, :, 0:1] = jnp.sum(acc, axis=1, keepdims=True)
    stats_ref[0, :, 1:2] = jnp.sum(acc * acc, axis=1, keepdims=True)


def _bn_relu_kernel(y_ref, s_ref, b_ref, o_ref):
    """Final BatchNorm affine (batch stats folded into scale/shift) + ReLU."""
    o_ref[0] = jnp.maximum(
        y_ref[0].astype(jnp.float32) * s_ref[...] + b_ref[...], 0.0)


# ---------------------------------------------------------------------------
# Wrappers
# ---------------------------------------------------------------------------
def conv3d_fused(x_flat, w2d, bias, masks, offsets, in_scale, in_shift, *,
                 apply_act):
    """x_flat: (N, Cin_pad, DHW) f32/bf16; w2d: (Cout, 27*Cin_pad) bf16.
    Returns (bf16 conv output (N, Cout, DHW), f32 stats (N, Cout, 2))."""
    N, Cinp, DHW = x_flat.shape
    Cout = w2d.shape[0]
    assert Cinp % 8 == 0, "input channels must be padded to a multiple of 8"
    assert w2d.shape[1] == 27 * Cinp
    pad = _round_up(max(abs(o) for o in offsets), 128)      # halo, lane-aligned

    kernel = functools.partial(
        _conv_bn_stats_kernel,
        offsets=offsets, pad=pad, dhw=DHW, cinp=Cinp, apply_act=apply_act)

    return pl.pallas_call(
        kernel,
        out_shape=(jax.ShapeDtypeStruct((N, Cout, DHW), jnp.bfloat16),
                   jax.ShapeDtypeStruct((N, Cout, 2), jnp.float32)),
        grid=(N,),
        in_specs=[
            pl.BlockSpec((1, Cinp, DHW), lambda n: (n, 0, 0)),
            pl.BlockSpec((27, DHW), lambda n: (0, 0)),
            pl.BlockSpec((Cout, 27 * Cinp), lambda n: (0, 0)),
            pl.BlockSpec((Cout, 1), lambda n: (0, 0)),
            pl.BlockSpec((Cinp, 1), lambda n: (0, 0)),
            pl.BlockSpec((Cinp, 1), lambda n: (0, 0)),
        ],
        out_specs=[
            pl.BlockSpec((1, Cout, DHW), lambda n: (n, 0, 0)),
            pl.BlockSpec((1, Cout, 2), lambda n: (n, 0, 0)),
        ],
        scratch_shapes=[
            pltpu.VMEM((Cinp, DHW + 2 * pad), jnp.float32),   # zero-padded halo
            pltpu.VMEM((27 * Cinp, DHW), jnp.bfloat16),       # tap-stacked cols
        ],
        compiler_params=pltpu.CompilerParams(
            dimension_semantics=("parallel",),
            vmem_limit_bytes=32 * 1024 * 1024),
    )(x_flat, masks, w2d, bias, in_scale, in_shift)


def apply_bn_relu(y, scale, shift):
    """y: (N, C, DHW) bf16 -> f32 module output.  TODO(synk): in a full network
    this pass would be fused into the next consumer, like layer 1's BN+ReLU."""
    N, C, DHW = y.shape
    return pl.pallas_call(
        _bn_relu_kernel,
        out_shape=jax.ShapeDtypeStruct((N, C, DHW), jnp.float32),
        grid=(N,),
        in_specs=[
            pl.BlockSpec((1, C, DHW), lambda n: (n, 0, 0)),
            pl.BlockSpec((C, 1), lambda n: (0, 0)),
            pl.BlockSpec((C, 1), lambda n: (0, 0)),
        ],
        out_specs=pl.BlockSpec((1, C, DHW), lambda n: (n, 0, 0)),
        compiler_params=pltpu.CompilerParams(
            dimension_semantics=("parallel",),
            vmem_limit_bytes=32 * 1024 * 1024),
    )(y, scale, shift)


def _bn_scale_shift(stats, gamma, beta, count):
    """Fold training-mode batch stats (biased variance) into scale/shift."""
    total = jnp.sum(stats[:, :, 0], axis=0)         # (C,)
    total_sq = jnp.sum(stats[:, :, 1], axis=0)      # (C,)
    mean = total / count
    var = jnp.maximum(total_sq / count - mean * mean, 0.0)
    scale = gamma * lax.rsqrt(var + EPS)
    shift = beta - mean * scale
    return scale[:, None], shift[:, None]           # (C, 1) for lane broadcast


def _prep_layer(w, b, g, be, cin_pad, cout_pad):
    """torch (Cout,Cin,3,3,3) weight -> lane-dense, tap-stacked (Cout_pad,
    27*Cin_pad) bf16 matrix (tap-major, channel-minor K); zero-pads channels
    to sublane multiples (exact: padded channels carry zeros end-to-end)."""
    cout, cin = w.shape[0], w.shape[1]
    wt = jnp.transpose(w, (0, 2, 3, 4, 1)).reshape(cout, 27, cin)
    wt = jnp.pad(wt, ((0, cout_pad - cout), (0, 0), (0, cin_pad - cin)))
    w2d = wt.reshape(cout_pad, 27 * cin_pad).astype(jnp.bfloat16)
    bp = jnp.pad(b, (0, cout_pad - cout)).reshape(cout_pad, 1)
    gp = jnp.pad(g, (0, cout_pad - cout))            # zero gamma on pad channels
    bep = jnp.pad(be, (0, cout_pad - cout))
    return w2d, bp, gp, bep


def conv_block_forward(x_ncdhw, params):
    N, Cin, D, H, W = x_ncdhw.shape
    DHW = D * H * W
    masks_np, offsets = _tap_tables(D, H, W)
    masks = jnp.asarray(masks_np)

    Cmid = params["w1"].shape[0]
    Cout = params["w2"].shape[0]
    Cin_p = _round_up(Cin, 8)
    Cmid_p = _round_up(Cmid, 8)   # conv1 emits padded channels so conv2's K stays aligned

    x = x_ncdhw.reshape(N, Cin, DHW)                 # NCDHW -> (N, C, DHW), free
    if Cin_p != Cin:
        x = jnp.pad(x, ((0, 0), (0, Cin_p - Cin), (0, 0)))

    # ---- layer 1: conv (+ BN stats) ----
    w1, b1, g1, be1 = _prep_layer(params["w1"], params["b1"], params["g1"],
                                  params["be1"], Cin_p, Cmid_p)
    y1, st1 = conv3d_fused(
        x, w1, b1, masks, offsets,
        jnp.ones((Cin_p, 1), jnp.float32), jnp.zeros((Cin_p, 1), jnp.float32),
        apply_act=False)
    sc1, sh1 = _bn_scale_shift(st1, g1, be1, N * DHW)

    # ---- layer 2: BN1+ReLU fused into the conv input path, conv (+ BN stats) ----
    w2, b2, g2, be2 = _prep_layer(params["w2"], params["b2"], params["g2"],
                                  params["be2"], Cmid_p, Cout)
    y2, st2 = conv3d_fused(y1, w2, b2, masks, offsets, sc1, sh1, apply_act=True)
    sc2, sh2 = _bn_scale_shift(st2, g2, be2, N * DHW)

    # ---- final BN2 affine + ReLU (module output, f32) ----
    out = apply_bn_relu(y2, sc2, sh2)
    return out.reshape(N, Cout, D, H, W)             # (N, C, DHW) -> NCDHW, free


# ---------------------------------------------------------------------------
# Pure-JAX reference.  Mirrors the kernel's bf16 quantization points (conv
# operands + the HBM-stored conv outputs are bf16) while keeping convolution
# accumulation, BN statistics and BN/ReLU math in f32 — so the comparison only
# has to absorb f32 summation-order noise plus rare one-ulp bf16 rounding flips.
# ---------------------------------------------------------------------------
def reference_forward(x, params):
    def q(t):  # model a bf16 round-trip
        return t.astype(jnp.bfloat16).astype(jnp.float32)

    def layer(a, w, b, g, be):
        y = lax.conv_general_dilated(
            q(a), q(w), window_strides=(1, 1, 1), padding=((1, 1),) * 3,
            dimension_numbers=("NCDHW", "OIDHW", "NCDHW"),
            precision=lax.Precision.HIGHEST)
        y = y + b.reshape(1, -1, 1, 1, 1)
        mean = jnp.mean(y, axis=(0, 2, 3, 4))        # f32 stats, taken pre-cast
        var = jnp.mean(jnp.square(y), axis=(0, 2, 3, 4)) - mean * mean
        scale = (g * lax.rsqrt(var + EPS)).reshape(1, -1, 1, 1, 1)
        shift = (be - mean * g * lax.rsqrt(var + EPS)).reshape(1, -1, 1, 1, 1)
        return jnp.maximum(q(y) * scale + shift, 0.0)  # q(y): bf16 HBM intermediate
    a = layer(x, params["w1"], params["b1"], params["g1"], params["be1"])
    return layer(a, params["w2"], params["b2"], params["g2"], params["be2"])


if __name__ == "__main__":
    key = jax.random.PRNGKey(0)
    in_channels, mid_channels, out_channels = 4, 8, 8
    N, D, H, W = 2, 8, 8, 8
    k = jax.random.split(key, 5)
    params = {
        "w1": 0.1 * jax.random.normal(k[0], (mid_channels, in_channels, 3, 3, 3), jnp.float32),
        "b1": 0.1 * jax.random.normal(k[1], (mid_channels,), jnp.float32),
        "g1": jnp.ones((mid_channels,), jnp.float32),      # BatchNorm default init
        "be1": jnp.zeros((mid_channels,), jnp.float32),
        "w2": 0.1 * jax.random.normal(k[2], (out_channels, mid_channels, 3, 3, 3), jnp.float32),
        "b2": 0.1 * jax.random.normal(k[3], (out_channels,), jnp.float32),
        "g2": jnp.ones((out_channels,), jnp.float32),
        "be2": jnp.zeros((out_channels,), jnp.float32),
    }
    x = jax.random.normal(k[4], (N, in_channels, D, H, W), jnp.float32)

    out = jax.jit(conv_block_forward)(x, params)
    out = jax.block_until_ready(out)

    ref = reference_forward(x, params)
    assert out.shape == (N, out_channels, D, H, W)
    # bf16 operands/intermediates: tolerance absorbs f32 summation-order noise
    # and rare one-ulp bf16 rounding flips at the HBM quantization points.
    assert jnp.allclose(out, ref, atol=1e-2, rtol=1e-2), "mismatch vs reference"
    print("KERNEL_OK")
</pallas_src>

<mosaic_0001>
module attributes {stable_mosaic.version = 11 : i64} {
  func.func @_conv_bn_stats_kernel(%arg0: i32, %arg1: memref<1x8x512xf32, #tpu.memory_space<vmem>>, %arg2: memref<27x512xf32, #tpu.memory_space<vmem>>, %arg3: memref<8x216xbf16, #tpu.memory_space<vmem>>, %arg4: memref<8x1xf32, #tpu.memory_space<vmem>>, %arg5: memref<8x1xf32, #tpu.memory_space<vmem>>, %arg6: memref<8x1xf32, #tpu.memory_space<vmem>>, %arg7: memref<1x8x512xbf16, #tpu.memory_space<vmem>>, %arg8: memref<1x8x2xf32, #tpu.memory_space<vmem>>, %arg9: memref<8x768xf32, #tpu.memory_space<vmem>>, %arg10: memref<216x512xbf16, #tpu.memory_space<vmem>>) attributes {dimension_semantics = [#tpu.dimension_semantics<parallel>], iteration_bounds = array<i64: 2>, scalar_prefetch = 0 : i64, scratch_operands = 2 : i64, tpu.core_type = #tpu.core_type<tc>, window_params = [{transform_indices = @transform_0, window_bounds = array<i64: 1, 8, 512>}, {pipeline_mode = #tpu.pipeline_mode<synchronous>, transform_indices = @transform_1, window_bounds = array<i64: 27, 512>}, {pipeline_mode = #tpu.pipeline_mode<synchronous>, transform_indices = @transform_2, window_bounds = array<i64: 8, 216>}, {pipeline_mode = #tpu.pipeline_mode<synchronous>, transform_indices = @transform_3, window_bounds = array<i64: 8, 1>}, {pipeline_mode = #tpu.pipeline_mode<synchronous>, transform_indices = @transform_4, window_bounds = array<i64: 8, 1>}, {pipeline_mode = #tpu.pipeline_mode<synchronous>, transform_indices = @transform_5, window_bounds = array<i64: 8, 1>}, {transform_indices = @transform_6, window_bounds = array<i64: 1, 8, 512>}, {transform_indices = @transform_7, window_bounds = array<i64: 1, 8, 2>}]} {
    %c0 = arith.constant 0 : index
    %c0_0 = arith.constant 0 : index
    %c0_1 = arith.constant 0 : index
    %0 = vector.load %arg1[%c0, %c0_0, %c0_1] : memref<1x8x512xf32, #tpu.memory_space<vmem>>, vector<1x8x512xf32>
    %1 = vector.shape_cast %0 : vector<1x8x512xf32> to vector<8x512xf32>
    %cst = arith.constant 0.000000e+00 : f32
    %2 = vector.broadcast %cst : f32 to vector<8x128xf32>
    %c0_2 = arith.constant 0 : index
    %c0_3 = arith.constant 0 : index
    %3 = vector.load %arg9[%c0_2, %c0_3] : memref<8x768xf32, #tpu.memory_space<vmem>>, vector<8x128xf32>
    tpu.vector_store %arg9[%c0_2, %c0_3], %2 {strides = array<i32>} : memref<8x768xf32, #tpu.memory_space<vmem>>, vector<8x128xf32>,
    %cst_4 = arith.constant 0.000000e+00 : f32
    %4 = vector.broadcast %cst_4 : f32 to vector<8x128xf32>
    %c0_5 = arith.constant 0 : index
    %c640 = arith.constant 640 : index
    %5 = vector.load %arg9[%c0_5, %c640] : memref<8x768xf32, #tpu.memory_space<vmem>>, vector<8x128xf32>
    tpu.vector_store %arg9[%c0_5, %c640], %4 {strides = array<i32>} : memref<8x768xf32, #tpu.memory_space<vmem>>, vector<8x128xf32>,
    %c0_6 = arith.constant 0 : index
    %c128 = arith.constant 128 : index
    %6 = vector.load %arg9[%c0_6, %c128] : memref<8x768xf32, #tpu.memory_space<vmem>>, vector<8x512xf32>
    tpu.vector_store %arg9[%c0_6, %c128], %1 {strides = array<i32>} : memref<8x768xf32, #tpu.memory_space<vmem>>, vector<8x512xf32>,
    %c0_7 = arith.constant 0 : index
    %c0_8 = arith.constant 0 : index
    %7 = vector.load %arg2[%c0_7, %c0_8] : memref<27x512xf32, #tpu.memory_space<vmem>>, vector<27x512xf32>
    %c0_9 = arith.constant 0 : index
    %c55 = arith.constant 55 : index
    %8 = vector.load %arg9[%c0_9, %c55] : memref<8x768xf32, #tpu.memory_space<vmem>>, vector<8x512xf32>
    %9 = vector.extract_strided_slice %7 {offsets = [0, 0], sizes = [1, 512], strides = [1, 1]} : vector<27x512xf32> to vector<1x512xf32>
    %10 = vector.broadcast %9 : vector<1x512xf32> to vector<8x512xf32>
    %11 = arith.mulf %8, %10 : vector<8x512xf32>
    %12 = arith.truncf %11 : vector<8x512xf32> to vector<8x512xbf16>
    %c0_10 = arith.constant 0 : index
    %c0_11 = arith.constant 0 : index
    %13 = vector.load %arg10[%c0_10, %c0_11] : memref<216x512xbf16, #tpu.memory_space<vmem>>, vector<8x512xbf16>
    tpu.vector_store %arg10[%c0_10, %c0_11], %12 {strides = array<i32>} : memref<216x512xbf16, #tpu.memory_space<vmem>>, vector<8x512xbf16>,
    %c0_12 = arith.constant 0 : index
    %c56 = arith.constant 56 : index
    %14 = vector.load %arg9[%c0_12, %c56] : memref<8x768xf32, #tpu.memory_space<vmem>>, vector<8x512xf32>
    %15 = vector.extract_strided_slice %7 {offsets = [1, 0], sizes = [1, 512], strides = [1, 1]} : vector<27x512xf32> to vector<1x512xf32>
    %16 = vector.broadcast %15 : vector<1x512xf32> to vector<8x512xf32>
    %17 = arith.mulf %14, %16 : vector<8x512xf32>
    %18 = arith.truncf %17 : vector<8x512xf32> to vector<8x512xbf16>
    %c8 = arith.constant 8 : index
    %c0_13 = arith.constant 0 : index
    %19 = vector.load %arg10[%c8, %c0_13] : memref<216x512xbf16, #tpu.memory_space<vmem>>, vector<8x512xbf16>
    tpu.vector_store %arg10[%c8, %c0_13], %18 {strides = array<i32>} : memref<216x512xbf16, #tpu.memory_space<vmem>>, vector<8x512xbf16>,
    %c0_14 = arith.constant 0 : index
    %c57 = arith.constant 57 : index
    %20 = vector.load %arg9[%c0_14, %c57] : memref<8x768xf32, #tpu.memory_space<vmem>>, vector<8x512xf32>
    %21 = vector.extract_strided_slice %7 {offsets = [2, 0], sizes = [1, 512], strides = [1, 1]} : vector<27x512xf32> to vector<1x512xf32>
    %22 = vector.broadcast %21 : vector<1x512xf32> to vector<8x512xf32>
    %23 = arith.mulf %20, %22 : vector<8x512xf32>
    %24 = arith.truncf %23 : vector<8x512xf32> to vector<8x512xbf16>
    %c16 = arith.constant 16 : index
    %c0_15 = arith.constant 0 : index
    %25 = vector.load %arg10[%c16, %c0_15] : memref<216x512xbf16, #tpu.memory_space<vmem>>, vector<8x512xbf16>
    tpu.vector_store %arg10[%c16, %c0_15], %24 {strides = array<i32>} : memref<216x512xbf16, #tpu.memory_space<vmem>>, vector<8x512xbf16>,
    %c0_16 = arith.constant 0 : index
    %c63 = arith.constant 63 : index
    %26 = vector.load %arg9[%c0_16, %c63] : memref<8x768xf32, #tpu.memory_space<vmem>>, vector<8x512xf32>
    %27 = vector.extract_strided_slice %7 {offsets = [3, 0], sizes = [1, 512], strides = [1, 1]} : vector<27x512xf32> to vector<1x512xf32>
    %28 = vector.broadcast %27 : vector<1x512xf32> to vector<8x512xf32>
    %29 = arith.mulf %26, %28 : vector<8x512xf32>
    %30 = arith.truncf %29 : vector<8x512xf32> to vector<8x512xbf16>
    %c24 = arith.constant 24 : index
    %c0_17 = arith.constant 0 : index
    %31 = vector.load %arg10[%c24, %c0_17] : memref<216x512xbf16, #tpu.memory_space<vmem>>, vector<8x512xbf16>
    tpu.vector_store %arg10[%c24, %c0_17], %30 {strides = array<i32>} : memref<216x512xbf16, #tpu.memory_space<vmem>>, vector<8x512xbf16>,
    %c0_18 = arith.constant 0 : index
    %c64 = arith.constant 64 : index
    %32 = vector.load %arg9[%c0_18, %c64] : memref<8x768xf32, #tpu.memory_space<vmem>>, vector<8x512xf32>
    %33 = vector.extract_strided_slice %7 {offsets = [4, 0], sizes = [1, 512], strides = [1, 1]} : vector<27x512xf32> to vector<1x512xf32>
    %34 = vector.broadcast %33 : vector<1x512xf32> to vector<8x512xf32>
    %35 = arith.mulf %32, %34 : vector<8x512xf32>
    %36 = arith.truncf %35 : vector<8x512xf32> to vector<8x512xbf16>
    %c32 = arith.constant 32 : index
    %c0_19 = arith.constant 0 : index
    %37 = vector.load %arg10[%c32, %c0_19] : memref<216x512xbf16, #tpu.memory_space<vmem>>, vector<8x512xbf16>
    tpu.vector_store %arg10[%c32, %c0_19], %36 {strides = array<i32>} : memref<216x512xbf16, #tpu.memory_space<vmem>>, vector<8x512xbf16>,
    %c0_20 = arith.constant 0 : index
    %c65 = arith.constant 65 : index
    %38 = vector.load %arg9[%c0_20, %c65] : memref<8x768xf32, #tpu.memory_space<vmem>>, vector<8x512xf32>
    %39 = vector.extract_strided_slice %7 {offsets = [5, 0], sizes = [1, 512], strides = [1, 1]} : vector<27x512xf32> to vector<1x512xf32>
    %40 = vector.broadcast %39 : vector<1x512xf32> to vector<8x512xf32>
    %41 = arith.mulf %38, %40 : vector<8x512xf32>
    %42 = arith.truncf %41 : vector<8x512xf32> to vector<8x512xbf16>
    %c40 = arith.constant 40 : index
    %c0_21 = arith.constant 0 : index
    %43 = vector.load %arg10[%c40, %c0_21] : memref<216x512xbf16, #tpu.memory_space<vmem>>, vector<8x512xbf16>
    tpu.vector_store %arg10[%c40, %c0_21], %42 {strides = array<i32>} : memref<216x512xbf16, #tpu.memory_space<vmem>>, vector<8x512xbf16>,
    %c0_22 = arith.constant 0 : index
    %c71 = arith.constant 71 : index
    %44 = vector.load %arg9[%c0_22, %c71] : memref<8x768xf32, #tpu.memory_space<vmem>>, vector<8x512xf32>
    %45 = vector.extract_strided_slice %7 {offsets = [6, 0], sizes = [1, 512], strides = [1, 1]} : vector<27x512xf32> to vector<1x512xf32>
    %46 = vector.broadcast %45 : vector<1x512xf32> to vector<8x512xf32>
    %47 = arith.mulf %44, %46 : vector<8x512xf32>
    %48 = arith.truncf %47 : vector<8x512xf32> to vector<8x512xbf16>
    %c48 = arith.constant 48 : index
    %c0_23 = arith.constant 0 : index
    %49 = vector.load %arg10[%c48, %c0_23] : memref<216x512xbf16, #tpu.memory_space<vmem>>, vector<8x512xbf16>
    tpu.vector_store %arg10[%c48, %c0_23], %48 {strides = array<i32>} : memref<216x512xbf16, #tpu.memory_space<vmem>>, vector<8x512xbf16>,
    %c0_24 = arith.constant 0 : index
    %c72 = arith.constant 72 : index
    %50 = vector.load %arg9[%c0_24, %c72] : memref<8x768xf32, #tpu.memory_space<vmem>>, vector<8x512xf32>
    %51 = vector.extract_strided_slice %7 {offsets = [7, 0], sizes = [1, 512], strides = [1, 1]} : vector<27x512xf32> to vector<1x512xf32>
    %52 = vector.broadcast %51 : vector<1x512xf32> to vector<8x512xf32>
    %53 = arith.mulf %50, %52 : vector<8x512xf32>
    %54 = arith.truncf %53 : vector<8x512xf32> to vector<8x512xbf16>
    %c56_25 = arith.constant 56 : index
    %c0_26 = arith.constant 0 : index
    %55 = vector.load %arg10[%c56_25, %c0_26] : memref<216x512xbf16, #tpu.memory_space<vmem>>, vector<8x512xbf16>
    tpu.vector_store %arg10[%c56_25, %c0_26], %54 {strides = array<i32>} : memref<216x512xbf16, #tpu.memory_space<vmem>>, vector<8x512xbf16>,
    %c0_27 = arith.constant 0 : index
    %c73 = arith.constant 73 : index
    %56 = vector.load %arg9[%c0_27, %c73] : memref<8x768xf32, #tpu.memory_space<vmem>>, vector<8x512xf32>
    %57 = vector.extract_strided_slice %7 {offsets = [8, 0], sizes = [1, 512], strides = [1, 1]} : vector<27x512xf32> to vector<1x512xf32>
    %58 = vector.broadcast %57 : vector<1x512xf32> to vector<8x512xf32>
    %59 = arith.mulf %56, %58 : vector<8x512xf32>
    %60 = arith.truncf %59 : vector<8x512xf32> to vector<8x512xbf16>
    %c64_28 = arith.constant 64 : index
    %c0_29 = arith.constant 0 : index
    %61 = vector.load %arg10[%c64_28, %c0_29] : memref<216x512xbf16, #tpu.memory_space<vmem>>, vector<8x512xbf16>
    tpu.vector_store %arg10[%c64_28, %c0_29], %60 {strides = array<i32>} : memref<216x512xbf16, #tpu.memory_space<vmem>>, vector<8x512xbf16>,
    %c0_30 = arith.constant 0 : index
    %c119 = arith.constant 119 : index
    %62 = vector.load %arg9[%c0_30, %c119] : memref<8x768xf32, #tpu.memory_space<vmem>>, vector<8x512xf32>
    %63 = vector.extract_strided_slice %7 {offsets = [9, 0], sizes = [1, 512], strides = [1, 1]} : vector<27x512xf32> to vector<1x512xf32>
    %64 = vector.broadcast %63 : vector<1x512xf32> to vector<8x512xf32>
    %65 = arith.mulf %62, %64 : vector<8x512xf32>
    %66 = arith.truncf %65 : vector<8x512xf32> to vector<8x512xbf16>
    %c72_31 = arith.constant 72 : index
    %c0_32 = arith.constant 0 : index
    %67 = vector.load %arg10[%c72_31, %c0_32] : memref<216x512xbf16, #tpu.memory_space<vmem>>, vector<8x512xbf16>
    tpu.vector_store %arg10[%c72_31, %c0_32], %66 {strides = array<i32>} : memref<216x512xbf16, #tpu.memory_space<vmem>>, vector<8x512xbf16>,
    %c0_33 = arith.constant 0 : index
    %c120 = arith.constant 120 : index
    %68 = vector.load %arg9[%c0_33, %c120] : memref<8x768xf32, #tpu.memory_space<vmem>>, vector<8x512xf32>
    %69 = vector.extract_strided_slice %7 {offsets = [10, 0], sizes = [1, 512], strides = [1, 1]} : vector<27x512xf32> to vector<1x512xf32>
    %70 = vector.broadcast %69 : vector<1x512xf32> to vector<8x512xf32>
    %71 = arith.mulf %68, %70 : vector<8x512xf32>
    %72 = arith.truncf %71 : vector<8x512xf32> to vector<8x512xbf16>
    %c80 = arith.constant 80 : index
    %c0_34 = arith.constant 0 : index
    %73 = vector.load %arg10[%c80, %c0_34] : memref<216x512xbf16, #tpu.memory_space<vmem>>, vector<8x512xbf16>
    tpu.vector_store %arg10[%c80, %c0_34], %72 {strides = array<i32>} : memref<216x512xbf16, #tpu.memory_space<vmem>>, vector<8x512xbf16>,
    %c0_35 = arith.constant 0 : index
    %c121 = arith.constant 121 : index
    %74 = vector.load %arg9[%c0_35, %c121] : memref<8x768xf32, #tpu.memory_space<vmem>>, vector<8x512xf32>
    %75 = vector.extract_strided_slice %7 {offsets = [11, 0], sizes = [1, 512], strides = [1, 1]} : vector<27x512xf32> to vector<1x512xf32>
    %76 = vector.broadcast %75 : vector<1x512xf32> to vector<8x512xf32>
    %77 = arith.mulf %74, %76 : vector<8x512xf32>
    %78 = arith.truncf %77 : vector<8x512xf32> to vector<8x512xbf16>
    %c88 = arith.constant 88 : index
    %c0_36 = arith.constant 0 : index
    %79 = vector.load %arg10[%c88, %c0_36] : memref<216x512xbf16, #tpu.memory_space<vmem>>, vector<8x512xbf16>
    tpu.vector_store %arg10[%c88, %c0_36], %78 {strides = array<i32>} : memref<216x512xbf16, #tpu.memory_space<vmem>>, vector<8x512xbf16>,
    %c0_37 = arith.constant 0 : index
    %c127 = arith.constant 127 : index
    %80 = vector.load %arg9[%c0_37, %c127] : memref<8x768xf32, #tpu.memory_space<vmem>>, vector<8x512xf32>
    %81 = vector.extract_strided_slice %7 {offsets = [12, 0], sizes = [1, 512], strides = [1, 1]} : vector<27x512xf32> to vector<1x512xf32>
    %82 = vector.broadcast %81 : vector<1x512xf32> to vector<8x512xf32>
    %83 = arith.mulf %80, %82 : vector<8x512xf32>
    %84 = arith.truncf %83 : vector<8x512xf32> to vector<8x512xbf16>
    %c96 = arith.constant 96 : index
    %c0_38 = arith.constant 0 : index
    %85 = vector.load %arg10[%c96, %c0_38] : memref<216x512xbf16, #tpu.memory_space<vmem>>, vector<8x512xbf16>
    tpu.vector_store %arg10[%c96, %c0_38], %84 {strides = array<i32>} : memref<216x512xbf16, #tpu.memory_space<vmem>>, vector<8x512xbf16>,
    %c0_39 = arith.constant 0 : index
    %c128_40 = arith.constant 128 : index
    %86 = vector.load %arg9[%c0_39, %c128_40] : memref<8x768xf32, #tpu.memory_space<vmem>>, vector<8x512xf32>
    %87 = vector.extract_strided_slice %7 {offsets = [13, 0], sizes = [1, 512], strides = [1, 1]} : vector<27x512xf32> to vector<1x512xf32>
    %88 = vector.broadcast %87 : vector<1x512xf32> to vector<8x512xf32>
    %89 = arith.mulf %86, %88 : vector<8x512xf32>
    %90 = arith.truncf %89 : vector<8x512xf32> to vector<8x512xbf16>
    %c104 = arith.constant 104 : index
    %c0_41 = arith.constant 0 : index
    %91 = vector.load %arg10[%c104, %c0_41] : memref<216x512xbf16, #tpu.memory_space<vmem>>, vector<8x512xbf16>
    tpu.vector_store %arg10[%c104, %c0_41], %90 {strides = array<i32>} : memref<216x512xbf16, #tpu.memory_space<vmem>>, vector<8x512xbf16>,
    %c0_42 = arith.constant 0 : index
    %c129 = arith.constant 129 : index
    %92 = vector.load %arg9[%c0_42, %c129] : memref<8x768xf32, #tpu.memory_space<vmem>>, vector<8x512xf32>
    %93 = vector.extract_strided_slice %7 {offsets = [14, 0], sizes = [1, 512], strides = [1, 1]} : vector<27x512xf32> to vector<1x512xf32>
    %94 = vector.broadcast %93 : vector<1x512xf32> to vector<8x512xf32>
    %95 = arith.mulf %92, %94 : vector<8x512xf32>
    %96 = arith.truncf %95 : vector<8x512xf32> to vector<8x512xbf16>
    %c112 = arith.constant 112 : index
    %c0_43 = arith.constant 0 : index
    %97 = vector.load %arg10[%c112, %c0_43] : memref<216x512xbf16, #tpu.memory_space<vmem>>, vector<8x512xbf16>
    tpu.vector_store %arg10[%c112, %c0_43], %96 {strides = array<i32>} : memref<216x512xbf16, #tpu.memory_space<vmem>>, vector<8x512xbf16>,
    %c0_44 = arith.constant 0 : index
    %c135 = arith.constant 135 : index
    %98 = vector.load %arg9[%c0_44, %c135] : memref<8x768xf32, #tpu.memory_space<vmem>>, vector<8x512xf32>
    %99 = vector.extract_strided_slice %7 {offsets = [15, 0], sizes = [1, 512], strides = [1, 1]} : vector<27x512xf32> to vector<1x512xf32>
    %100 = vector.broadcast %99 : vector<1x512xf32> to vector<8x512xf32>
    %101 = arith.mulf %98, %100 : vector<8x512xf32>
    %102 = arith.truncf %101 : vector<8x512xf32> to vector<8x512xbf16>
    %c120_45 = arith.constant 120 : index
    %c0_46 = arith.constant 0 : index
    %103 = vector.load %arg10[%c120_45, %c0_46] : memref<216x512xbf16, #tpu.memory_space<vmem>>, vector<8x512xbf16>
    tpu.vector_store %arg10[%c120_45, %c0_46], %102 {strides = array<i32>} : memref<216x512xbf16, #tpu.memory_space<vmem>>, vector<8x512xbf16>,
    %c0_47 = arith.constant 0 : index
    %c136 = arith.constant 136 : index
    %104 = vector.load %arg9[%c0_47, %c136] : memref<8x768xf32, #tpu.memory_space<vmem>>, vector<8x512xf32>
    %105 = vector.extract_strided_slice %7 {offsets = [16, 0], sizes = [1, 512], strides = [1, 1]} : vector<27x512xf32> to vector<1x512xf32>
    %106 = vector.broadcast %105 : vector<1x512xf32> to vector<8x512xf32>
    %107 = arith.mulf %104, %106 : vector<8x512xf32>
    %108 = arith.truncf %107 : vector<8x512xf32> to vector<8x512xbf16>
    %c128_48 = arith.constant 128 : index
    %c0_49 = arith.constant 0 : index
    %109 = vector.load %arg10[%c128_48, %c0_49] : memref<216x512xbf16, #tpu.memory_space<vmem>>, vector<8x512xbf16>
    tpu.vector_store %arg10[%c128_48, %c0_49], %108 {strides = array<i32>} : memref<216x512xbf16, #tpu.memory_space<vmem>>, vector<8x512xbf16>,
    %c0_50 = arith.constant 0 : index
    %c137 = arith.constant 137 : index
    %110 = vector.load %arg9[%c0_50, %c137] : memref<8x768xf32, #tpu.memory_space<vmem>>, vector<8x512xf32>
    %111 = vector.extract_strided_slice %7 {offsets = [17, 0], sizes = [1, 512], strides = [1, 1]} : vector<27x512xf32> to vector<1x512xf32>
    %112 = vector.broadcast %111 : vector<1x512xf32> to vector<8x512xf32>
    %113 = arith.mulf %110, %112 : vector<8x512xf32>
    %114 = arith.truncf %113 : vector<8x512xf32> to vector<8x512xbf16>
    %c136_51 = arith.constant 136 : index
    %c0_52 = arith.constant 0 : index
    %115 = vector.load %arg10[%c136_51, %c0_52] : memref<216x512xbf16, #tpu.memory_space<vmem>>, vector<8x512xbf16>
    tpu.vector_store %arg10[%c136_51, %c0_52], %114 {strides = array<i32>} : memref<216x512xbf16, #tpu.memory_space<vmem>>, vector<8x512xbf16>,
    %c0_53 = arith.constant 0 : index
    %c183 = arith.constant 183 : index
    %116 = vector.load %arg9[%c0_53, %c183] : memref<8x768xf32, #tpu.memory_space<vmem>>, vector<8x512xf32>
    %117 = vector.extract_strided_slice %7 {offsets = [18, 0], sizes = [1, 512], strides = [1, 1]} : vector<27x512xf32> to vector<1x512xf32>
    %118 = vector.broadcast %117 : vector<1x512xf32> to vector<8x512xf32>
    %119 = arith.mulf %116, %118 : vector<8x512xf32>
    %120 = arith.truncf %119 : vector<8x512xf32> to vector<8x512xbf16>
    %c144 = arith.constant 144 : index
    %c0_54 = arith.constant 0 : index
    %121 = vector.load %arg10[%c144, %c0_54] : memref<216x512xbf16, #tpu.memory_space<vmem>>, vector<8x512xbf16>
    tpu.vector_store %arg10[%c144, %c0_54], %120 {strides = array<i32>} : memref<216x512xbf16, #tpu.memory_space<vmem>>, vector<8x512xbf16>,
    %c0_55 = arith.constant 0 : index
    %c184 = arith.constant 184 : index
    %122 = vector.load %arg9[%c0_55, %c184] : memref<8x768xf32, #tpu.memory_space<vmem>>, vector<8x512xf32>
    %123 = vector.extract_strided_slice %7 {offsets = [19, 0], sizes = [1, 512], strides = [1, 1]} : vector<27x512xf32> to vector<1x512xf32>
    %124 = vector.broadcast %123 : vector<1x512xf32> to vector<8x512xf32>
    %125 = arith.mulf %122, %124 : vector<8x512xf32>
    %126 = arith.truncf %125 : vector<8x512xf32> to vector<8x512xbf16>
    %c152 = arith.constant 152 : index
    %c0_56 = arith.constant 0 : index
    %127 = vector.load %arg10[%c152, %c0_56] : memref<216x512xbf16, #tpu.memory_space<vmem>>, vector<8x512xbf16>
    tpu.vector_store %arg10[%c152, %c0_56], %126 {strides = array<i32>} : memref<216x512xbf16, #tpu.memory_space<vmem>>, vector<8x512xbf16>,
    %c0_57 = arith.constant 0 : index
    %c185 = arith.constant 185 : index
    %128 = vector.load %arg9[%c0_57, %c185] : memref<8x768xf32, #tpu.memory_space<vmem>>, vector<8x512xf32>
    %129 = vector.extract_strided_slice %7 {offsets = [20, 0], sizes = [1, 512], strides = [1, 1]} : vector<27x512xf32> to vector<1x512xf32>
    %130 = vector.broadcast %129 : vector<1x512xf32> to vector<8x512xf32>
    %131 = arith.mulf %128, %130 : vector<8x512xf32>
    %132 = arith.truncf %131 : vector<8x512xf32> to vector<8x512xbf16>
    %c160 = arith.constant 160 : index
    %c0_58 = arith.constant 0 : index
    %133 = vector.load %arg10[%c160, %c0_58] : memref<216x512xbf16, #tpu.memory_space<vmem>>, vector<8x512xbf16>
    tpu.vector_store %arg10[%c160, %c0_58], %132 {strides = array<i32>} : memref<216x512xbf16, #tpu.memory_space<vmem>>, vector<8x512xbf16>,
    %c0_59 = arith.constant 0 : index
    %c191 = arith.constant 191 : index
    %134 = vector.load %arg9[%c0_59, %c191] : memref<8x768xf32, #tpu.memory_space<vmem>>, vector<8x512xf32>
    %135 = vector.extract_strided_slice %7 {offsets = [21, 0], sizes = [1, 512], strides = [1, 1]} : vector<27x512xf32> to vector<1x512xf32>
    %136 = vector.broadcast %135 : vector<1x512xf32> to vector<8x512xf32>
    %137 = arith.mulf %134, %136 : vector<8x512xf32>
    %138 = arith.truncf %137 : vector<8x512xf32> to vector<8x512xbf16>
    %c168 = arith.constant 168 : index
    %c0_60 = arith.constant 0 : index
    %139 = vector.load %arg10[%c168, %c0_60] : memref<216x512xbf16, #tpu.memory_space<vmem>>, vector<8x512xbf16>
    tpu.vector_store %arg10[%c168, %c0_60], %138 {strides = array<i32>} : memref<216x512xbf16, #tpu.memory_space<vmem>>, vector<8x512xbf16>,
    %c0_61 = arith.constant 0 : index
    %c192 = arith.constant 192 : index
    %140 = vector.load %arg9[%c0_61, %c192] : memref<8x768xf32, #tpu.memory_space<vmem>>, vector<8x512xf32>
    %141 = vector.extract_strided_slice %7 {offsets = [22, 0], sizes = [1, 512], strides = [1, 1]} : vector<27x512xf32> to vector<1x512xf32>
    %142 = vector.broadcast %141 : vector<1x512xf32> to vector<8x512xf32>
    %143 = arith.mulf %140, %142 : vector<8x512xf32>
    %144 = arith.truncf %143 : vector<8x512xf32> to vector<8x512xbf16>
    %c176 = arith.constant 176 : index
    %c0_62 = arith.constant 0 : index
    %145 = vector.load %arg10[%c176, %c0_62] : memref<216x512xbf16, #tpu.memory_space<vmem>>, vector<8x512xbf16>
    tpu.vector_store %arg10[%c176, %c0_62], %144 {strides = array<i32>} : memref<216x512xbf16, #tpu.memory_space<vmem>>, vector<8x512xbf16>,
    %c0_63 = arith.constant 0 : index
    %c193 = arith.constant 193 : index
    %146 = vector.load %arg9[%c0_63, %c193] : memref<8x768xf32, #tpu.memory_space<vmem>>, vector<8x512xf32>
    %147 = vector.extract_strided_slice %7 {offsets = [23, 0], sizes = [1, 512], strides = [1, 1]} : vector<27x512xf32> to vector<1x512xf32>
    %148 = vector.broadcast %147 : vector<1x512xf32> to vector<8x512xf32>
    %149 = arith.mulf %146, %148 : vector<8x512xf32>
    %150 = arith.truncf %149 : vector<8x512xf32> to vector<8x512xbf16>
    %c184_64 = arith.constant 184 : index
    %c0_65 = arith.constant 0 : index
    %151 = vector.load %arg10[%c184_64, %c0_65] : memref<216x512xbf16, #tpu.memory_space<vmem>>, vector<8x512xbf16>
    tpu.vector_store %arg10[%c184_64, %c0_65], %150 {strides = array<i32>} : memref<216x512xbf16, #tpu.memory_space<vmem>>, vector<8x512xbf16>,
    %c0_66 = arith.constant 0 : index
    %c199 = arith.constant 199 : index
    %152 = vector.load %arg9[%c0_66, %c199] : memref<8x768xf32, #tpu.memory_space<vmem>>, vector<8x512xf32>
    %153 = vector.extract_strided_slice %7 {offsets = [24, 0], sizes = [1, 512], strides = [1, 1]} : vector<27x512xf32> to vector<1x512xf32>
    %154 = vector.broadcast %153 : vector<1x512xf32> to vector<8x512xf32>
    %155 = arith.mulf %152, %154 : vector<8x512xf32>
    %156 = arith.truncf %155 : vector<8x512xf32> to vector<8x512xbf16>
    %c192_67 = arith.constant 192 : index
    %c0_68 = arith.constant 0 : index
    %157 = vector.load %arg10[%c192_67, %c0_68] : memref<216x512xbf16, #tpu.memory_space<vmem>>, vector<8x512xbf16>
    tpu.vector_store %arg10[%c192_67, %c0_68], %156 {strides = array<i32>} : memref<216x512xbf16, #tpu.memory_space<vmem>>, vector<8x512xbf16>,
    %c0_69 = arith.constant 0 : index
    %c200 = arith.constant 200 : index
    %158 = vector.load %arg9[%c0_69, %c200] : memref<8x768xf32, #tpu.memory_space<vmem>>, vector<8x512xf32>
    %159 = vector.extract_strided_slice %7 {offsets = [25, 0], sizes = [1, 512], strides = [1, 1]} : vector<27x512xf32> to vector<1x512xf32>
    %160 = vector.broadcast %159 : vector<1x512xf32> to vector<8x512xf32>
    %161 = arith.mulf %158, %160 : vector<8x512xf32>
    %162 = arith.truncf %161 : vector<8x512xf32> to vector<8x512xbf16>
    %c200_70 = arith.constant 200 : index
    %c0_71 = arith.constant 0 : index
    %163 = vector.load %arg10[%c200_70, %c0_71] : memref<216x512xbf16, #tpu.memory_space<vmem>>, vector<8x512xbf16>
    tpu.vector_store %arg10[%c200_70, %c0_71], %162 {strides = array<i32>} : memref<216x512xbf16, #tpu.memory_space<vmem>>, vector<8x512xbf16>,
    %c0_72 = arith.constant 0 : index
    %c201 = arith.constant 201 : index
    %164 = vector.load %arg9[%c0_72, %c201] : memref<8x768xf32, #tpu.memory_space<vmem>>, vector<8x512xf32>
    %165 = vector.extract_strided_slice %7 {offsets = [26, 0], sizes = [1, 512], strides = [1, 1]} : vector<27x512xf32> to vector<1x512xf32>
    %166 = vector.broadcast %165 : vector<1x512xf32> to vector<8x512xf32>
    %167 = arith.mulf %164, %166 : vector<8x512xf32>
    %168 = arith.truncf %167 : vector<8x512xf32> to vector<8x512xbf16>
    %c208 = arith.constant 208 : index
    %c0_73 = arith.constant 0 : index
    %169 = vector.load %arg10[%c208, %c0_73] : memref<216x512xbf16, #tpu.memory_space<vmem>>, vector<8x512xbf16>
    tpu.vector_store %arg10[%c208, %c0_73], %168 {strides = array<i32>} : memref<216x512xbf16, #tpu.memory_space<vmem>>, vector<8x512xbf16>,
    %c0_74 = arith.constant 0 : index
    %c0_75 = arith.constant 0 : index
    %170 = vector.load %arg3[%c0_74, %c0_75] : memref<8x216xbf16, #tpu.memory_space<vmem>>, vector<8x216xbf16>
    %c0_76 = arith.constant 0 : index
    %c0_77 = arith.constant 0 : index
    %171 = vector.load %arg10[%c0_76, %c0_77] : memref<216x512xbf16, #tpu.memory_space<vmem>>, vector<216x512xbf16>
    %cst_78 = arith.constant dense<0.000000e+00> : vector<8x512xf32>
    %172 = tpu.matmul %170, %171, %cst_78 {dimension_numbers = #tpu.dot_dimension_numbers<[1], [0], [0], [1], [0, 0, 1, 1], [], []>} : vector<8x216xbf16>, vector<216x512xbf16>, vector<8x512xf32> -> vector<8x512xf32>
    %c0_79 = arith.constant 0 : index
    %c0_80 = arith.constant 0 : index
    %173 = vector.load %arg4[%c0_79, %c0_80] : memref<8x1xf32, #tpu.memory_space<vmem>>, vector<8x1xf32>
    %174 = vector.broadcast %173 : vector<8x1xf32> to vector<8x512xf32>
    %175 = arith.addf %172, %174 : vector<8x512xf32>
    %176 = arith.truncf %175 : vector<8x512xf32> to vector<8x512xbf16>
    %c0_81 = arith.constant 0 : index
    %c0_82 = arith.constant 0 : index
    %c0_83 = arith.constant 0 : index
    %177 = vector.load %arg7[%c0_81, %c0_82, %c0_83] : memref<1x8x512xbf16, #tpu.memory_space<vmem>>, vector<1x8x512xbf16>
    %178 = vector.shape_cast %177 : vector<1x8x512xbf16> to vector<8x512xbf16>
    %179 = vector.shape_cast %176 : vector<8x512xbf16> to vector<1x8x512xbf16>
    tpu.vector_store %arg7[%c0_81, %c0_82, %c0_83], %179 {strides = array<i32>} : memref<1x8x512xbf16, #tpu.memory_space<vmem>>, vector<1x8x512xbf16>,
    %cst_84 = arith.constant dense<0.000000e+00> : vector<8xf32>
    %180 = vector.multi_reduction <add>, %175, %cst_84 [1] : vector<8x512xf32> to vector<8xf32>
    %181 = vector.shape_cast %180 : vector<8xf32> to vector<8x1xf32>
    %c0_85 = arith.constant 0 : index
    %c0_86 = arith.constant 0 : index
    %c0_87 = arith.constant 0 : index
    %182 = vector.load %arg8[%c0_85, %c0_86, %c0_87] : memref<1x8x2xf32, #tpu.memory_space<vmem>>, vector<1x8x1xf32>
    %183 = vector.shape_cast %182 : vector<1x8x1xf32> to vector<8x1xf32>
    %184 = vector.shape_cast %181 : vector<8x1xf32> to vector<1x8x1xf32>
    tpu.vector_store %arg8[%c0_85, %c0_86, %c0_87], %184 {strides = array<i32>} : memref<1x8x2xf32, #tpu.memory_space<vmem>>, vector<1x8x1xf32>,
    %185 = arith.mulf %175, %175 : vector<8x512xf32>
    %cst_88 = arith.constant dense<0.000000e+00> : vector<8xf32>
    %186 = vector.multi_reduction <add>, %185, %cst_88 [1] : vector<8x512xf32> to vector<8xf32>
    %187 = vector.shape_cast %186 : vector<8xf32> to vector<8x1xf32>
    %c0_89 = arith.constant 0 : index
    %c0_90 = arith.constant 0 : index
    %c1 = arith.constant 1 : index
    %188 = vector.load %arg8[%c0_89, %c0_90, %c1] : memref<1x8x2xf32, #tpu.memory_space<vmem>>, vector<1x8x1xf32>
    %189 = vector.shape_cast %188 : vector<1x8x1xf32> to vector<8x1xf32>
    %190 = vector.shape_cast %187 : vector<8x1xf32> to vector<1x8x1xf32>
    tpu.vector_store %arg8[%c0_89, %c0_90, %c1], %190 {strides = array<i32>} : memref<1x8x2xf32, #tpu.memory_space<vmem>>, vector<1x8x1xf32>,
    return
  }
  func.func @transform_0(%arg0: i32) -> (i32, i32, i32) {
    %c0_i32 = arith.constant 0 : i32
    %c0_i32_0 = arith.constant 0 : i32
    %c0_i32_1 = arith.constant 0 : i32
    return %arg0, %c0_i32, %c0_i32_0 : i32, i32, i32
  }
  func.func @transform_1(%arg0: i32) -> (i32, i32) {
    %c0_i32 = arith.constant 0 : i32
    %c0_i32_0 = arith.constant 0 : i32
    %c0_i32_1 = arith.constant 0 : i32
    return %c0_i32, %c0_i32_0 : i32, i32
  }
  func.func @transform_2(%arg0: i32) -> (i32, i32) {
    %c0_i32 = arith.constant 0 : i32
    %c0_i32_0 = arith.constant 0 : i32
    %c0_i32_1 = arith.constant 0 : i32
    return %c0_i32, %c0_i32_0 : i32, i32
  }
  func.func @transform_3(%arg0: i32) -> (i32, i32) {
    %c0_i32 = arith.constant 0 : i32
    %c0_i32_0 = arith.constant 0 : i32
    %c0_i32_1 = arith.constant 0 : i32
    return %c0_i32, %c0_i32_0 : i32, i32
  }
  func.func @transform_4(%arg0: i32) -> (i32, i32) {
    %c0_i32 = arith.constant 0 : i32
    %c0_i32_0 = arith.constant 0 : i32
    %c0_i32_1 = arith.constant 0 : i32
    return %c0_i32, %c0_i32_0 : i32, i32
  }
  func.func @transform_5(%arg0: i32) -> (i32, i32) {
    %c0_i32 = arith.constant 0 : i32
    %c0_i32_0 = arith.constant 0 : i32
    %c0_i32_1 = arith.constant 0 : i32
    return %c0_i32, %c0_i32_0 : i32, i32
  }
  func.func @transform_6(%arg0: i32) -> (i32, i32, i32) {
    %c0_i32 = arith.constant 0 : i32
    %c0_i32_0 = arith.constant 0 : i32
    %c0_i32_1 = arith.constant 0 : i32
    return %arg0, %c0_i32, %c0_i32_0 : i32, i32, i32
  }
  func.func @transform_7(%arg0: i32) -> (i32, i32, i32) {
    %c0_i32 = arith.constant 0 : i32
    %c0_i32_0 = arith.constant 0 : i32
    %c0_i32_1 = arith.constant 0 : i32
    return %arg0, %c0_i32, %c0_i32_0 : i32, i32, i32
  }
}

module attributes {stable_mosaic.version = 11 : i64} {
  func.func @_bn_relu_kernel(%arg0: i32, %arg1: memref<1x8x512xbf16, #tpu.memory_space<vmem>>, %arg2: memref<8x1xf32, #tpu.memory_space<vmem>>, %arg3: memref<8x1xf32, #tpu.memory_space<vmem>>, %arg4: memref<1x8x512xf32, #tpu.memory_space<vmem>>) attributes {dimension_semantics = [#tpu.dimension_semantics<parallel>], iteration_bounds = array<i64: 2>, scalar_prefetch = 0 : i64, scratch_operands = 0 : i64, tpu.core_type = #tpu.core_type<tc>, window_params = [{transform_indices = @transform_0, window_bounds = array<i64: 1, 8, 512>}, {pipeline_mode = #tpu.pipeline_mode<synchronous>, transform_indices = @transform_1, window_bounds = array<i64: 8, 1>}, {pipeline_mode = #tpu.pipeline_mode<synchronous>, transform_indices = @transform_2, window_bounds = array<i64: 8, 1>}, {transform_indices = @transform_3, window_bounds = array<i64: 1, 8, 512>}]} {
    %c0 = arith.constant 0 : index
    %c0_0 = arith.constant 0 : index
    %c0_1 = arith.constant 0 : index
    %0 = vector.load %arg1[%c0, %c0_0, %c0_1] : memref<1x8x512xbf16, #tpu.memory_space<vmem>>, vector<1x8x512xbf16>
    %1 = vector.shape_cast %0 : vector<1x8x512xbf16> to vector<8x512xbf16>
    %2 = arith.extf %1 : vector<8x512xbf16> to vector<8x512xf32>
    %c0_2 = arith.constant 0 : index
    %c0_3 = arith.constant 0 : index
    %3 = vector.load %arg2[%c0_2, %c0_3] : memref<8x1xf32, #tpu.memory_space<vmem>>, vector<8x1xf32>
    %4 = vector.broadcast %3 : vector<8x1xf32> to vector<8x512xf32>
    %5 = arith.mulf %2, %4 : vector<8x512xf32>
    %c0_4 = arith.constant 0 : index
    %c0_5 = arith.constant 0 : index
    %6 = vector.load %arg3[%c0_4, %c0_5] : memref<8x1xf32, #tpu.memory_space<vmem>>, vector<8x1xf32>
    %7 = vector.broadcast %6 : vector<8x1xf32> to vector<8x512xf32>
    %8 = arith.addf %5, %7 : vector<8x512xf32>
    %cst = arith.constant 0.000000e+00 : f32
    %9 = vector.broadcast %cst : f32 to vector<8x512xf32>
    %10 = arith.maximumf %8, %9 : vector<8x512xf32>
    %c0_6 = arith.constant 0 : index
    %c0_7 = arith.constant 0 : index
    %c0_8 = arith.constant 0 : index
    %11 = vector.load %arg4[%c0_6, %c0_7, %c0_8] : memref<1x8x512xf32, #tpu.memory_space<vmem>>, vector<1x8x512xf32>
    %12 = vector.shape_cast %11 : vector<1x8x512xf32> to vector<8x512xf32>
    %13 = vector.shape_cast %10 : vector<8x512xf32> to vector<1x8x512xf32>
    tpu.vector_store %arg4[%c0_6, %c0_7, %c0_8], %13 {strides = array<i32>} : memref<1x8x512xf32, #tpu.memory_space<vmem>>, vector<1x8x512xf32>,
    return
  }
  func.func @transform_0(%arg0: i32) -> (i32, i32, i32) {
    %c0_i32 = arith.constant 0 : i32
    %c0_i32_0 = arith.constant 0 : i32
    %c0_i32_1 = arith.constant 0 : i32
    return %arg0, %c0_i32, %c0_i32_0 : i32, i32, i32
  }
  func.func @transform_1(%arg0: i32) -> (i32, i32) {
    %c0_i32 = arith.constant 0 : i32
    %c0_i32_0 = arith.constant 0 : i32
    %c0_i32_1 = arith.constant 0 : i32
    return %c0_i32, %c0_i32_0 : i32, i32
  }
  func.func @transform_2(%arg0: i32) -> (i32, i32) {
    %c0_i32 = arith.constant 0 : i32
    %c0_i32_0 = arith.constant 0 : i32
    %c0_i32_1 = arith.constant 0 : i32
    return %c0_i32, %c0_i32_0 : i32, i32
  }
  func.func @transform_3(%arg0: i32) -> (i32, i32, i32) {
    %c0_i32 = arith.constant 0 : i32
    %c0_i32_0 = arith.constant 0 : i32
    %c0_i32_1 = arith.constant 0 : i32
    return %arg0, %c0_i32, %c0_i32_0 : i32, i32, i32
  }
}

module attributes {stable_mosaic.version = 11 : i64} {
  func.func @_conv_bn_stats_kernel(%arg0: i32, %arg1: memref<1x8x512xbf16, #tpu.memory_space<vmem>>, %arg2: memref<27x512xf32, #tpu.memory_space<vmem>>, %arg3: memref<8x216xbf16, #tpu.memory_space<vmem>>, %arg4: memref<8x1xf32, #tpu.memory_space<vmem>>, %arg5: memref<8x1xf32, #tpu.memory_space<vmem>>, %arg6: memref<8x1xf32, #tpu.memory_space<vmem>>, %arg7: memref<1x8x512xbf16, #tpu.memory_space<vmem>>, %arg8: memref<1x8x2xf32, #tpu.memory_space<vmem>>, %arg9: memref<8x768xf32, #tpu.memory_space<vmem>>, %arg10: memref<216x512xbf16, #tpu.memory_space<vmem>>) attributes {dimension_semantics = [#tpu.dimension_semantics<parallel>], iteration_bounds = array<i64: 2>, scalar_prefetch = 0 : i64, scratch_operands = 2 : i64, tpu.core_type = #tpu.core_type<tc>, window_params = [{transform_indices = @transform_0, window_bounds = array<i64: 1, 8, 512>}, {pipeline_mode = #tpu.pipeline_mode<synchronous>, transform_indices = @transform_1, window_bounds = array<i64: 27, 512>}, {pipeline_mode = #tpu.pipeline_mode<synchronous>, transform_indices = @transform_2, window_bounds = array<i64: 8, 216>}, {pipeline_mode = #tpu.pipeline_mode<synchronous>, transform_indices = @transform_3, window_bounds = array<i64: 8, 1>}, {pipeline_mode = #tpu.pipeline_mode<synchronous>, transform_indices = @transform_4, window_bounds = array<i64: 8, 1>}, {pipeline_mode = #tpu.pipeline_mode<synchronous>, transform_indices = @transform_5, window_bounds = array<i64: 8, 1>}, {transform_indices = @transform_6, window_bounds = array<i64: 1, 8, 512>}, {transform_indices = @transform_7, window_bounds = array<i64: 1, 8, 2>}]} {
    %c0 = arith.constant 0 : index
    %c0_0 = arith.constant 0 : index
    %c0_1 = arith.constant 0 : index
    %0 = vector.load %arg1[%c0, %c0_0, %c0_1] : memref<1x8x512xbf16, #tpu.memory_space<vmem>>, vector<1x8x512xbf16>
    %1 = vector.shape_cast %0 : vector<1x8x512xbf16> to vector<8x512xbf16>
    %2 = arith.extf %1 : vector<8x512xbf16> to vector<8x512xf32>
    %c0_2 = arith.constant 0 : index
    %c0_3 = arith.constant 0 : index
    %3 = vector.load %arg5[%c0_2, %c0_3] : memref<8x1xf32, #tpu.memory_space<vmem>>, vector<8x1xf32>
    %4 = vector.broadcast %3 : vector<8x1xf32> to vector<8x512xf32>
    %5 = arith.mulf %2, %4 : vector<8x512xf32>
    %c0_4 = arith.constant 0 : index
    %c0_5 = arith.constant 0 : index
    %6 = vector.load %arg6[%c0_4, %c0_5] : memref<8x1xf32, #tpu.memory_space<vmem>>, vector<8x1xf32>
    %7 = vector.broadcast %6 : vector<8x1xf32> to vector<8x512xf32>
    %8 = arith.addf %5, %7 : vector<8x512xf32>
    %cst = arith.constant 0.000000e+00 : f32
    %9 = vector.broadcast %cst : f32 to vector<8x512xf32>
    %10 = arith.maximumf %8, %9 : vector<8x512xf32>
    %cst_6 = arith.constant 0.000000e+00 : f32
    %11 = vector.broadcast %cst_6 : f32 to vector<8x128xf32>
    %c0_7 = arith.constant 0 : index
    %c0_8 = arith.constant 0 : index
    %12 = vector.load %arg9[%c0_7, %c0_8] : memref<8x768xf32, #tpu.memory_space<vmem>>, vector<8x128xf32>
    tpu.vector_store %arg9[%c0_7, %c0_8], %11 {strides = array<i32>} : memref<8x768xf32, #tpu.memory_space<vmem>>, vector<8x128xf32>,
    %cst_9 = arith.constant 0.000000e+00 : f32
    %13 = vector.broadcast %cst_9 : f32 to vector<8x128xf32>
    %c0_10 = arith.constant 0 : index
    %c640 = arith.constant 640 : index
    %14 = vector.load %arg9[%c0_10, %c640] : memref<8x768xf32, #tpu.memory_space<vmem>>, vector<8x128xf32>
    tpu.vector_store %arg9[%c0_10, %c640], %13 {strides = array<i32>} : memref<8x768xf32, #tpu.memory_space<vmem>>, vector<8x128xf32>,
    %c0_11 = arith.constant 0 : index
    %c128 = arith.constant 128 : index
    %15 = vector.load %arg9[%c0_11, %c128] : memref<8x768xf32, #tpu.memory_space<vmem>>, vector<8x512xf32>
    tpu.vector_store %arg9[%c0_11, %c128], %10 {strides = array<i32>} : memref<8x768xf32, #tpu.memory_space<vmem>>, vector<8x512xf32>,
    %c0_12 = arith.constant 0 : index
    %c0_13 = arith.constant 0 : index
    %16 = vector.load %arg2[%c0_12, %c0_13] : memref<27x512xf32, #tpu.memory_space<vmem>>, vector<27x512xf32>
    %c0_14 = arith.constant 0 : index
    %c55 = arith.constant 55 : index
    %17 = vector.load %arg9[%c0_14, %c55] : memref<8x768xf32, #tpu.memory_space<vmem>>, vector<8x512xf32>
    %18 = vector.extract_strided_slice %16 {offsets = [0, 0], sizes = [1, 512], strides = [1, 1]} : vector<27x512xf32> to vector<1x512xf32>
    %19 = vector.broadcast %18 : vector<1x512xf32> to vector<8x512xf32>
    %20 = arith.mulf %17, %19 : vector<8x512xf32>
    %21 = arith.truncf %20 : vector<8x512xf32> to vector<8x512xbf16>
    %c0_15 = arith.constant 0 : index
    %c0_16 = arith.constant 0 : index
    %22 = vector.load %arg10[%c0_15, %c0_16] : memref<216x512xbf16, #tpu.memory_space<vmem>>, vector<8x512xbf16>
    tpu.vector_store %arg10[%c0_15, %c0_16], %21 {strides = array<i32>} : memref<216x512xbf16, #tpu.memory_space<vmem>>, vector<8x512xbf16>,
    %c0_17 = arith.constant 0 : index
    %c56 = arith.constant 56 : index
    %23 = vector.load %arg9[%c0_17, %c56] : memref<8x768xf32, #tpu.memory_space<vmem>>, vector<8x512xf32>
    %24 = vector.extract_strided_slice %16 {offsets = [1, 0], sizes = [1, 512], strides = [1, 1]} : vector<27x512xf32> to vector<1x512xf32>
    %25 = vector.broadcast %24 : vector<1x512xf32> to vector<8x512xf32>
    %26 = arith.mulf %23, %25 : vector<8x512xf32>
    %27 = arith.truncf %26 : vector<8x512xf32> to vector<8x512xbf16>
    %c8 = arith.constant 8 : index
    %c0_18 = arith.constant 0 : index
    %28 = vector.load %arg10[%c8, %c0_18] : memref<216x512xbf16, #tpu.memory_space<vmem>>, vector<8x512xbf16>
    tpu.vector_store %arg10[%c8, %c0_18], %27 {strides = array<i32>} : memref<216x512xbf16, #tpu.memory_space<vmem>>, vector<8x512xbf16>,
    %c0_19 = arith.constant 0 : index
    %c57 = arith.constant 57 : index
    %29 = vector.load %arg9[%c0_19, %c57] : memref<8x768xf32, #tpu.memory_space<vmem>>, vector<8x512xf32>
    %30 = vector.extract_strided_slice %16 {offsets = [2, 0], sizes = [1, 512], strides = [1, 1]} : vector<27x512xf32> to vector<1x512xf32>
    %31 = vector.broadcast %30 : vector<1x512xf32> to vector<8x512xf32>
    %32 = arith.mulf %29, %31 : vector<8x512xf32>
    %33 = arith.truncf %32 : vector<8x512xf32> to vector<8x512xbf16>
    %c16 = arith.constant 16 : index
    %c0_20 = arith.constant 0 : index
    %34 = vector.load %arg10[%c16, %c0_20] : memref<216x512xbf16, #tpu.memory_space<vmem>>, vector<8x512xbf16>
    tpu.vector_store %arg10[%c16, %c0_20], %33 {strides = array<i32>} : memref<216x512xbf16, #tpu.memory_space<vmem>>, vector<8x512xbf16>,
    %c0_21 = arith.constant 0 : index
    %c63 = arith.constant 63 : index
    %35 = vector.load %arg9[%c0_21, %c63] : memref<8x768xf32, #tpu.memory_space<vmem>>, vector<8x512xf32>
    %36 = vector.extract_strided_slice %16 {offsets = [3, 0], sizes = [1, 512], strides = [1, 1]} : vector<27x512xf32> to vector<1x512xf32>
    %37 = vector.broadcast %36 : vector<1x512xf32> to vector<8x512xf32>
    %38 = arith.mulf %35, %37 : vector<8x512xf32>
    %39 = arith.truncf %38 : vector<8x512xf32> to vector<8x512xbf16>
    %c24 = arith.constant 24 : index
    %c0_22 = arith.constant 0 : index
    %40 = vector.load %arg10[%c24, %c0_22] : memref<216x512xbf16, #tpu.memory_space<vmem>>, vector<8x512xbf16>
    tpu.vector_store %arg10[%c24, %c0_22], %39 {strides = array<i32>} : memref<216x512xbf16, #tpu.memory_space<vmem>>, vector<8x512xbf16>,
    %c0_23 = arith.constant 0 : index
    %c64 = arith.constant 64 : index
    %41 = vector.load %arg9[%c0_23, %c64] : memref<8x768xf32, #tpu.memory_space<vmem>>, vector<8x512xf32>
    %42 = vector.extract_strided_slice %16 {offsets = [4, 0], sizes = [1, 512], strides = [1, 1]} : vector<27x512xf32> to vector<1x512xf32>
    %43 = vector.broadcast %42 : vector<1x512xf32> to vector<8x512xf32>
    %44 = arith.mulf %41, %43 : vector<8x512xf32>
    %45 = arith.truncf %44 : vector<8x512xf32> to vector<8x512xbf16>
    %c32 = arith.constant 32 : index
    %c0_24 = arith.constant 0 : index
    %46 = vector.load %arg10[%c32, %c0_24] : memref<216x512xbf16, #tpu.memory_space<vmem>>, vector<8x512xbf16>
    tpu.vector_store %arg10[%c32, %c0_24], %45 {strides = array<i32>} : memref<216x512xbf16, #tpu.memory_space<vmem>>, vector<8x512xbf16>,
    %c0_25 = arith.constant 0 : index
    %c65 = arith.constant 65 : index
    %47 = vector.load %arg9[%c0_25, %c65] : memref<8x768xf32, #tpu.memory_space<vmem>>, vector<8x512xf32>
    %48 = vector.extract_strided_slice %16 {offsets = [5, 0], sizes = [1, 512], strides = [1, 1]} : vector<27x512xf32> to vector<1x512xf32>
    %49 = vector.broadcast %48 : vector<1x512xf32> to vector<8x512xf32>
    %50 = arith.mulf %47, %49 : vector<8x512xf32>
    %51 = arith.truncf %50 : vector<8x512xf32> to vector<8x512xbf16>
    %c40 = arith.constant 40 : index
    %c0_26 = arith.constant 0 : index
    %52 = vector.load %arg10[%c40, %c0_26] : memref<216x512xbf16, #tpu.memory_space<vmem>>, vector<8x512xbf16>
    tpu.vector_store %arg10[%c40, %c0_26], %51 {strides = array<i32>} : memref<216x512xbf16, #tpu.memory_space<vmem>>, vector<8x512xbf16>,
    %c0_27 = arith.constant 0 : index
    %c71 = arith.constant 71 : index
    %53 = vector.load %arg9[%c0_27, %c71] : memref<8x768xf32, #tpu.memory_space<vmem>>, vector<8x512xf32>
    %54 = vector.extract_strided_slice %16 {offsets = [6, 0], sizes = [1, 512], strides = [1, 1]} : vector<27x512xf32> to vector<1x512xf32>
    %55 = vector.broadcast %54 : vector<1x512xf32> to vector<8x512xf32>
    %56 = arith.mulf %53, %55 : vector<8x512xf32>
    %57 = arith.truncf %56 : vector<8x512xf32> to vector<8x512xbf16>
    %c48 = arith.constant 48 : index
    %c0_28 = arith.constant 0 : index
    %58 = vector.load %arg10[%c48, %c0_28] : memref<216x512xbf16, #tpu.memory_space<vmem>>, vector<8x512xbf16>
    tpu.vector_store %arg10[%c48, %c0_28], %57 {strides = array<i32>} : memref<216x512xbf16, #tpu.memory_space<vmem>>, vector<8x512xbf16>,
    %c0_29 = arith.constant 0 : index
    %c72 = arith.constant 72 : index
    %59 = vector.load %arg9[%c0_29, %c72] : memref<8x768xf32, #tpu.memory_space<vmem>>, vector<8x512xf32>
    %60 = vector.extract_strided_slice %16 {offsets = [7, 0], sizes = [1, 512], strides = [1, 1]} : vector<27x512xf32> to vector<1x512xf32>
    %61 = vector.broadcast %60 : vector<1x512xf32> to vector<8x512xf32>
    %62 = arith.mulf %59, %61 : vector<8x512xf32>
    %63 = arith.truncf %62 : vector<8x512xf32> to vector<8x512xbf16>
    %c56_30 = arith.constant 56 : index
    %c0_31 = arith.constant 0 : index
    %64 = vector.load %arg10[%c56_30, %c0_31] : memref<216x512xbf16, #tpu.memory_space<vmem>>, vector<8x512xbf16>
    tpu.vector_store %arg10[%c56_30, %c0_31], %63 {strides = array<i32>} : memref<216x512xbf16, #tpu.memory_space<vmem>>, vector<8x512xbf16>,
    %c0_32 = arith.constant 0 : index
    %c73 = arith.constant 73 : index
    %65 = vector.load %arg9[%c0_32, %c73] : memref<8x768xf32, #tpu.memory_space<vmem>>, vector<8x512xf32>
    %66 = vector.extract_strided_slice %16 {offsets = [8, 0], sizes = [1, 512], strides = [1, 1]} : vector<27x512xf32> to vector<1x512xf32>
    %67 = vector.broadcast %66 : vector<1x512xf32> to vector<8x512xf32>
    %68 = arith.mulf %65, %67 : vector<8x512xf32>
    %69 = arith.truncf %68 : vector<8x512xf32> to vector<8x512xbf16>
    %c64_33 = arith.constant 64 : index
    %c0_34 = arith.constant 0 : index
    %70 = vector.load %arg10[%c64_33, %c0_34] : memref<216x512xbf16, #tpu.memory_space<vmem>>, vector<8x512xbf16>
    tpu.vector_store %arg10[%c64_33, %c0_34], %69 {strides = array<i32>} : memref<216x512xbf16, #tpu.memory_space<vmem>>, vector<8x512xbf16>,
    %c0_35 = arith.constant 0 : index
    %c119 = arith.constant 119 : index
    %71 = vector.load %arg9[%c0_35, %c119] : memref<8x768xf32, #tpu.memory_space<vmem>>, vector<8x512xf32>
    %72 = vector.extract_strided_slice %16 {offsets = [9, 0], sizes = [1, 512], strides = [1, 1]} : vector<27x512xf32> to vector<1x512xf32>
    %73 = vector.broadcast %72 : vector<1x512xf32> to vector<8x512xf32>
    %74 = arith.mulf %71, %73 : vector<8x512xf32>
    %75 = arith.truncf %74 : vector<8x512xf32> to vector<8x512xbf16>
    %c72_36 = arith.constant 72 : index
    %c0_37 = arith.constant 0 : index
    %76 = vector.load %arg10[%c72_36, %c0_37] : memref<216x512xbf16, #tpu.memory_space<vmem>>, vector<8x512xbf16>
    tpu.vector_store %arg10[%c72_36, %c0_37], %75 {strides = array<i32>} : memref<216x512xbf16, #tpu.memory_space<vmem>>, vector<8x512xbf16>,
    %c0_38 = arith.constant 0 : index
    %c120 = arith.constant 120 : index
    %77 = vector.load %arg9[%c0_38, %c120] : memref<8x768xf32, #tpu.memory_space<vmem>>, vector<8x512xf32>
    %78 = vector.extract_strided_slice %16 {offsets = [10, 0], sizes = [1, 512], strides = [1, 1]} : vector<27x512xf32> to vector<1x512xf32>
    %79 = vector.broadcast %78 : vector<1x512xf32> to vector<8x512xf32>
    %80 = arith.mulf %77, %79 : vector<8x512xf32>
    %81 = arith.truncf %80 : vector<8x512xf32> to vector<8x512xbf16>
    %c80 = arith.constant 80 : index
    %c0_39 = arith.constant 0 : index
    %82 = vector.load %arg10[%c80, %c0_39] : memref<216x512xbf16, #tpu.memory_space<vmem>>, vector<8x512xbf16>
    tpu.vector_store %arg10[%c80, %c0_39], %81 {strides = array<i32>} : memref<216x512xbf16, #tpu.memory_space<vmem>>, vector<8x512xbf16>,
    %c0_40 = arith.constant 0 : index
    %c121 = arith.constant 121 : index
    %83 = vector.load %arg9[%c0_40, %c121] : memref<8x768xf32, #tpu.memory_space<vmem>>, vector<8x512xf32>
    %84 = vector.extract_strided_slice %16 {offsets = [11, 0], sizes = [1, 512], strides = [1, 1]} : vector<27x512xf32> to vector<1x512xf32>
    %85 = vector.broadcast %84 : vector<1x512xf32> to vector<8x512xf32>
    %86 = arith.mulf %83, %85 : vector<8x512xf32>
    %87 = arith.truncf %86 : vector<8x512xf32> to vector<8x512xbf16>
    %c88 = arith.constant 88 : index
    %c0_41 = arith.constant 0 : index
    %88 = vector.load %arg10[%c88, %c0_41] : memref<216x512xbf16, #tpu.memory_space<vmem>>, vector<8x512xbf16>
    tpu.vector_store %arg10[%c88, %c0_41], %87 {strides = array<i32>} : memref<216x512xbf16, #tpu.memory_space<vmem>>, vector<8x512xbf16>,
    %c0_42 = arith.constant 0 : index
    %c127 = arith.constant 127 : index
    %89 = vector.load %arg9[%c0_42, %c127] : memref<8x768xf32, #tpu.memory_space<vmem>>, vector<8x512xf32>
    %90 = vector.extract_strided_slice %16 {offsets = [12, 0], sizes = [1, 512], strides = [1, 1]} : vector<27x512xf32> to vector<1x512xf32>
    %91 = vector.broadcast %90 : vector<1x512xf32> to vector<8x512xf32>
    %92 = arith.mulf %89, %91 : vector<8x512xf32>
    %93 = arith.truncf %92 : vector<8x512xf32> to vector<8x512xbf16>
    %c96 = arith.constant 96 : index
    %c0_43 = arith.constant 0 : index
    %94 = vector.load %arg10[%c96, %c0_43] : memref<216x512xbf16, #tpu.memory_space<vmem>>, vector<8x512xbf16>
    tpu.vector_store %arg10[%c96, %c0_43], %93 {strides = array<i32>} : memref<216x512xbf16, #tpu.memory_space<vmem>>, vector<8x512xbf16>,
    %c0_44 = arith.constant 0 : index
    %c128_45 = arith.constant 128 : index
    %95 = vector.load %arg9[%c0_44, %c128_45] : memref<8x768xf32, #tpu.memory_space<vmem>>, vector<8x512xf32>
    %96 = vector.extract_strided_slice %16 {offsets = [13, 0], sizes = [1, 512], strides = [1, 1]} : vector<27x512xf32> to vector<1x512xf32>
    %97 = vector.broadcast %96 : vector<1x512xf32> to vector<8x512xf32>
    %98 = arith.mulf %95, %97 : vector<8x512xf32>
    %99 = arith.truncf %98 : vector<8x512xf32> to vector<8x512xbf16>
    %c104 = arith.constant 104 : index
    %c0_46 = arith.constant 0 : index
    %100 = vector.load %arg10[%c104, %c0_46] : memref<216x512xbf16, #tpu.memory_space<vmem>>, vector<8x512xbf16>
    tpu.vector_store %arg10[%c104, %c0_46], %99 {strides = array<i32>} : memref<216x512xbf16, #tpu.memory_space<vmem>>, vector<8x512xbf16>,
    %c0_47 = arith.constant 0 : index
    %c129 = arith.constant 129 : index
    %101 = vector.load %arg9[%c0_47, %c129] : memref<8x768xf32, #tpu.memory_space<vmem>>, vector<8x512xf32>
    %102 = vector.extract_strided_slice %16 {offsets = [14, 0], sizes = [1, 512], strides = [1, 1]} : vector<27x512xf32> to vector<1x512xf32>
    %103 = vector.broadcast %102 : vector<1x512xf32> to vector<8x512xf32>
    %104 = arith.mulf %101, %103 : vector<8x512xf32>
    %105 = arith.truncf %104 : vector<8x512xf32> to vector<8x512xbf16>
    %c112 = arith.constant 112 : index
    %c0_48 = arith.constant 0 : index
    %106 = vector.load %arg10[%c112, %c0_48] : memref<216x512xbf16, #tpu.memory_space<vmem>>, vector<8x512xbf16>
    tpu.vector_store %arg10[%c112, %c0_48], %105 {strides = array<i32>} : memref<216x512xbf16, #tpu.memory_space<vmem>>, vector<8x512xbf16>,
    %c0_49 = arith.constant 0 : index
    %c135 = arith.constant 135 : index
    %107 = vector.load %arg9[%c0_49, %c135] : memref<8x768xf32, #tpu.memory_space<vmem>>, vector<8x512xf32>
    %108 = vector.extract_strided_slice %16 {offsets = [15, 0], sizes = [1, 512], strides = [1, 1]} : vector<27x512xf32> to vector<1x512xf32>
    %109 = vector.broadcast %108 : vector<1x512xf32> to vector<8x512xf32>
    %110 = arith.mulf %107, %109 : vector<8x512xf32>
    %111 = arith.truncf %110 : vector<8x512xf32> to vector<8x512xbf16>
    %c120_50 = arith.constant 120 : index
    %c0_51 = arith.constant 0 : index
    %112 = vector.load %arg10[%c120_50, %c0_51] : memref<216x512xbf16, #tpu.memory_space<vmem>>, vector<8x512xbf16>
    tpu.vector_store %arg10[%c120_50, %c0_51], %111 {strides = array<i32>} : memref<216x512xbf16, #tpu.memory_space<vmem>>, vector<8x512xbf16>,
    %c0_52 = arith.constant 0 : index
    %c136 = arith.constant 136 : index
    %113 = vector.load %arg9[%c0_52, %c136] : memref<8x768xf32, #tpu.memory_space<vmem>>, vector<8x512xf32>
    %114 = vector.extract_strided_slice %16 {offsets = [16, 0], sizes = [1, 512], strides = [1, 1]} : vector<27x512xf32> to vector<1x512xf32>
    %115 = vector.broadcast %114 : vector<1x512xf32> to vector<8x512xf32>
    %116 = arith.mulf %113, %115 : vector<8x512xf32>
    %117 = arith.truncf %116 : vector<8x512xf32> to vector<8x512xbf16>
    %c128_53 = arith.constant 128 : index
    %c0_54 = arith.constant 0 : index
    %118 = vector.load %arg10[%c128_53, %c0_54] : memref<216x512xbf16, #tpu.memory_space<vmem>>, vector<8x512xbf16>
    tpu.vector_store %arg10[%c128_53, %c0_54], %117 {strides = array<i32>} : memref<216x512xbf16, #tpu.memory_space<vmem>>, vector<8x512xbf16>,
    %c0_55 = arith.constant 0 : index
    %c137 = arith.constant 137 : index
    %119 = vector.load %arg9[%c0_55, %c137] : memref<8x768xf32, #tpu.memory_space<vmem>>, vector<8x512xf32>
    %120 = vector.extract_strided_slice %16 {offsets = [17, 0], sizes = [1, 512], strides = [1, 1]} : vector<27x512xf32> to vector<1x512xf32>
    %121 = vector.broadcast %120 : vector<1x512xf32> to vector<8x512xf32>
    %122 = arith.mulf %119, %121 : vector<8x512xf32>
    %123 = arith.truncf %122 : vector<8x512xf32> to vector<8x512xbf16>
    %c136_56 = arith.constant 136 : index
    %c0_57 = arith.constant 0 : index
    %124 = vector.load %arg10[%c136_56, %c0_57] : memref<216x512xbf16, #tpu.memory_space<vmem>>, vector<8x512xbf16>
    tpu.vector_store %arg10[%c136_56, %c0_57], %123 {strides = array<i32>} : memref<216x512xbf16, #tpu.memory_space<vmem>>, vector<8x512xbf16>,
    %c0_58 = arith.constant 0 : index
    %c183 = arith.constant 183 : index
    %125 = vector.load %arg9[%c0_58, %c183] : memref<8x768xf32, #tpu.memory_space<vmem>>, vector<8x512xf32>
    %126 = vector.extract_strided_slice %16 {offsets = [18, 0], sizes = [1, 512], strides = [1, 1]} : vector<27x512xf32> to vector<1x512xf32>
    %127 = vector.broadcast %126 : vector<1x512xf32> to vector<8x512xf32>
    %128 = arith.mulf %125, %127 : vector<8x512xf32>
    %129 = arith.truncf %128 : vector<8x512xf32> to vector<8x512xbf16>
    %c144 = arith.constant 144 : index
    %c0_59 = arith.constant 0 : index
    %130 = vector.load %arg10[%c144, %c0_59] : memref<216x512xbf16, #tpu.memory_space<vmem>>, vector<8x512xbf16>
    tpu.vector_store %arg10[%c144, %c0_59], %129 {strides = array<i32>} : memref<216x512xbf16, #tpu.memory_space<vmem>>, vector<8x512xbf16>,
    %c0_60 = arith.constant 0 : index
    %c184 = arith.constant 184 : index
    %131 = vector.load %arg9[%c0_60, %c184] : memref<8x768xf32, #tpu.memory_space<vmem>>, vector<8x512xf32>
    %132 = vector.extract_strided_slice %16 {offsets = [19, 0], sizes = [1, 512], strides = [1, 1]} : vector<27x512xf32> to vector<1x512xf32>
    %133 = vector.broadcast %132 : vector<1x512xf32> to vector<8x512xf32>
    %134 = arith.mulf %131, %133 : vector<8x512xf32>
    %135 = arith.truncf %134 : vector<8x512xf32> to vector<8x512xbf16>
    %c152 = arith.constant 152 : index
    %c0_61 = arith.constant 0 : index
    %136 = vector.load %arg10[%c152, %c0_61] : memref<216x512xbf16, #tpu.memory_space<vmem>>, vector<8x512xbf16>
    tpu.vector_store %arg10[%c152, %c0_61], %135 {strides = array<i32>} : memref<216x512xbf16, #tpu.memory_space<vmem>>, vector<8x512xbf16>,
    %c0_62 = arith.constant 0 : index
    %c185 = arith.constant 185 : index
    %137 = vector.load %arg9[%c0_62, %c185] : memref<8x768xf32, #tpu.memory_space<vmem>>, vector<8x512xf32>
    %138 = vector.extract_strided_slice %16 {offsets = [20, 0], sizes = [1, 512], strides = [1, 1]} : vector<27x512xf32> to vector<1x512xf32>
    %139 = vector.broadcast %138 : vector<1x512xf32> to vector<8x512xf32>
    %140 = arith.mulf %137, %139 : vector<8x512xf32>
    %141 = arith.truncf %140 : vector<8x512xf32> to vector<8x512xbf16>
    %c160 = arith.constant 160 : index
    %c0_63 = arith.constant 0 : index
    %142 = vector.load %arg10[%c160, %c0_63] : memref<216x512xbf16, #tpu.memory_space<vmem>>, vector<8x512xbf16>
    tpu.vector_store %arg10[%c160, %c0_63], %141 {strides = array<i32>} : memref<216x512xbf16, #tpu.memory_space<vmem>>, vector<8x512xbf16>,
    %c0_64 = arith.constant 0 : index
    %c191 = arith.constant 191 : index
    %143 = vector.load %arg9[%c0_64, %c191] : memref<8x768xf32, #tpu.memory_space<vmem>>, vector<8x512xf32>
    %144 = vector.extract_strided_slice %16 {offsets = [21, 0], sizes = [1, 512], strides = [1, 1]} : vector<27x512xf32> to vector<1x512xf32>
    %145 = vector.broadcast %144 : vector<1x512xf32> to vector<8x512xf32>
    %146 = arith.mulf %143, %145 : vector<8x512xf32>
    %147 = arith.truncf %146 : vector<8x512xf32> to vector<8x512xbf16>
    %c168 = arith.constant 168 : index
    %c0_65 = arith.constant 0 : index
    %148 = vector.load %arg10[%c168, %c0_65] : memref<216x512xbf16, #tpu.memory_space<vmem>>, vector<8x512xbf16>
    tpu.vector_store %arg10[%c168, %c0_65], %147 {strides = array<i32>} : memref<216x512xbf16, #tpu.memory_space<vmem>>, vector<8x512xbf16>,
    %c0_66 = arith.constant 0 : index
    %c192 = arith.constant 192 : index
    %149 = vector.load %arg9[%c0_66, %c192] : memref<8x768xf32, #tpu.memory_space<vmem>>, vector<8x512xf32>
    %150 = vector.extract_strided_slice %16 {offsets = [22, 0], sizes = [1, 512], strides = [1, 1]} : vector<27x512xf32> to vector<1x512xf32>
    %151 = vector.broadcast %150 : vector<1x512xf32> to vector<8x512xf32>
    %152 = arith.mulf %149, %151 : vector<8x512xf32>
    %153 = arith.truncf %152 : vector<8x512xf32> to vector<8x512xbf16>
    %c176 = arith.constant 176 : index
    %c0_67 = arith.constant 0 : index
    %154 = vector.load %arg10[%c176, %c0_67] : memref<216x512xbf16, #tpu.memory_space<vmem>>, vector<8x512xbf16>
    tpu.vector_store %arg10[%c176, %c0_67], %153 {strides = array<i32>} : memref<216x512xbf16, #tpu.memory_space<vmem>>, vector<8x512xbf16>,
    %c0_68 = arith.constant 0 : index
    %c193 = arith.constant 193 : index
    %155 = vector.load %arg9[%c0_68, %c193] : memref<8x768xf32, #tpu.memory_space<vmem>>, vector<8x512xf32>
    %156 = vector.extract_strided_slice %16 {offsets = [23, 0], sizes = [1, 512], strides = [1, 1]} : vector<27x512xf32> to vector<1x512xf32>
    %157 = vector.broadcast %156 : vector<1x512xf32> to vector<8x512xf32>
    %158 = arith.mulf %155, %157 : vector<8x512xf32>
    %159 = arith.truncf %158 : vector<8x512xf32> to vector<8x512xbf16>
    %c184_69 = arith.constant 184 : index
    %c0_70 = arith.constant 0 : index
    %160 = vector.load %arg10[%c184_69, %c0_70] : memref<216x512xbf16, #tpu.memory_space<vmem>>, vector<8x512xbf16>
    tpu.vector_store %arg10[%c184_69, %c0_70], %159 {strides = array<i32>} : memref<216x512xbf16, #tpu.memory_space<vmem>>, vector<8x512xbf16>,
    %c0_71 = arith.constant 0 : index
    %c199 = arith.constant 199 : index
    %161 = vector.load %arg9[%c0_71, %c199] : memref<8x768xf32, #tpu.memory_space<vmem>>, vector<8x512xf32>
    %162 = vector.extract_strided_slice %16 {offsets = [24, 0], sizes = [1, 512], strides = [1, 1]} : vector<27x512xf32> to vector<1x512xf32>
    %163 = vector.broadcast %162 : vector<1x512xf32> to vector<8x512xf32>
    %164 = arith.mulf %161, %163 : vector<8x512xf32>
    %165 = arith.truncf %164 : vector<8x512xf32> to vector<8x512xbf16>
    %c192_72 = arith.constant 192 : index
    %c0_73 = arith.constant 0 : index
    %166 = vector.load %arg10[%c192_72, %c0_73] : memref<216x512xbf16, #tpu.memory_space<vmem>>, vector<8x512xbf16>
    tpu.vector_store %arg10[%c192_72, %c0_73], %165 {strides = array<i32>} : memref<216x512xbf16, #tpu.memory_space<vmem>>, vector<8x512xbf16>,
    %c0_74 = arith.constant 0 : index
    %c200 = arith.constant 200 : index
    %167 = vector.load %arg9[%c0_74, %c200] : memref<8x768xf32, #tpu.memory_space<vmem>>, vector<8x512xf32>
    %168 = vector.extract_strided_slice %16 {offsets = [25, 0], sizes = [1, 512], strides = [1, 1]} : vector<27x512xf32> to vector<1x512xf32>
    %169 = vector.broadcast %168 : vector<1x512xf32> to vector<8x512xf32>
    %170 = arith.mulf %167, %169 : vector<8x512xf32>
    %171 = arith.truncf %170 : vector<8x512xf32> to vector<8x512xbf16>
    %c200_75 = arith.constant 200 : index
    %c0_76 = arith.constant 0 : index
    %172 = vector.load %arg10[%c200_75, %c0_76] : memref<216x512xbf16, #tpu.memory_space<vmem>>, vector<8x512xbf16>
    tpu.vector_store %arg10[%c200_75, %c0_76], %171 {strides = array<i32>} : memref<216x512xbf16, #tpu.memory_space<vmem>>, vector<8x512xbf16>,
    %c0_77 = arith.constant 0 : index
    %c201 = arith.constant 201 : index
    %173 = vector.load %arg9[%c0_77, %c201] : memref<8x768xf32, #tpu.memory_space<vmem>>, vector<8x512xf32>
    %174 = vector.extract_strided_slice %16 {offsets = [26, 0], sizes = [1, 512], strides = [1, 1]} : vector<27x512xf32> to vector<1x512xf32>
    %175 = vector.broadcast %174 : vector<1x512xf32> to vector<8x512xf32>
    %176 = arith.mulf %173, %175 : vector<8x512xf32>
    %177 = arith.truncf %176 : vector<8x512xf32> to vector<8x512xbf16>
    %c208 = arith.constant 208 : index
    %c0_78 = arith.constant 0 : index
    %178 = vector.load %arg10[%c208, %c0_78] : memref<216x512xbf16, #tpu.memory_space<vmem>>, vector<8x512xbf16>
    tpu.vector_store %arg10[%c208, %c0_78], %177 {strides = array<i32>} : memref<216x512xbf16, #tpu.memory_space<vmem>>, vector<8x512xbf16>,
    %c0_79 = arith.constant 0 : index
    %c0_80 = arith.constant 0 : index
    %179 = vector.load %arg3[%c0_79, %c0_80] : memref<8x216xbf16, #tpu.memory_space<vmem>>, vector<8x216xbf16>
    %c0_81 = arith.constant 0 : index
    %c0_82 = arith.constant 0 : index
    %180 = vector.load %arg10[%c0_81, %c0_82] : memref<216x512xbf16, #tpu.memory_space<vmem>>, vector<216x512xbf16>
    %cst_83 = arith.constant dense<0.000000e+00> : vector<8x512xf32>
    %181 = tpu.matmul %179, %180, %cst_83 {dimension_numbers = #tpu.dot_dimension_numbers<[1], [0], [0], [1], [0, 0, 1, 1], [], []>} : vector<8x216xbf16>, vector<216x512xbf16>, vector<8x512xf32> -> vector<8x512xf32>
    %c0_84 = arith.constant 0 : index
    %c0_85 = arith.constant 0 : index
    %182 = vector.load %arg4[%c0_84, %c0_85] : memref<8x1xf32, #tpu.memory_space<vmem>>, vector<8x1xf32>
    %183 = vector.broadcast %182 : vector<8x1xf32> to vector<8x512xf32>
    %184 = arith.addf %181, %183 : vector<8x512xf32>
    %185 = arith.truncf %184 : vector<8x512xf32> to vector<8x512xbf16>
    %c0_86 = arith.constant 0 : index
    %c0_87 = arith.constant 0 : index
    %c0_88 = arith.constant 0 : index
    %186 = vector.load %arg7[%c0_86, %c0_87, %c0_88] : memref<1x8x512xbf16, #tpu.memory_space<vmem>>, vector<1x8x512xbf16>
    %187 = vector.shape_cast %186 : vector<1x8x512xbf16> to vector<8x512xbf16>
    %188 = vector.shape_cast %185 : vector<8x512xbf16> to vector<1x8x512xbf16>
    tpu.vector_store %arg7[%c0_86, %c0_87, %c0_88], %188 {strides = array<i32>} : memref<1x8x512xbf16, #tpu.memory_space<vmem>>, vector<1x8x512xbf16>,
    %cst_89 = arith.constant dense<0.000000e+00> : vector<8xf32>
    %189 = vector.multi_reduction <add>, %184, %cst_89 [1] : vector<8x512xf32> to vector<8xf32>
    %190 = vector.shape_cast %189 : vector<8xf32> to vector<8x1xf32>
    %c0_90 = arith.constant 0 : index
    %c0_91 = arith.constant 0 : index
    %c0_92 = arith.constant 0 : index
    %191 = vector.load %arg8[%c0_90, %c0_91, %c0_92] : memref<1x8x2xf32, #tpu.memory_space<vmem>>, vector<1x8x1xf32>
    %192 = vector.shape_cast %191 : vector<1x8x1xf32> to vector<8x1xf32>
    %193 = vector.shape_cast %190 : vector<8x1xf32> to vector<1x8x1xf32>
    tpu.vector_store %arg8[%c0_90, %c0_91, %c0_92], %193 {strides = array<i32>} : memref<1x8x2xf32, #tpu.memory_space<vmem>>, vector<1x8x1xf32>,
    %194 = arith.mulf %184, %184 : vector<8x512xf32>
    %cst_93 = arith.constant dense<0.000000e+00> : vector<8xf32>
    %195 = vector.multi_reduction <add>, %194, %cst_93 [1] : vector<8x512xf32> to vector<8xf32>
    %196 = vector.shape_cast %195 : vector<8xf32> to vector<8x1xf32>
    %c0_94 = arith.constant 0 : index
    %c0_95 = arith.constant 0 : index
    %c1 = arith.constant 1 : index
    %197 = vector.load %arg8[%c0_94, %c0_95, %c1] : memref<1x8x2xf32, #tpu.memory_space<vmem>>, vector<1x8x1xf32>
    %198 = vector.shape_cast %197 : vector<1x8x1xf32> to vector<8x1xf32>
    %199 = vector.shape_cast %196 : vector<8x1xf32> to vector<1x8x1xf32>
    tpu.vector_store %arg8[%c0_94, %c0_95, %c1], %199 {strides = array<i32>} : memref<1x8x2xf32, #tpu.memory_space<vmem>>, vector<1x8x1xf32>,
    return
  }
  func.func @transform_0(%arg0: i32) -> (i32, i32, i32) {
    %c0_i32 = arith.constant 0 : i32
    %c0_i32_0 = arith.constant 0 : i32
    %c0_i32_1 = arith.constant 0 : i32
    return %arg0, %c0_i32, %c0_i32_0 : i32, i32, i32
  }
  func.func @transform_1(%arg0: i32) -> (i32, i32) {
    %c0_i32 = arith.constant 0 : i32
    %c0_i32_0 = arith.constant 0 : i32
    %c0_i32_1 = arith.constant 0 : i32
    return %c0_i32, %c0_i32_0 : i32, i32
  }
  func.func @transform_2(%arg0: i32) -> (i32, i32) {
    %c0_i32 = arith.constant 0 : i32
    %c0_i32_0 = arith.constant 0 : i32
    %c0_i32_1 = arith.constant 0 : i32
    return %c0_i32, %c0_i32_0 : i32, i32
  }
  func.func @transform_3(%arg0: i32) -> (i32, i32) {
    %c0_i32 = arith.constant 0 : i32
    %c0_i32_0 = arith.constant 0 : i32
    %c0_i32_1 = arith.constant 0 : i32
    return %c0_i32, %c0_i32_0 : i32, i32
  }
  func.func @transform_4(%arg0: i32) -> (i32, i32) {
    %c0_i32 = arith.constant 0 : i32
    %c0_i32_0 = arith.constant 0 : i32
    %c0_i32_1 = arith.constant 0 : i32
    return %c0_i32, %c0_i32_0 : i32, i32
  }
  func.func @transform_5(%arg0: i32) -> (i32, i32) {
    %c0_i32 = arith.constant 0 : i32
    %c0_i32_0 = arith.constant 0 : i32
    %c0_i32_1 = arith.constant 0 : i32
    return %c0_i32, %c0_i32_0 : i32, i32
  }
  func.func @transform_6(%arg0: i32) -> (i32, i32, i32) {
    %c0_i32 = arith.constant 0 : i32
    %c0_i32_0 = arith.constant 0 : i32
    %c0_i32_1 = arith.constant 0 : i32
    return %arg0, %c0_i32, %c0_i32_0 : i32, i32, i32
  }
  func.func @transform_7(%arg0: i32) -> (i32, i32, i32) {
    %c0_i32 = arith.constant 0 : i32
    %c0_i32_0 = arith.constant 0 : i32
    %c0_i32_1 = arith.constant 0 : i32
    return %arg0, %c0_i32, %c0_i32_0 : i32, i32, i32
  }
}

</mosaic_0001>

<bundles_post_ra>
// kernel: conv_block_forward.5
= control target key start
LH: loop header
LB: loop body
LE: loop exit
PB: predicated region body
PF: predicated region fallthrough
CT: control target
= control target key end

     0   :  { %s312_s12 = smov 0   ;;  %s335_s0 = inlined_call_operand.vmem [shape: bf16[2,8,512], index: 0, kind: input, shape index: {}]   ;;  %s336_s1 = inlined_call_operand.vmem [shape: f32[8,1], index: 1, kind: input, shape index: {}]   ;;  %s337_s2 = inlined_call_operand.vmem [shape: f32[8,1], index: 2, kind: input, shape index: {}]   ;;  %s338_s3 = inlined_call_operand.vmem [shape: f32[2,8,512], index: 3, kind: output, shape index: {}]  }
   0x1 LB: > { %s260_s13 = sadd.s32 4294967295, %s289_s12   ;;  %p264_p0 = scmp.ge.s32.totalorder %s289_s12, 1  ;;  %s289_s12 = sphi %s312_s12, %s13_s12  }
   0x2   : > { %p137_p1 = scmp.lt.s32.totalorder %s289_s12, 3 }
   0x4   : > { %p138_p2 = pnand %p264_p0, %p137_p1 }
   0x5   : > { %v177_v0 = vld [vmem:[%s336_s1] sm:$0xff] (!%p138_p2)  ;;  %v291_v1 = vmov (!%p138_p2), 0   ;;  %p161_p3 = scmp.lt.s32.totalorder (!%p138_p2), %s260_s13, 1 }
   0x6   : > { %141 = sbr.rel (%p138_p2) target bundleno = 145 (0x91), region = 32  ;;  %282 = vset.pattern.permute.xlu0 (!%p138_p2), %v291_v1  ;;  %v187_v2 = vld [vmem:[%s337_s2] sm:$0xff] (!%p138_p2) }
   0x7   : > { %180 = vperm.xlu0 (!%p138_p2), %282, %v177_v0  }
   0xb   : > { %190 = vperm.xlu0 (!%p138_p2), %282, %v187_v2  }
   0xd   : > { %s340_s13 = smov (!%p161_p3, %s260_s13), 1 }
   0xe   : > { %s271_s18 = sshll.u32 %s340_s13, 4  ;;  %s272_s22 = sshll.u32 %s340_s13, 5 }
   0xf   : > { %s165_s21 = scalar_lea.vmem %s335_s0, %s271_s18  ;;  %s170_s25 = scalar_lea.vmem %s338_s3, %s272_s22 }
  0x10   : > { %v171_v3 = vld [vmem:[%s165_s21] sm:$0xff]  ;;  %v172_v4 = vld [vmem:[%s165_s21 + $0x8] sm:$0xff] }
  0x11   : > { %v173_v5 = vunpack.c.l.bf16 %v171_v3  ;;  %v174_v6 = vunpack.c.h.bf16 %v171_v3  ;;  %v175_v7 = vunpack.c.l.bf16 %v172_v4  ;;  %v176_v8 = vunpack.c.h.bf16 %v172_v4 }
  0x86   : > { %v181_v9 = vpop.permute.xlu0 %180 }
  0x87   : > { %v183_v10 = vmul.f32 %v181_v9, %v173_v5  ;;  %v184_v11 = vmul.f32 %v181_v9, %v174_v6  ;;  %v185_v12 = vmul.f32 %v181_v9, %v175_v7  ;;  %v186_v13 = vmul.f32 %v181_v9, %v176_v8 }
  0x8a   : > { %v191_v14 = vpop.permute.xlu0 %190 }
  0x8b   : > { %v193_v15 = vadd.f32 %v191_v14, %v183_v10  ;;  %v194_v16 = vadd.f32 %v191_v14, %v184_v11  ;;  %v195_v17 = vadd.f32 %v191_v14, %v185_v12  ;;  %v196_v18 = vadd.f32 %v191_v14, %v186_v13 }
  0x8d   : > { %v197_v19 = vmax.f32 %v193_v15, 0.0  ;;  %v198_v20 = vmax.f32 %v194_v16, 0.0  ;;  %v199_v21 = vmax.f32 %v195_v17, 0.0  ;;  %v200_v22 = vmax.f32 %v196_v18, 0.0 }
  0x8f   : > { %201 = vst [vmem:[%s170_s25] sm:$0xff] %v197_v19  ;;  %202 = vst [vmem:[%s170_s25 + $0x8] sm:$0xff] %v198_v20 }
  0x90   : > { %203 = vst [vmem:[%s170_s25 + $0x10] sm:$0xff] %v199_v21  ;;  %204 = vst [vmem:[%s170_s25 + $0x18] sm:$0xff] %v200_v22 }
  0x91 PF: > { %s13_s12 = sadd.s32 1, %s289_s12  }
  0x92   : > { %p10_p4 = scmp.ge.s32.totalorder %s13_s12, 4  }
  0x94   :  { %12 = sbr.rel (!%p10_p4) target bundleno = 1 (0x1), region = 62 }

// kernel: conv_block_forward.3
= control target key start
LH: loop header
LB: loop body
LE: loop exit
PB: predicated region body
PF: predicated region fallthrough
CT: control target
= control target key end

     0   :  { %s3400_s24 = smov 0   ;;  %s4660_s0 = inlined_call_operand.vmem [shape: f32[2,8,512], index: 0, kind: input, shape index: {}]   ;;  %s4661_s1 = inlined_call_operand.vmem [shape: f32[27,512], index: 1, kind: input, shape index: {}]   ;;  %s4662_s2 = inlined_call_operand.vmem [shape: bf16[8,216], index: 2, kind: input, shape index: {}]   ;;  %s4663_s3 = inlined_call_operand.vmem [shape: f32[8,1], index: 3, kind: input, shape index: {}]   ;;  %s4664_s4 = inlined_call_operand.vmem [shape: f32[8,1], index: 4, kind: input, shape index: {}]   ;;  %s4665_s5 = inlined_call_operand.vmem [shape: f32[8,1], index: 5, kind: input, shape index: {}]   ;;  %s4666_s6 = inlined_call_operand.vmem [shape: bf16[2,8,512], index: 6, kind: output, shape index: {0}]   ;;  %s4667_s7 = inlined_call_operand.vmem [shape: f32[2,8,2], index: 7, kind: output, shape index: {1}]  }
   0x1 LB: > { %s3057_s4 = sadd.s32 4294967295, %s3340_s24   ;;  %p3061_p0 = scmp.ge.s32.totalorder %s3340_s24, 1  ;;  %s3340_s24 = sphi %s3400_s24, %s18_s24  }
   0x2   : > { %p240_p1 = scmp.lt.s32.totalorder %s3340_s24, 3 }
   0x4   : > { %p241_p2 = pnand %p3061_p0, %p240_p1 }
   0x5   : > { %v322_v0 = vlaneseq (!%p241_p2)  ;;  %v3413_v2 = vld [vmem:[%s4661_s1 + $0x10] sm:$0xff] (!%p241_p2)  ;;  %v3418_v3 = vld [vmem:[%s4661_s1] sm:$0xff] (!%p241_p2)  ;;  %v3426_v5 = vld [vmem:[%s4661_s1 + $0x18] sm:$0xff] (!%p241_p2)  ;;  %s3342_s9 = smov (!%p241_p2), 55   ;;  %s3343_s10 = smov (!%p241_p2), 56   ;;  %vm350_vm0 = vcmask (!%p241_p2), 449536  }
   0x6   : > { %244 = sbr.rel (%p241_p2) target bundleno = 864 (0x360), region = 44  ;;  %v3431_v6 = vld [vmem:[%s4661_s1 + $0x8] sm:$0xff] (!%p241_p2)  ;;  %s3344_s11 = smov (!%p241_p2), 57   ;;  %v3556_v47 = vld [vmem:[%s4661_s1 + $0x20] sm:$0xff] (!%p241_p2)  ;;  %v3567_v50 = vld [vmem:[%s4661_s1 + $0x38] sm:$0xff] (!%p241_p2)  ;;  %vm434_vm1 = vcmask (!%p241_p2), 457728  }
   0x7   : > { %v3408_v1 = vshrl.u32 (!%p241_p2), %v322_v0, 7  ;;  %s3345_s12 = smov (!%p241_p2), 63   ;;  %s3346_s13 = smov (!%p241_p2), 64   ;;  %v3551_v46 = vld [vmem:[%s4661_s1 + $0x28] sm:$0xff] (!%p241_p2)  ;;  %v3572_v51 = vld [vmem:[%s4661_s1 + $0x30] sm:$0xff] (!%p241_p2)  ;;  %vm517_vm2 = vcmask (!%p241_p2), 465920  }
   0x8   : > { %s3347_s14 = smov (!%p241_p2), 65   ;;  %s3348_s15 = smov (!%p241_p2), 71   ;;  %vm600_vm3 = vcmask (!%p241_p2), 515072   ;;  %vm683_vm4 = vcmask (!%p241_p2), 523264   ;;  %vm4670_vm5 = vcmask (!%p241_p2), 531456   ;;  %vm559_vm6 = vcmask (!%p241_p2), 580608  }
   0x9   : > { %v3421_v4 = vsub.s32 (!%p241_p2), 0, %v3408_v1  ;;  %v3444_v11 = vsub.s32 (!%p241_p2), 1, %v3408_v1  ;;  %v3459_v16 = vsub.s32 (!%p241_p2), 2, %v3408_v1  ;;  %v3474_v21 = vsub.s32 (!%p241_p2), 3, %v3408_v1  ;;  %s3349_s16 = smov (!%p241_p2), 72   ;;  %s3350_s25 = smov (!%p241_p2), 73  }
   0xa   : > { %v3489_v26 = vsub.s32 (!%p241_p2), 4, %v3408_v1  ;;  %v3504_v31 = vsub.s32 (!%p241_p2), 5, %v3408_v1  ;;  %v3519_v36 = vsub.s32 (!%p241_p2), 6, %v3408_v1  ;;  %v3534_v41 = vsub.s32 (!%p241_p2), 7, %v3408_v1  ;;  %s3351_s26 = smov (!%p241_p2), 119   ;;  %s3352_s27 = smov (!%p241_p2), 120  }
   0xb   : > { %v333_v7 = vrot.slane (!%p241_p2), %v3413_v2, %v3421_v4  ;;  %v325_v8 = vrot.slane (!%p241_p2), %v3418_v3, %v3421_v4  ;;  %v337_v9 = vrot.slane (!%p241_p2), %v3426_v5, %v3421_v4  ;;  %v329_v10 = vrot.slane (!%p241_p2), %v3431_v6, %v3421_v4  ;;  %s3353_s28 = smov (!%p241_p2), 121   ;;  %s3354_s29 = smov (!%p241_p2), 127  }
   0xc   : > { %v413_v12 = vrot.slane (!%p241_p2), %v3431_v6, %v3444_v11  ;;  %v409_v13 = vrot.slane (!%p241_p2), %v3418_v3, %v3444_v11  ;;  %v421_v14 = vrot.slane (!%p241_p2), %v3426_v5, %v3444_v11  ;;  %v417_v15 = vrot.slane (!%p241_p2), %v3413_v2, %v3444_v11  ;;  %s3355_s30 = smov (!%p241_p2), 1   ;;  %s3356_s8 = smov (!%p241_p2), 7  }
   0xd   : > { %346 = vrot.lane.b32.xlu1 %v333_v7, %s3342_s9  ;;  %342 = vrot.lane.b32.xlu0 %v325_v8, %s3342_s9  ;;  %v496_v17 = vrot.slane %v3431_v6, %v3459_v16  ;;  %v492_v18 = vrot.slane %v3418_v3, %v3459_v16  ;;  %v504_v19 = vrot.slane %v3426_v5, %v3459_v16  ;;  %s3357_s17 = smov 8   ;;  %s3358_s18 = smov 9   ;;  %vm476_vm7 = vcmask 588800  }
   0xe   : > { %v500_v20 = vrot.slane %v3413_v2, %v3459_v16  ;;  %v579_v22 = vrot.slane %v3431_v6, %v3474_v21  ;;  %v575_v23 = vrot.slane %v3418_v3, %v3474_v21  ;;  %v587_v24 = vrot.slane %v3426_v5, %v3474_v21  ;;  %p276_p3 = scmp.lt.s32.totalorder %s3057_s4, 1 }
   0xf   : > { %v583_v25 = vrot.slane %v3413_v2, %v3474_v21  ;;  %v662_v27 = vrot.slane %v3431_v6, %v3489_v26  ;;  %v658_v28 = vrot.slane %v3418_v3, %v3489_v26  ;;  %v670_v29 = vrot.slane %v3426_v5, %v3489_v26 }
  0x10   : > { %v666_v30 = vrot.slane %v3413_v2, %v3489_v26  ;;  %v745_v32 = vrot.slane %v3431_v6, %v3504_v31  ;;  %v741_v33 = vrot.slane %v3418_v3, %v3504_v31  ;;  %v753_v34 = vrot.slane %v3426_v5, %v3504_v31  ;;  %s4678_s4 = smov (!%p276_p3, %s3057_s4), 1 }
  0x11   : > { %348 = vrot.lane.b32.xlu1 %v337_v9, %s3342_s9  ;;  %344 = vrot.lane.b32.xlu0 %v329_v10, %s3342_s9  ;;  %v749_v35 = vrot.slane %v3413_v2, %v3504_v31  ;;  %v828_v37 = vrot.slane %v3431_v6, %v3519_v36  ;;  %v824_v38 = vrot.slane %v3418_v3, %v3519_v36  ;;  %s3213_s21 = sshll.u32 %s4678_s4, 5  ;;  %vm393_vm8 = vcmask 596992  }
  0x12   : > { %v836_v39 = vrot.slane %v3426_v5, %v3519_v36  ;;  %v832_v40 = vrot.slane %v3413_v2, %v3519_v36  ;;  %v911_v42 = vrot.slane %v3431_v6, %v3534_v41  ;;  %v907_v43 = vrot.slane %v3418_v3, %v3534_v41  ;;  %s3890_s5 = scalar_lea.vmem %s4660_s0, %s3213_s21 }
  0x13   : > { %v919_v44 = vrot.slane %v3426_v5, %v3534_v41  ;;  %v915_v45 = vrot.slane %v3413_v2, %v3534_v41  ;;  %v994_v48 = vrot.slane %v3551_v46, %v3421_v4  ;;  %v990_v49 = vrot.slane %v3556_v47, %v3421_v4 }
  0x14   : > { %v1002_v52 = vrot.slane %v3567_v50, %v3421_v4  ;;  %v998_v53 = vrot.slane %v3572_v51, %v3421_v4  ;;  %v1077_v54 = vrot.slane %v3551_v46, %v3444_v11  ;;  %v1073_v55 = vrot.slane %v3556_v47, %v3444_v11 }
  0x15   : > { %428 = vrot.lane.b32.xlu1 %v413_v12, %s3343_s10  ;;  %426 = vrot.lane.b32.xlu0 %v409_v13, %s3343_s10  ;;  %v1085_v56 = vrot.slane %v3567_v50, %v3444_v11  ;;  %v1081_v57 = vrot.slane %v3572_v51, %v3444_v11  ;;  %v1160_v58 = vrot.slane %v3551_v46, %v3459_v16  ;;  %vm4668_vm9 = vcmask 973824  }
  0x16   : > { %v1156_v59 = vrot.slane %v3556_v47, %v3459_v16  ;;  %v1168_v60 = vrot.slane %v3567_v50, %v3459_v16  ;;  %v1164_v61 = vrot.slane %v3572_v51, %v3459_v16  ;;  %v1243_v62 = vrot.slane %v3551_v46, %v3474_v21 }
  0x17   : > { %v1239_v63 = vrot.slane %v3556_v47, %v3474_v21  ;;  %v1251_v0 = vrot.slane %v3567_v50, %v3474_v21  ;;  %v1247_v1 = vrot.slane %v3572_v51, %v3474_v21  ;;  %v1326_v2 = vrot.slane %v3551_v46, %v3489_v26 }
  0x18   : > { %v1322_v3 = vrot.slane %v3556_v47, %v3489_v26  ;;  %v1334_v5 = vrot.slane %v3567_v50, %v3489_v26  ;;  %v1330_v6 = vrot.slane %v3572_v51, %v3489_v26  ;;  %v1451_v7 = vrot.slane %v3551_v46, %v3519_v36 }
  0x19   : > { %432 = vrot.lane.b32.xlu1 %v421_v14, %s3343_s10  ;;  %430 = vrot.lane.b32.xlu0 %v417_v15, %s3343_s10  ;;  %v1447_v8 = vrot.slane %v3556_v47, %v3519_v36  ;;  %v1459_v9 = vrot.slane %v3567_v50, %v3519_v36  ;;  %v1455_v10 = vrot.slane %v3572_v51, %v3519_v36  ;;  %vm4669_vm10 = vcmask 982016  }
  0x1a   : > { %v1534_v12 = vrot.slane %v3551_v46, %v3534_v41  ;;  %v1530_v13 = vrot.slane %v3556_v47, %v3534_v41  ;;  %v1542_v14 = vrot.slane %v3567_v50, %v3534_v41  ;;  %v1538_v15 = vrot.slane %v3572_v51, %v3534_v41 }
  0x1b   : > { %vm1264_vm11 = vcmask 990208   ;;  %vm1347_vm12 = vcmask 1039360   ;;  %vm1389_vm13 = vcmask 7168   ;;  %vm1306_vm14 = vcmask 56320  }
  0x1c   : > { %vm1223_vm15 = vcmask 64512  }
  0x1d   : > { %511 = vrot.lane.b32.xlu1 %v496_v17, %s3344_s11  ;;  %509 = vrot.lane.b32.xlu0 %v492_v18, %s3344_s11  ;;  %v3655_v17 = vld [vmem:[%s4661_s1 + $0x48] sm:$0xff]  ;;  %v3660_v18 = vld [vmem:[%s4661_s1 + $0x40] sm:$0xff] }
  0x21   : > { %515 = vrot.lane.b32.xlu1 %v504_v19, %s3344_s11  ;;  %513 = vrot.lane.b32.xlu0 %v500_v20, %s3344_s11 }
  0x25   : > { %594 = vrot.lane.b32.xlu1 %v579_v22, %s3345_s12  ;;  %592 = vrot.lane.b32.xlu0 %v575_v23, %s3345_s12  ;;  %v1617_v22 = vrot.slane %v3655_v17, %v3421_v4  ;;  %v1613_v23 = vrot.slane %v3660_v18, %v3421_v4 }
  0x29   : > { %598 = vrot.lane.b32.xlu1 %v587_v24, %s3345_s12  ;;  %596 = vrot.lane.b32.xlu0 %v583_v25, %s3345_s12  ;;  %v3675_v24 = vld [vmem:[%s4661_s1 + $0x58] sm:$0xff]  ;;  %v3680_v25 = vld [vmem:[%s4661_s1 + $0x50] sm:$0xff] }
  0x2d   : > { %677 = vrot.lane.b32.xlu1 %v662_v27, %s3346_s13  ;;  %675 = vrot.lane.b32.xlu0 %v658_v28, %s3346_s13 }
  0x31   : > { %681 = vrot.lane.b32.xlu1 %v670_v29, %s3346_s13  ;;  %679 = vrot.lane.b32.xlu0 %v666_v30, %s3346_s13  ;;  %v1625_v29 = vrot.slane %v3675_v24, %v3421_v4  ;;  %v1621_v30 = vrot.slane %v3680_v25, %v3421_v4 }
  0x35   : > { %760 = vrot.lane.b32.xlu1 %v745_v32, %s3347_s14  ;;  %758 = vrot.lane.b32.xlu0 %v741_v33, %s3347_s14 }
  0x39   : > { %764 = vrot.lane.b32.xlu1 %v753_v34, %s3347_s14  ;;  %762 = vrot.lane.b32.xlu0 %v749_v35, %s3347_s14  ;;  %v1700_v34 = vrot.slane %v3655_v17, %v3444_v11  ;;  %v1696_v35 = vrot.slane %v3660_v18, %v3444_v11 }
  0x3d   : > { %843 = vrot.lane.b32.xlu1 %v828_v37, %s3348_s15  ;;  %841 = vrot.lane.b32.xlu0 %v824_v38, %s3348_s15 }
  0x41   : > { %847 = vrot.lane.b32.xlu1 %v836_v39, %s3348_s15  ;;  %845 = vrot.lane.b32.xlu0 %v832_v40, %s3348_s15  ;;  %v1708_v39 = vrot.slane %v3675_v24, %v3444_v11  ;;  %v1704_v40 = vrot.slane %v3680_v25, %v3444_v11 }
  0x45   : > { %926 = vrot.lane.b32.xlu1 %v911_v42, %s3349_s16  ;;  %924 = vrot.lane.b32.xlu0 %v907_v43, %s3349_s16 }
  0x49   : > { %930 = vrot.lane.b32.xlu1 %v919_v44, %s3349_s16  ;;  %928 = vrot.lane.b32.xlu0 %v915_v45, %s3349_s16  ;;  %v1783_v44 = vrot.slane %v3655_v17, %v3459_v16  ;;  %v1779_v45 = vrot.slane %v3660_v18, %v3459_v16 }
  0x4d   : > { %1009 = vrot.lane.b32.xlu1 %v994_v48, %s3350_s25  ;;  %1007 = vrot.lane.b32.xlu0 %v990_v49, %s3350_s25  ;;  %v1791_v48 = vrot.slane %v3675_v24, %v3459_v16  ;;  %v1787_v49 = vrot.slane %v3680_v25, %v3459_v16 }
  0x51   : > { %1013 = vrot.lane.b32.xlu1 %v1002_v52, %s3350_s25  ;;  %1011 = vrot.lane.b32.xlu0 %v998_v53, %s3350_s25  ;;  %v1864_v52 = vrot.slane %v3655_v17, %v3474_v21  ;;  %v1860_v53 = vrot.slane %v3660_v18, %v3474_v21 }
  0x55   : > { %1092 = vrot.lane.b32.xlu1 %v1077_v54, %s3351_s26  ;;  %1090 = vrot.lane.b32.xlu0 %v1073_v55, %s3351_s26 }
  0x59   : > { %1096 = vrot.lane.b32.xlu1 %v1085_v56, %s3351_s26  ;;  %1094 = vrot.lane.b32.xlu0 %v1081_v57, %s3351_s26  ;;  %v1872_v56 = vrot.slane %v3675_v24, %v3474_v21  ;;  %v1868_v57 = vrot.slane %v3680_v25, %v3474_v21  ;;  %v1953_v21 = vrot.slane %v3675_v24, %v3489_v26 }
  0x5d   : > { %1175 = vrot.lane.b32.xlu1 %v1160_v58, %s3352_s27  ;;  %1173 = vrot.lane.b32.xlu0 %v1156_v59, %s3352_s27 }
  0x61   : > { %1179 = vrot.lane.b32.xlu1 %v1168_v60, %s3352_s27  ;;  %1177 = vrot.lane.b32.xlu0 %v1164_v61, %s3352_s27  ;;  %v1945_v60 = vrot.slane %v3655_v17, %v3489_v26  ;;  %v1941_v61 = vrot.slane %v3660_v18, %v3489_v26 }
  0x65   : > { %1258 = vrot.lane.b32.xlu1 %v1243_v62, %s3353_s28  ;;  %1256 = vrot.lane.b32.xlu0 %v1239_v63, %s3353_s28 }
  0x69   : > { %1262 = vrot.lane.b32.xlu1 %v1251_v0, %s3353_s28  ;;  %1260 = vrot.lane.b32.xlu0 %v1247_v1, %s3353_s28  ;;  %v1949_v0 = vrot.slane %v3680_v25, %v3489_v26  ;;  %v2034_v26 = vrot.slane %v3675_v24, %v3504_v31 }
  0x6d   : > { %1341 = vrot.lane.b32.xlu1 %v1326_v2, %s3354_s29  ;;  %1339 = vrot.lane.b32.xlu0 %v1322_v3, %s3354_s29  ;;  %v2026_v3 = vrot.slane %v3655_v17, %v3504_v31 }
  0x71   : > { %1345 = vrot.lane.b32.xlu1 %v1334_v5, %s3354_s29  ;;  %1343 = vrot.lane.b32.xlu0 %v1330_v6, %s3354_s29  ;;  %v2022_v5 = vrot.slane %v3660_v18, %v3504_v31 }
  0x75   : > { %1466 = vrot.lane.b32.xlu1 %v1451_v7, %s3355_s30  ;;  %1464 = vrot.lane.b32.xlu0 %v1447_v8, %s3355_s30  ;;  %v2030_v8 = vrot.slane %v3680_v25, %v3504_v31 }
  0x79   : > { %1470 = vrot.lane.b32.xlu1 %v1459_v9, %s3355_s30  ;;  %1468 = vrot.lane.b32.xlu0 %v1455_v10, %s3355_s30 }
  0x7d   : > { %1549 = vrot.lane.b32.xlu1 %v1534_v12, %s3356_s8  ;;  %1547 = vrot.lane.b32.xlu0 %v1530_v13, %s3356_s8  ;;  %v2107_v12 = vrot.slane %v3655_v17, %v3519_v36  ;;  %v2103_v13 = vrot.slane %v3660_v18, %v3519_v36 }
  0x7f   : > { %v3662_v19 = vpop.permute.xlu1 %346  ;;  %v3664_v20 = vpop.permute.xlu0 %342 }
  0x81   : > { %1553 = vrot.lane.b32.xlu1 %v1542_v14, %s3356_s8  ;;  %1551 = vrot.lane.b32.xlu0 %v1538_v15, %s3356_s8 }
  0x83   : > { %v3682_v27 = vpop.permute.xlu1 %348  ;;  %v3684_v28 = vpop.permute.xlu0 %344 }
  0x85   : > { %1632 = vrot.lane.b32.xlu1 %v1617_v22, %s3357_s17  ;;  %1630 = vrot.lane.b32.xlu0 %v1613_v23, %s3357_s17  ;;  %v2115_v22 = vrot.slane %v3675_v24, %v3519_v36  ;;  %v2111_v23 = vrot.slane %v3680_v25, %v3519_v36  ;;  %v2196_v36 = vrot.slane %v3675_v24, %v3534_v41 }
  0x87   : > { %v3692_v32 = vpop.permute.xlu1 %428  ;;  %v3694_v33 = vpop.permute.xlu0 %426 }
  0x89   : > { %1636 = vrot.lane.b32.xlu1 %v1625_v29, %s3357_s17  ;;  %1634 = vrot.lane.b32.xlu0 %v1621_v30, %s3357_s17 }
  0x8b   : > { %v3702_v37 = vpop.permute.xlu1 %432  ;;  %v3704_v38 = vpop.permute.xlu0 %430 }
  0x8d   : > { %1715 = vrot.lane.b32.xlu1 %v1700_v34, %s3358_s18  ;;  %1713 = vrot.lane.b32.xlu0 %v1696_v35, %s3358_s18  ;;  %v2188_v34 = vrot.slane %v3655_v17, %v3534_v41  ;;  %v2184_v35 = vrot.slane %v3660_v18, %v3534_v41  ;;  %v314_v17 = vld [vmem:[%s4661_s1 + $0x68] sm:$0x7]  ;;  %v313_v18 = vld [vmem:[%s4661_s1 + $0x60] sm:$0x7] }
  0x8e   : > { %v2269_v24 = vrot.slane %v314_v17, %v3421_v4 }
  0x8f   : > { %v3712_v42 = vpop.permute.xlu1 %511  ;;  %v3714_v43 = vpop.permute.xlu0 %509 }
  0x91   : > { %1719 = vrot.lane.b32.xlu1 %v1708_v39, %s3358_s18  ;;  %1717 = vrot.lane.b32.xlu0 %v1704_v40, %s3358_s18 }
  0x93   : > { %v3722_v46 = vpop.permute.xlu1 %515  ;;  %v3724_v47 = vpop.permute.xlu0 %513 }
  0x95   : > { %1798 = vrot.lane.b32.xlu1 %v1783_v44, %s3342_s9  ;;  %1796 = vrot.lane.b32.xlu0 %v1779_v45, %s3342_s9  ;;  %v2192_v44 = vrot.slane %v3680_v25, %v3534_v41  ;;  %v2265_v41 = vrot.slane %v313_v18, %v3421_v4  ;;  %v316_v25 = vld [vmem:[%s4661_s1 + $0x78] sm:$0x7] }
  0x97   : > { %v3732_v50 = vpop.permute.xlu1 %594  ;;  %v3734_v51 = vpop.permute.xlu0 %592 }
  0x99   : > { %1802 = vrot.lane.b32.xlu1 %v1791_v48, %s3342_s9  ;;  %1800 = vrot.lane.b32.xlu0 %v1787_v49, %s3342_s9  ;;  %v315_v49 = vld [vmem:[%s4661_s1 + $0x70] sm:$0x7] }
  0x9b   : > { %v3742_v54 = vpop.permute.xlu1 %598  ;;  %v3744_v55 = vpop.permute.xlu0 %596 }
  0x9d   : > { %1879 = vrot.lane.b32.xlu1 %v1864_v52, %s3343_s10  ;;  %1877 = vrot.lane.b32.xlu0 %v1860_v53, %s3343_s10 }
  0x9f   : > { %v3752_v58 = vpop.permute.xlu1 %677  ;;  %v3754_v59 = vpop.permute.xlu0 %675 }
  0xa1   : > { %1883 = vrot.lane.b32.xlu1 %v1872_v56, %s3343_s10  ;;  %1881 = vrot.lane.b32.xlu0 %v1868_v57, %s3343_s10  ;;  %v2277_v56 = vrot.slane %v316_v25, %v3421_v4  ;;  %v2273_v57 = vrot.slane %v315_v49, %v3421_v4 }
  0xa3   : > { %v3762_v62 = vpop.permute.xlu1 %681  ;;  %v3764_v63 = vpop.permute.xlu0 %679 }
  0xa5   : > { %1960 = vrot.lane.b32.xlu1 %v1945_v60, %s3344_s11  ;;  %1958 = vrot.lane.b32.xlu0 %v1941_v61, %s3344_s11 }
  0xa7   : > { %v3772_v1 = vpop.permute.xlu1 %760  ;;  %v3774_v2 = vpop.permute.xlu0 %758 }
  0xa9   : > { %1964 = vrot.lane.b32.xlu1 %v1953_v21, %s3344_s11  ;;  %1962 = vrot.lane.b32.xlu0 %v1949_v0, %s3344_s11  ;;  %v2350_v21 = vrot.slane %v314_v17, %v3444_v11  ;;  %v2346_v0 = vrot.slane %v313_v18, %v3444_v11 }
  0xab   : > { %v3782_v6 = vpop.permute.xlu1 %764  ;;  %v3784_v7 = vpop.permute.xlu0 %762 }
  0xad   : > { %2041 = vrot.lane.b32.xlu1 %v2026_v3, %s3345_s12  ;;  %2039 = vrot.lane.b32.xlu0 %v2022_v5, %s3345_s12  ;;  %v2358_v5 = vrot.slane %v316_v25, %v3444_v11 }
  0xaf   : > { %v3792_v9 = vpop.permute.xlu1 %843  ;;  %v3794_v10 = vpop.permute.xlu0 %841 }
  0xb1   : > { %2045 = vrot.lane.b32.xlu1 %v2034_v26, %s3345_s12  ;;  %2043 = vrot.lane.b32.xlu0 %v2030_v8, %s3345_s12  ;;  %v2354_v26 = vrot.slane %v315_v49, %v3444_v11  ;;  %v2431_v11 = vrot.slane %v314_v17, %v3459_v16  ;;  %v351_v17 = vsel %vm350_vm0, %v3664_v20, %v3684_v28 }
  0xb3   : > { %v3802_v14 = vpop.permute.xlu1 %847  ;;  %v3804_v15 = vpop.permute.xlu0 %845 }
  0xb5   : > { %2122 = vrot.lane.b32.xlu1 %v2107_v12, %s3346_s13  ;;  %2120 = vrot.lane.b32.xlu0 %v2103_v13, %s3346_s13  ;;  %v2427_v13 = vrot.slane %v313_v18, %v3459_v16  ;;  %v352_v18 = vsel %vm350_vm0, %v3684_v28, %v3662_v19 }
  0xb7   : > { %v3812_v29 = vpop.permute.xlu1 %926  ;;  %v3814_v30 = vpop.permute.xlu0 %924 }
  0xb9   : > { %2126 = vrot.lane.b32.xlu1 %v2115_v22, %s3346_s13  ;;  %2124 = vrot.lane.b32.xlu0 %v2111_v23, %s3346_s13 }
  0xbb   : > { %v3822_v39 = vpop.permute.xlu1 %930  ;;  %v3824_v40 = vpop.permute.xlu0 %928 }
  0xbd   : > { %2203 = vrot.lane.b32.xlu1 %v2188_v34, %s3347_s14  ;;  %2201 = vrot.lane.b32.xlu0 %v2184_v35, %s3347_s14  ;;  %v3901_v34 = vld [vmem:[%s3890_s5 + $0x10] sm:$0xff]  ;;  %v353_v35 = vsel %vm350_vm0, %v3662_v19, %v3682_v27  ;;  %v435_v19 = vsel %vm434_vm1, %v3694_v33, %v3692_v32 }
  0xbf   : > { %v3838_v45 = vpop.permute.xlu1 %1009  ;;  %v3840_v48 = vpop.permute.xlu0 %1007 }
  0xc1   : > { %2207 = vrot.lane.b32.xlu1 %v2196_v36, %s3347_s14  ;;  %2205 = vrot.lane.b32.xlu0 %v2192_v44, %s3347_s14  ;;  %v3907_v36 = vld [vmem:[%s3890_s5] sm:$0xff]  ;;  %v3910_v44 = vld [vmem:[%s3890_s5 + $0x8] sm:$0xff] }
  0xc3   : > { %v3852_v52 = vpop.permute.xlu1 %1013  ;;  %v3854_v53 = vpop.permute.xlu0 %1011 }
  0xc5   : > { %2284 = vrot.lane.b32.xlu1 %v2269_v24, %s3348_s15  ;;  %2282 = vrot.lane.b32.xlu0 %v2265_v41, %s3348_s15  ;;  %v2439_v24 = vrot.slane %v316_v25, %v3459_v16  ;;  %v2435_v41 = vrot.slane %v315_v49, %v3459_v16  ;;  %v436_v25 = vsel %vm434_vm1, %v3692_v32, %v3704_v38  ;;  %v359_v49 = vmul.f32 0.0, %v3664_v20 }
  0xc6   : > { %v437_v16 = vsel %vm434_vm1, %v3704_v38, %v3702_v37  ;;  %v445_v32 = vmul.f32 %v436_v25, %v3910_v44 }
  0xc7   : > { %v3862_v60 = vpop.permute.xlu1 %1092  ;;  %v3864_v61 = vpop.permute.xlu0 %1090 }
  0xc9   : > { %2288 = vrot.lane.b32.xlu1 %v2277_v56, %s3348_s15  ;;  %2286 = vrot.lane.b32.xlu0 %v2273_v57, %s3348_s15  ;;  %v362_v56 = vmul.f32 %v353_v35, %v3901_v34  ;;  %v360_v57 = vmul.f32 %v351_v17, %v3907_v36  ;;  %v446_v17 = vmul.f32 %v437_v16, %v3901_v34 }
  0xcb   : > { %v3874_v3 = vpop.permute.xlu1 %1096  ;;  %v3876_v4 = vpop.permute.xlu0 %1094 }
  0xcd   : > { %2365 = vrot.lane.b32.xlu1 %v2350_v21, %s3349_s16  ;;  %2363 = vrot.lane.b32.xlu0 %v2346_v0, %s3349_s16  ;;  %v361_v21 = vmul.f32 %v352_v18, %v3910_v44 }
  0xcf   : > { %v3883_v8 = vpop.permute.xlu1 %1175  ;;  %v3885_v12 = vpop.permute.xlu0 %1173  ;;  %v3216_v35 = vpack.c.bf16 %v362_v56, %v361_v21  ;;  %v518_v56 = vsel %vm517_vm2, %v3714_v43, %v3712_v42  ;;  %v520_v21 = vsel %vm517_vm2, %v3724_v47, %v3722_v46 }
  0xd0   : > { %v527_v25 = vmul.f32 %v518_v56, %v3907_v36 }
  0xd1   : > { %2369 = vrot.lane.b32.xlu1 %v2358_v5, %s3349_s16  ;;  %2367 = vrot.lane.b32.xlu0 %v2354_v26, %s3349_s16  ;;  %v443_v5 = vmul.f32 0.0, %v3694_v33  ;;  %v444_v26 = vmul.f32 %v435_v19, %v3907_v36 }
  0xd3   : > { %v3896_v22 = vpop.permute.xlu1 %1179  ;;  %v3898_v23 = vpop.permute.xlu0 %1177  ;;  %v3218_v33 = vpack.c.bf16 %v444_v26, %v443_v5 }
  0xd5   : > { %2446 = vrot.lane.b32.xlu1 %v2431_v11, %s3350_s25  ;;  %2444 = vrot.lane.b32.xlu0 %v2427_v13, %s3350_s25  ;;  %v3944_v11 = vld [vmem:[%s3890_s5 + $0x18] sm:$0xff]  ;;  %v3215_v13 = vpack.c.bf16 %v360_v57, %v359_v49  ;;  %v519_v57 = vsel %vm517_vm2, %v3712_v42, %v3724_v47  ;;  %v529_v42 = vmul.f32 %v520_v21, %v3901_v34 }
  0xd6   : > { %v363_v20 = vmul.f32 %v3682_v27, %v3944_v11  ;;  %v528_v16 = vmul.f32 %v519_v57, %v3910_v44 }
  0xd7   : > { %v3928_v28 = vpop.permute.xlu1 %1258  ;;  %v3930_v0 = vpop.permute.xlu0 %1256 }
  0xd8   : > { %v3217_v49 = vpack.c.bf16 %v363_v20, %v363_v20  ;;  %v609_v20 = vmul.f32 0.0, %v3734_v51 }
  0xd9   : > { %2450 = vrot.lane.b32.xlu1 %v2439_v24, %s3350_s25  ;;  %2448 = vrot.lane.b32.xlu0 %v2435_v41, %s3350_s25  ;;  %v447_v24 = vmul.f32 %v3702_v37, %v3944_v11  ;;  %v3219_v41 = vpack.c.bf16 %v446_v17, %v445_v32  ;;  %v526_v37 = vmul.f32 0.0, %v3714_v43  ;;  %v602_v43 = vsel %vm600_vm3, %v3732_v50, %v3744_v55 }
  0xda   : > { %v3222_v17 = vpack.c.bf16 %v529_v42, %v528_v16  ;;  %v684_v16 = vsel %vm683_vm4, %v3754_v59, %v3752_v58  ;;  %v685_v42 = vsel %vm683_vm4, %v3752_v58, %v3764_v63  ;;  %v767_v58 = vsel %vm4670_vm5, %v3774_v2, %v3772_v1 }
  0xdb   : > { %v3948_v18 = vpop.permute.xlu1 %1262  ;;  %v3950_v38 = vpop.permute.xlu0 %1260  ;;  %v3220_v5 = vpack.c.bf16 %v447_v24, %v447_v24  ;;  %v3221_v32 = vpack.c.bf16 %v527_v25, %v526_v37  ;;  %v611_v24 = vmul.f32 %v602_v43, %v3910_v44  ;;  %v694_v43 = vmul.f32 %v685_v42, %v3910_v44 }
  0xdc   : > { %v850_v42 = vsel %vm559_vm6, %v3794_v10, %v3792_v9 }
  0xdd   : > { %384 = vrot.lane.b32.xlu1 %v3216_v35, %s3350_s25  ;;  %382 = vrot.lane.b32.xlu0 %v3215_v13, %s3350_s25  ;;  %v601_v13 = vsel %vm600_vm3, %v3734_v51, %v3732_v50  ;;  %v603_v35 = vsel %vm600_vm3, %v3744_v55, %v3742_v54  ;;  %v530_v55 = vmul.f32 %v3722_v46, %v3944_v11 }
  0xde   : > { %v613_v51 = vmul.f32 %v3742_v54, %v3944_v11  ;;  %v686_v46 = vsel %vm683_vm4, %v3764_v63, %v3762_v62 }
  0xdf   : > { %v3967_v19 = vpop.permute.xlu1 %1341  ;;  %v3969_v27 = vpop.permute.xlu0 %1339  ;;  %v3223_v54 = vpack.c.bf16 %v530_v55, %v530_v55 }
  0xe1   : > { %468 = vrot.lane.b32.xlu1 %v3219_v41, %s3349_s16  ;;  %466 = vrot.lane.b32.xlu0 %v3218_v33, %s3349_s16  ;;  %v610_v33 = vmul.f32 %v601_v13, %v3907_v36  ;;  %v612_v41 = vmul.f32 %v603_v35, %v3901_v34  ;;  %v693_v13 = vmul.f32 %v684_v16, %v3907_v36 }
  0xe2   : > { %v695_v35 = vmul.f32 %v686_v46, %v3901_v34  ;;  %v851_v46 = vsel %vm559_vm6, %v3792_v9, %v3804_v15 }
  0xe3   : > { %v3977_v47 = vpop.permute.xlu1 %1345  ;;  %v3979_v26 = vpop.permute.xlu0 %1343  ;;  %v3224_v57 = vpack.c.bf16 %v610_v33, %v609_v20  ;;  %v3225_v21 = vpack.c.bf16 %v612_v41, %v611_v24  ;;  %v775_v20 = vmul.f32 0.0, %v3774_v2  ;;  %v776_v33 = vmul.f32 %v767_v58, %v3907_v36 }
  0xe4   : > { %v3228_v41 = vpack.c.bf16 %v695_v35, %v694_v43  ;;  %v696_v2 = vmul.f32 %v3762_v62, %v3944_v11 }
  0xe5   : > { %470 = vrot.lane.b32.xlu1 %v3220_v5, %s3349_s16  ;;  %386 = vrot.lane.b32.xlu0 %v3217_v49, %s3350_s25  ;;  %v3226_v49 = vpack.c.bf16 %v613_v51, %v613_v51  ;;  %v692_v5 = vmul.f32 0.0, %v3754_v59  ;;  %v769_v59 = vsel %vm4670_vm5, %v3784_v7, %v3782_v6 }
  0xe6   : > { %v778_v51 = vmul.f32 %v769_v59, %v3901_v34  ;;  %v3229_v43 = vpack.c.bf16 %v696_v2, %v696_v2  ;;  %v935_v59 = vsel %vm476_vm7, %v3824_v40, %v3822_v39 }
  0xe7   : > { %v3996_v56 = vpop.permute.xlu1 %1466  ;;  %v3998_v50 = vpop.permute.xlu0 %1464  ;;  %v3227_v24 = vpack.c.bf16 %v693_v13, %v692_v5  ;;  %v859_v5 = vmul.f32 %v850_v42, %v3907_v36  ;;  %v860_v13 = vmul.f32 %v851_v46, %v3910_v44  ;;  %v1016_v46 = vsel %vm393_vm8, %v3840_v48, %v3838_v45 }
  0xe9   : > { %551 = vrot.lane.b32.xlu1 %v3222_v17, %s3348_s15  ;;  %549 = vrot.lane.b32.xlu0 %v3221_v32, %s3348_s15  ;;  %v768_v17 = vsel %vm4670_vm5, %v3772_v1, %v3784_v7  ;;  %v3230_v7 = vpack.c.bf16 %v776_v33, %v775_v20 }
  0xea   : > { %v777_v55 = vmul.f32 %v768_v17, %v3910_v44  ;;  %v933_v17 = vsel %vm476_vm7, %v3814_v30, %v3812_v29 }
  0xeb   : > { %v4006_v37 = vpop.permute.xlu1 %1470  ;;  %v4008_v25 = vpop.permute.xlu0 %1468 }
  0xec   : > { %v3231_v16 = vpack.c.bf16 %v778_v51, %v777_v55  ;;  %v944_v51 = vmul.f32 %v935_v59, %v3901_v34 }
  0xed   : > { %634 = vrot.lane.b32.xlu1 %v3225_v21, %s3347_s14  ;;  %632 = vrot.lane.b32.xlu0 %v3224_v57, %s3347_s14  ;;  %v779_v21 = vmul.f32 %v3782_v6, %v3944_v11  ;;  %v858_v6 = vmul.f32 0.0, %v3794_v10  ;;  %v934_v10 = vsel %vm476_vm7, %v3812_v29, %v3824_v40  ;;  %v862_v40 = vmul.f32 %v3802_v14, %v3944_v11 }
  0xee   : > { %v943_v55 = vmul.f32 %v934_v10, %v3910_v44  ;;  %v1107_v10 = vmul.f32 0.0, %v3864_v61 }
  0xef   : > { %v4028_v63 = vpop.permute.xlu1 %1549  ;;  %v4030_v32 = vpop.permute.xlu0 %1547  ;;  %v3232_v35 = vpack.c.bf16 %v779_v21, %v779_v21  ;;  %v3233_v20 = vpack.c.bf16 %v859_v5, %v858_v6  ;;  %v1024_v5 = vmul.f32 0.0, %v3840_v48  ;;  %v1101_v48 = vsel %vm4668_vm9, %v3876_v4, %v3874_v3 }
  0xf0   : > { %v3237_v21 = vpack.c.bf16 %v944_v51, %v943_v55  ;;  %v1111_v51 = vmul.f32 %v3874_v3, %v3944_v11  ;;  %v1190_v3 = vmul.f32 0.0, %v3885_v12 }
  0xf1   : > { %636 = vrot.lane.b32.xlu1 %v3226_v49, %s3347_s14  ;;  %553 = vrot.lane.b32.xlu0 %v3223_v54, %s3348_s15  ;;  %v852_v54 = vsel %vm559_vm6, %v3804_v15, %v3802_v14  ;;  %v1018_v14 = vsel %vm393_vm8, %v3854_v53, %v3852_v52 }
  0xf2   : > { %v861_v9 = vmul.f32 %v852_v54, %v3901_v34  ;;  %v1017_v54 = vsel %vm393_vm8, %v3838_v45, %v3854_v53  ;;  %v1099_v45 = vsel %vm4668_vm9, %v3864_v61, %v3862_v60  ;;  %v1028_v61 = vmul.f32 %v3852_v52, %v3944_v11 }
  0xf3   : > { %v4044_v57 = vpop.permute.xlu1 %1553  ;;  %v4046_v1 = vpop.permute.xlu0 %1551  ;;  %v1108_v59 = vmul.f32 %v1099_v45, %v3907_v36 }
  0xf4   : > { %v3234_v33 = vpack.c.bf16 %v861_v9, %v860_v13  ;;  %v1025_v13 = vmul.f32 %v1016_v46, %v3907_v36  ;;  %v1026_v9 = vmul.f32 %v1017_v54, %v3910_v44 }
  0xf5   : > { %717 = vrot.lane.b32.xlu1 %v3228_v41, %s3346_s13  ;;  %715 = vrot.lane.b32.xlu0 %v3227_v24, %s3346_s13  ;;  %v941_v24 = vmul.f32 0.0, %v3814_v30  ;;  %v942_v41 = vmul.f32 %v933_v17, %v3907_v36  ;;  %v945_v30 = vmul.f32 %v3822_v39, %v3944_v11  ;;  %v3235_v39 = vpack.c.bf16 %v862_v40, %v862_v40 }
  0xf6   : > { %v1100_v17 = vsel %vm4668_vm9, %v3862_v60, %v3876_v4  ;;  %v3242_v4 = vpack.c.bf16 %v1108_v59, %v1107_v10  ;;  %vm1140_vm9 = vcmask 72704  }
  0xf7   : > { %v4063_v49 = vpop.permute.xlu1 %1632  ;;  %v4065_v62 = vpop.permute.xlu0 %1630  ;;  %v3238_v6 = vpack.c.bf16 %v945_v30, %v945_v30  ;;  %v1182_v30 = vsel %vm4669_vm10, %v3885_v12, %v3883_v8  ;;  %v1266_v12 = vsel %vm1264_vm11, %v3928_v28, %v3950_v38 }
  0xf8   : > { %v1191_v54 = vmul.f32 %v1182_v30, %v3907_v36  ;;  %v1275_v10 = vmul.f32 %v1266_v12, %v3910_v44  ;;  %v1356_v30 = vmul.f32 0.0, %v3969_v27  ;;  %v1475_v12 = vsel %vm1389_vm13, %v4008_v25, %v4006_v37 }
  0xf9   : > { %800 = vrot.lane.b32.xlu1 %v3231_v16, %s3345_s12  ;;  %798 = vrot.lane.b32.xlu0 %v3230_v7, %s3345_s12  ;;  %v3236_v7 = vpack.c.bf16 %v942_v41, %v941_v24  ;;  %v1109_v24 = vmul.f32 %v1100_v17, %v3910_v44  ;;  %v1110_v41 = vmul.f32 %v1101_v48, %v3901_v34  ;;  %v1273_v17 = vmul.f32 0.0, %v3930_v0 }
  0xfb   : > { %v4073_v15 = vpop.permute.xlu1 %1636  ;;  %v4075_v58 = vpop.permute.xlu0 %1634  ;;  %v3243_v40 = vpack.c.bf16 %v1110_v41, %v1109_v24 }
  0xfd   : > { %802 = vrot.lane.b32.xlu1 %v3232_v35, %s3345_s12  ;;  %719 = vrot.lane.b32.xlu0 %v3229_v43, %s3346_s13  ;;  %v1027_v43 = vmul.f32 %v1018_v14, %v3901_v34 }
  0xff   : > { %v4092_v2 = vpop.permute.xlu1 %1715  ;;  %v4094_v29 = vpop.permute.xlu0 %1713 }
 0x101   : > { %883 = vrot.lane.b32.xlu1 %v3234_v33, %s3344_s11  ;;  %881 = vrot.lane.b32.xlu0 %v3233_v20, %s3344_s11  ;;  %v3239_v20 = vpack.c.bf16 %v1025_v13, %v1024_v5  ;;  %v3240_v33 = vpack.c.bf16 %v1027_v43, %v1026_v9  ;;  %v1265_v13 = vsel %vm1264_vm11, %v3930_v0, %v3928_v28 }
 0x102   : > { %v1267_v9 = vsel %vm1264_vm11, %v3950_v38, %v3948_v18  ;;  %v3245_v43 = vpack.c.bf16 %v1191_v54, %v1190_v3  ;;  %v1274_v48 = vmul.f32 %v1265_v13, %v3907_v36  ;;  %v1194_v38 = vmul.f32 %v3896_v22, %v3944_v11 }
 0x103   : > { %v4102_v16 = vpop.permute.xlu1 %1719  ;;  %v4104_v42 = vpop.permute.xlu0 %1717  ;;  %v1276_v59 = vmul.f32 %v1267_v9, %v3901_v34  ;;  %v1277_v0 = vmul.f32 %v3948_v18, %v3944_v11  ;;  %v1474_v13 = vsel %vm1389_vm13, %v3996_v56, %v4008_v25  ;;  %v1564_v25 = vmul.f32 %v4030_v32, %v3907_v36 }
 0x104   : > { %v3247_v18 = vpack.c.bf16 %v1194_v38, %v1194_v38 }
 0x105   : > { %966 = vrot.lane.b32.xlu1 %v3237_v21, %s3343_s10  ;;  %964 = vrot.lane.b32.xlu0 %v3236_v7, %s3343_s10  ;;  %v1183_v7 = vsel %vm4669_vm10, %v3883_v8, %v3898_v23  ;;  %v1184_v21 = vsel %vm4669_vm10, %v3898_v23, %v3896_v22  ;;  %v3249_v24 = vpack.c.bf16 %v1276_v59, %v1275_v10  ;;  %vm391_vm10 = vcmask 1043456  }
 0x106   : > { %v1192_v14 = vmul.f32 %v1183_v7, %v3910_v44  ;;  %v1193_v8 = vmul.f32 %v1184_v21, %v3901_v34  ;;  %v1350_v22 = vsel %vm1347_vm12, %v3979_v26, %v3977_v47  ;;  %v1557_v10 = vsel %vm1306_vm14, %v4028_v63, %v4046_v1 }
 0x107   : > { %v4124_v53 = vpop.permute.xlu1 %1798  ;;  %v4126_v35 = vpop.permute.xlu0 %1796  ;;  %v1359_v3 = vmul.f32 %v1350_v22, %v3901_v34  ;;  %v1558_v59 = vsel %vm1306_vm14, %v4046_v1, %v4044_v57  ;;  %v1639_v22 = vsel %vm1223_vm15, %v4065_v62, %v4063_v49 }
 0x108   : > { %v3246_v45 = vpack.c.bf16 %v1193_v8, %v1192_v14  ;;  %v1481_v14 = vmul.f32 %v3998_v50, %v3907_v36 }
 0x109   : > { %968 = vrot.lane.b32.xlu1 %v3238_v6, %s3343_s10  ;;  %885 = vrot.lane.b32.xlu0 %v3235_v39, %s3344_s11  ;;  %v3241_v39 = vpack.c.bf16 %v1028_v61, %v1028_v61  ;;  %v3244_v6 = vpack.c.bf16 %v1111_v51, %v1111_v51  ;;  %v1349_v51 = vsel %vm1347_vm12, %v3967_v19, %v3979_v26 }
 0x10a   : > { %v1358_v21 = vmul.f32 %v1349_v51, %v3910_v44 }
 0x10b   : > { %v4140_v55 = vpop.permute.xlu1 %1802  ;;  %v4142_v60 = vpop.permute.xlu0 %1800 }
 0x10d   : > { %1049 = vrot.lane.b32.xlu1 %v3240_v33, %s3342_s9  ;;  %1047 = vrot.lane.b32.xlu0 %v3239_v20, %s3342_s9  ;;  %v3248_v33 = vpack.c.bf16 %v1274_v48, %v1273_v17  ;;  %v1484_v17 = vmul.f32 %v1475_v12, %v3944_v11  ;;  %v1723_v12 = vsel %vm1140_vm9, %v4092_v2, %v4104_v42 }
 0x10f   : > { %v4159_v46 = vpop.permute.xlu1 %1879  ;;  %v4161_v52 = vpop.permute.xlu0 %1877 }
 0x111   : > { %1132 = vrot.lane.b32.xlu1 %v3243_v40, %s3358_s18  ;;  %1130 = vrot.lane.b32.xlu0 %v3242_v4, %s3358_s18  ;;  %v1348_v4 = vsel %vm1347_vm12, %v3969_v27, %v3967_v19  ;;  %v3250_v40 = vpack.c.bf16 %v1277_v0, %v1277_v0  ;;  %v1473_v19 = vsel %vm1389_vm13, %v3998_v50, %v3996_v56 }
 0x112   : > { %v1357_v7 = vmul.f32 %v1348_v4, %v3907_v36  ;;  %v1360_v27 = vmul.f32 %v3977_v47, %v3944_v11  ;;  %v1482_v8 = vmul.f32 %v1473_v19, %v3910_v44  ;;  %v1556_v47 = vsel %vm1306_vm14, %v4030_v32, %v4028_v63 }
 0x113   : > { %v4169_v23 = vpop.permute.xlu1 %1883  ;;  %v4171_v5 = vpop.permute.xlu0 %1881  ;;  %v1483_v56 = vmul.f32 %v1474_v13, %v3901_v34  ;;  %v1565_v48 = vmul.f32 %v1556_v47, %v3910_v44  ;;  %v1485_v32 = vmul.f32 0.0, %v4006_v37  ;;  %v1724_v47 = vsel %vm1140_vm9, %v4104_v42, %v4102_v16 }
 0x114   : > { %v3253_v50 = vpack.c.bf16 %v1360_v27, %v1360_v27  ;;  %v1812_v42 = vmul.f32 %v4126_v35, %v3907_v36 }
 0x115   : > { %1134 = vrot.lane.b32.xlu1 %v3244_v6, %s3358_s18  ;;  %1051 = vrot.lane.b32.xlu0 %v3241_v39, %s3342_s9  ;;  %v3251_v39 = vpack.c.bf16 %v1357_v7, %v1356_v30  ;;  %v3252_v6 = vpack.c.bf16 %v1359_v3, %v1358_v21  ;;  %v3257_v63 = vpack.c.bf16 %v1484_v17, %v1483_v56  ;;  %s3066_s18 = sshll.u32 %s4678_s4, 3 }
 0x116   : > { %v3259_v4 = vpack.c.bf16 %v1565_v48, %v1564_v25  ;;  %v3258_v37 = vpack.c.bf16 %v1485_v32, %v1485_v32  ;;  %v1647_v30 = vmul.f32 %v4065_v62, %v3907_v36  ;;  %v1648_v7 = vmul.f32 %v1639_v22, %v3910_v44  ;;  %s289_s21 = scalar_lea.vmem %s4667_s7, %s3066_s18 }
 0x117   : > { %v4188_v20 = vpop.permute.xlu1 %1960  ;;  %v4190_v28 = vpop.permute.xlu0 %1958  ;;  %v1640_v21 = vsel %vm1223_vm15, %v4063_v49, %v4075_v58  ;;  %v1641_v3 = vsel %vm1223_vm15, %v4075_v58, %v4073_v15  ;;  %v1730_v58 = vmul.f32 %v4094_v29, %v3907_v36  ;;  %v1732_v56 = vmul.f32 %v1723_v12, %v3901_v34 }
 0x118   : > { %v1649_v62 = vmul.f32 %v1640_v21, %v3901_v34  ;;  %v1650_v49 = vmul.f32 %v1641_v3, %v3944_v11  ;;  %v1733_v17 = vmul.f32 %v1724_v47, %v3944_v11 }
 0x119   : > { %1215 = vrot.lane.b32.xlu1 %v3246_v45, %s3357_s17  ;;  %1213 = vrot.lane.b32.xlu0 %v3245_v43, %s3357_s17  ;;  %v3256_v45 = vpack.c.bf16 %v1482_v8, %v1481_v14  ;;  %v3262_v8 = vpack.c.bf16 %v1648_v7, %v1647_v30  ;;  %v1887_v30 = vsel %vm434_vm1, %v4171_v5, %v4169_v23 }
 0x11a   : > { %v3266_v32 = vpack.c.bf16 %v1733_v17, %v1732_v56 }
 0x11b   : > { %v4198_v41 = vpop.permute.xlu1 %1964  ;;  %v4200_v61 = vpop.permute.xlu0 %1962 }
 0x11c   : > { %v1967_v47 = vsel %vm517_vm2, %v4188_v20, %v4200_v61 }
 0x11d   : > { %1298 = vrot.lane.b32.xlu1 %v3249_v24, %s3356_s8  ;;  %1296 = vrot.lane.b32.xlu0 %v3248_v33, %s3356_s8  ;;  %v1566_v33 = vmul.f32 %v1557_v10, %v3901_v34  ;;  %v1567_v24 = vmul.f32 %v1558_v59, %v3944_v11 }
 0x11f   : > { %v4220_v26 = vpop.permute.xlu1 %2041  ;;  %v4222_v54 = vpop.permute.xlu0 %2039 }
 0x121   : > { %1300 = vrot.lane.b32.xlu1 %v3250_v40, %s3356_s8  ;;  %1217 = vrot.lane.b32.xlu0 %v3247_v18, %s3357_s17  ;;  %v1568_v18 = vmul.f32 0.0, %v4044_v57  ;;  %v3260_v40 = vpack.c.bf16 %v1567_v24, %v1566_v33  ;;  %v1722_v57 = vsel %vm1140_vm9, %v4094_v29, %v4092_v2  ;;  %v1651_v29 = vmul.f32 0.0, %v4073_v15 }
 0x122   : > { %v1804_v2 = vsel %vm350_vm0, %v4126_v35, %v4124_v53  ;;  %v1734_v15 = vmul.f32 0.0, %v4102_v16  ;;  %v1805_v33 = vsel %vm350_vm0, %v4124_v53, %v4142_v60  ;;  %v1806_v24 = vsel %vm350_vm0, %v4142_v60, %v4140_v55 }
 0x123   : > { %v4237_v9 = vpop.permute.xlu1 %2045  ;;  %v4239_v43 = vpop.permute.xlu0 %2043  ;;  %v3261_v14 = vpack.c.bf16 %v1568_v18, %v1568_v18  ;;  %v1813_v10 = vmul.f32 %v1804_v2, %v3910_v44  ;;  %v3264_v59 = vpack.c.bf16 %v1651_v29, %v1651_v29  ;;  %v1885_v16 = vsel %vm434_vm1, %v4161_v52, %v4159_v46 }
 0x124   : > { %v3267_v35 = vpack.c.bf16 %v1734_v15, %v1734_v15  ;;  %v1814_v53 = vmul.f32 %v1805_v33, %v3901_v34  ;;  %v1893_v60 = vmul.f32 %v4161_v52, %v3907_v36  ;;  %v1894_v18 = vmul.f32 %v1885_v16, %v3910_v44 }
 0x125   : > { %1381 = vrot.lane.b32.xlu1 %v3252_v6, %s3355_s30  ;;  %1379 = vrot.lane.b32.xlu0 %v3251_v39, %s3355_s30  ;;  %v1731_v39 = vmul.f32 %v1722_v57, %v3910_v44  ;;  %v3268_v22 = vpack.c.bf16 %v1813_v10, %v1812_v42  ;;  %v1816_v52 = vmul.f32 0.0, %v4140_v55  ;;  %v1896_v57 = vmul.f32 %v1887_v30, %v3944_v11 }
 0x126   : > { %v1897_v55 = vmul.f32 0.0, %v4169_v23  ;;  %v1968_v29 = vsel %vm517_vm2, %v4200_v61, %v4198_v41  ;;  %v2047_v23 = vsel %vm600_vm3, %v4222_v54, %v4220_v26  ;;  %v2055_v61 = vmul.f32 %v4222_v54, %v3907_v36 }
 0x127   : > { %v4257_v38 = vpop.permute.xlu1 %2122  ;;  %v4259_v0 = vpop.permute.xlu0 %2120  ;;  %v2056_v2 = vmul.f32 %v2047_v23, %v3910_v44  ;;  %v2048_v10 = vsel %vm600_vm3, %v4220_v26, %v4239_v43  ;;  %v1978_v54 = vmul.f32 0.0, %v4198_v41 }
 0x128   : > { %v3273_v56 = vpack.c.bf16 %v1897_v55, %v1897_v55  ;;  %v2128_v26 = vsel %vm683_vm4, %v4259_v0, %v4257_v38  ;;  %v2136_v41 = vmul.f32 %v4259_v0, %v3907_v36 }
 0x129   : > { %1504 = vrot.lane.b32.xlu1 %v3256_v45, %s3354_s29  ;;  %1383 = vrot.lane.b32.xlu0 %v3253_v50, %s3355_s30  ;;  %v3263_v50 = vpack.c.bf16 %v1650_v49, %v1649_v62  ;;  %v3265_v45 = vpack.c.bf16 %v1731_v39, %v1730_v58  ;;  %v1974_v39 = vmul.f32 %v4190_v28, %v3907_v36 }
 0x12a   : > { %v3277_v33 = vpack.c.bf16 %v2056_v2, %v2055_v61  ;;  %v3276_v30 = vpack.c.bf16 %v1978_v54, %v1978_v54 }
 0x12b   : > { %v4266_v51 = vpop.permute.xlu1 %2126  ;;  %v4268_v1 = vpop.permute.xlu0 %2124 }
 0x12c   : > { %v2140_v2 = vmul.f32 0.0, %v4266_v51 }
 0x12d   : > { %1587 = vrot.lane.b32.xlu1 %v3259_v4, %s3353_s28  ;;  %1506 = vrot.lane.b32.xlu0 %v3257_v63, %s3354_s29 }
 0x12f   : > { %v4285_v19 = vpop.permute.xlu1 %2203  ;;  %v4287_v27 = vpop.permute.xlu0 %2201 }
 0x130   : > { %v2217_v55 = vmul.f32 %v4287_v27, %v3907_v36 }
 0x131   : > { %1508 = vrot.lane.b32.xlu1 %v3258_v37, %s3354_s29  ;;  %1589 = vrot.lane.b32.xlu0 %v3260_v40, %s3353_s28  ;;  %v1815_v37 = vmul.f32 %v1806_v24, %v3944_v11  ;;  %v1886_v40 = vsel %vm434_vm1, %v4159_v46, %v4171_v5  ;;  %v3271_v46 = vpack.c.bf16 %v1894_v18, %v1893_v60  ;;  %s3214_s29 = sshll.u32 %s4678_s4, 4 }
 0x132   : > { %v1895_v3 = vmul.f32 %v1886_v40, %v3901_v34  ;;  %v1966_v5 = vsel %vm517_vm2, %v4190_v28, %v4188_v20  ;;  %v1976_v28 = vmul.f32 %v1967_v47, %v3901_v34  ;;  %v1977_v20 = vmul.f32 %v1968_v29, %v3944_v11  ;;  %s285_s17 = scalar_lea.vmem %s4666_s6, %s3214_s29 }
 0x133   : > { %v4299_v6 = vpop.permute.xlu1 %2207  ;;  %v4301_v13 = vpop.permute.xlu0 %2205  ;;  %v3269_v62 = vpack.c.bf16 %v1815_v37, %v1814_v53  ;;  %v1975_v12 = vmul.f32 %v1966_v5, %v3910_v44  ;;  %v2057_v24 = vmul.f32 %v2048_v10, %v3901_v34  ;;  %v2059_v37 = vmul.f32 0.0, %v4237_v9 }
 0x134   : > { %v3272_v58 = vpack.c.bf16 %v1896_v57, %v1895_v3  ;;  %v2137_v60 = vmul.f32 %v2128_v26, %v3910_v44  ;;  %v2129_v18 = vsel %vm683_vm4, %v4257_v38, %v4268_v1  ;;  %v2130_v40 = vsel %vm683_vm4, %v4268_v1, %v4266_v51 }
 0x135   : > { %1670 = vrot.lane.b32.xlu1 %v3262_v8, %s3352_s27  ;;  %1591 = vrot.lane.b32.xlu0 %v3261_v14, %s3353_s28  ;;  %v3270_v8 = vpack.c.bf16 %v1816_v52, %v1816_v52  ;;  %v3274_v17 = vpack.c.bf16 %v1975_v12, %v1974_v39  ;;  %v2209_v52 = vsel %vm4670_vm5, %v4287_v27, %v4285_v19 }
 0x136   : > { %v3279_v5 = vpack.c.bf16 %v2059_v37, %v2059_v37  ;;  %v2139_v38 = vmul.f32 %v2130_v40, %v3944_v11  ;;  %v3280_v1 = vpack.c.bf16 %v2137_v60, %v2136_v41  ;;  %v2210_v12 = vsel %vm4670_vm5, %v4285_v19, %v4301_v13 }
 0x137   : > { %v4317_v25 = vpop.permute.xlu1 %2284  ;;  %v4319_v48 = vpop.permute.xlu0 %2282  ;;  %v2211_v47 = vsel %vm4670_vm5, %v4301_v13, %v4299_v6  ;;  %v2219_v13 = vmul.f32 %v2210_v12, %v3901_v34 }
 0x138   : > { %v2298_v60 = vmul.f32 %v4319_v48, %v3907_v36 }
 0x139   : > { %1753 = vrot.lane.b32.xlu1 %v3265_v45, %s3351_s26  ;;  %1672 = vrot.lane.b32.xlu0 %v3263_v50, %s3352_s27 }
 0x13b   : > { %v4333_v63 = vpop.permute.xlu1 %2288  ;;  %v4335_v4 = vpop.permute.xlu0 %2286 }
 0x13c   : > { %v2292_v40 = vsel %vm559_vm6, %v4335_v4, %v4333_v63 }
 0x13d   : > { %1674 = vrot.lane.b32.xlu1 %v3264_v59, %s3352_s27  ;;  %1755 = vrot.lane.b32.xlu0 %v3266_v32, %s3351_s26  ;;  %v2049_v59 = vsel %vm600_vm3, %v4239_v43, %v4237_v9  ;;  %v3275_v32 = vpack.c.bf16 %v1977_v20, %v1976_v28 }
 0x13e   : > { %v2058_v16 = vmul.f32 %v2049_v59, %v3944_v11 }
 0x13f   : > { %v4353_v7 = vpop.permute.xlu1 %2365  ;;  %v4355_v21 = vpop.permute.xlu0 %2363 }
 0x140   : > { %v3278_v9 = vpack.c.bf16 %v2058_v16, %v2057_v24 }
 0x141   : > { %1835 = vrot.lane.b32.xlu1 %v3268_v22, %s3350_s25  ;;  %1757 = vrot.lane.b32.xlu0 %v3267_v35, %s3351_s26 }
 0x143   : > { %v4362_v49 = vpop.permute.xlu1 %2369  ;;  %v4364_v14 = vpop.permute.xlu0 %2367 }
 0x145   : > { %1916 = vrot.lane.b32.xlu1 %v3271_v46, %s3349_s16  ;;  %1837 = vrot.lane.b32.xlu0 %v3269_v62, %s3350_s25 }
 0x147   : > { %v4381_v50 = vpop.permute.xlu1 %2446  ;;  %v4383_v45 = vpop.permute.xlu0 %2444 }
 0x149   : > { %1839 = vrot.lane.b32.xlu1 %v3270_v8, %s3350_s25  ;;  %1918 = vrot.lane.b32.xlu0 %v3272_v58, %s3349_s16  ;;  %v2138_v8 = vmul.f32 %v2129_v18, %v3901_v34  ;;  %v2218_v58 = vmul.f32 %v2209_v52, %v3910_v44 }
 0x14b   : > { %v4395_v15 = vpop.permute.xlu1 %2450  ;;  %v4397_v42 = vpop.permute.xlu0 %2448  ;;  %v3281_v10 = vpack.c.bf16 %v2139_v38, %v2138_v8  ;;  %v3283_v19 = vpack.c.bf16 %v2218_v58, %v2217_v55  ;;  %v2373_v55 = vsel %vm476_vm7, %v4364_v14, %v4362_v49 }
 0x14d   : > { %1997 = vrot.lane.b32.xlu1 %v3274_v17, %s3348_s15  ;;  %1920 = vrot.lane.b32.xlu0 %v3273_v56, %s3349_s16 }
 0x14f   : > { %v385_v35 = vpop.permute.xlu1 %384  ;;  %v383_v22 = vpop.permute.xlu0 %382 }
 0x150   : > { %v389_v53 = vrot.slane %v385_v35, 4  ;;  %v388_v43 = vrot.slane %v383_v22, 4 }
 0x151   : > { %2078 = vrot.lane.b32.xlu1 %v3277_v33, %s3347_s14  ;;  %1999 = vrot.lane.b32.xlu0 %v3275_v32, %s3348_s15  ;;  %v2220_v32 = vmul.f32 %v2211_v47, %v3944_v11  ;;  %v2290_v33 = vsel %vm559_vm6, %v4319_v48, %v4317_v25 }
 0x152   : > { %v392_v46 = vsel %vm391_vm10, %v388_v43, %v389_v53  ;;  %v2299_v18 = vmul.f32 %v2290_v33, %v3910_v44 }
 0x153   : > { %v469_v3 = vpop.permute.xlu1 %468  ;;  %v467_v57 = vpop.permute.xlu0 %466  ;;  %v394_v28 = vsel %vm393_vm8, %v383_v22, %v392_v46  ;;  %v2301_v46 = vmul.f32 %v2292_v40, %v3944_v11  ;;  %v4523_v40 = vld [vmem:[%s4662_s2] sm:$0xff] }
 0x154   : > { %v473_v62 = vrot.slane %v469_v3, 4  ;;  %v472_v0 = vrot.slane %v467_v57, 4 }
 0x155   : > { %2001 = vrot.lane.b32.xlu1 %v3276_v30, %s3348_s15  ;;  %2080 = vrot.lane.b32.xlu0 %v3278_v9, %s3347_s14  ;;  %v3282_v30 = vpack.c.bf16 %v2140_v2, %v2140_v2  ;;  %v2371_v9 = vsel %vm476_vm7, %v4355_v21, %v4353_v7  ;;  %v2382_v2 = vmul.f32 %v2373_v55, %v3944_v11 }
 0x156   : > { %v475_v39 = vsel %vm391_vm10, %v472_v0, %v473_v62  ;;  %v2380_v8 = vmul.f32 %v2371_v9, %v3910_v44 }
 0x157   : > { %v471_v29 = vpop.permute.xlu1 %470  ;;  %v387_v23 = vpop.permute.xlu0 %386  ;;  %v477_v20 = vsel %vm476_vm7, %v467_v57, %v475_v39 }
 0x158   : > { %v474_v56 = vrot.slane %v471_v29, 4  ;;  %v390_v27 = vrot.slane %v387_v23, 4  ;;  %v3150_v17 = vcombine.high %v394_v28, %v477_v20  ;;  %v3149_v61 = vcombine.low %v394_v28, %v477_v20 }
 0x159   : > { %2159 = vrot.lane.b32.xlu1 %v3280_v1, %s3346_s13  ;;  %2082 = vrot.lane.b32.xlu0 %v3279_v5, %s3347_s14  ;;  %v2379_v5 = vmul.f32 %v4355_v21, %v3907_v36  ;;  %v2372_v1 = vsel %vm476_vm7, %v4353_v7, %v4364_v14  ;;  %v2302_v20 = vmul.f32 0.0, %v4333_v63  ;;  %v2452_v14 = vsel %vm393_vm8, %v4383_v45, %v4381_v50 }
 0x15a   : > { %2854 = vmatprep.subr.bf16.mxu0 %v3150_v17  ;;  %v395_v59 = vsel %vm391_vm10, %v389_v53, %v390_v27  ;;  %v478_v54 = vsel %vm391_vm10, %v473_v62, %v474_v56  ;;  %v2221_v53 = vmul.f32 0.0, %v4299_v6  ;;  %v3284_v6 = vpack.c.bf16 %v2220_v32, %v2219_v13 }
 0x15b   : > { %v552_v51 = vpop.permute.xlu1 %551  ;;  %2855 = vmatpush1.bf16.msra.mxu0 %v3149_v61  ;;  %v550_v24 = vpop.permute.xlu0 %549  ;;  %v396_v16 = vsel %vm393_vm8, %v385_v35, %v395_v59  ;;  %v479_v26 = vsel %vm476_vm7, %v469_v3, %v478_v54  ;;  %v2291_v35 = vsel %vm559_vm6, %v4317_v25, %v4335_v4  ;;  %v3286_v4 = vpack.c.bf16 %v2299_v18, %v2298_v60 }
 0x15c   : > { %v556_v22 = vrot.slane %v552_v51, 4  ;;  %v555_v43 = vrot.slane %v550_v24, 4  ;;  %v3152_v37 = vcombine.high %v396_v16, %v479_v26  ;;  %v3151_v41 = vcombine.low %v396_v16, %v479_v26 }
 0x15d   : > { %2240 = vrot.lane.b32.xlu1 %v3283_v19, %s3345_s12  ;;  %2161 = vrot.lane.b32.xlu0 %v3281_v10, %s3346_s13  ;;  %v3285_v0 = vpack.c.bf16 %v2221_v53, %v2221_v53  ;;  %v2300_v25 = vmul.f32 %v2291_v35, %v3901_v34  ;;  %v3289_v7 = vpack.c.bf16 %v2380_v8, %v2379_v5  ;;  %v2464_v18 = vmul.f32 0.0, %v4395_v15 }
 0x15e   : > { %2895 = vmatprep.subr.bf16.mxu1 %v3152_v37  ;;  %v558_v3 = vsel %vm391_vm10, %v555_v43, %v556_v22  ;;  %v2381_v61 = vmul.f32 %v2372_v1, %v3901_v34  ;;  %v2460_v16 = vmul.f32 %v4383_v45, %v3907_v36  ;;  %v2461_v26 = vmul.f32 %v2452_v14, %v3910_v44 }
 0x15f   : > { %v635_v52 = vpop.permute.xlu1 %634  ;;  %2896 = vmatpush1.bf16.msra.mxu1 %v3151_v41  ;;  %v633_v48 = vpop.permute.xlu0 %632  ;;  %v560_v58 = vsel %vm559_vm6, %v550_v24, %v558_v3  ;;  %v3287_v56 = vpack.c.bf16 %v2301_v46, %v2300_v25  ;;  %v2383_v24 = vmul.f32 0.0, %v4362_v49  ;;  %v2453_v43 = vsel %vm393_vm8, %v4381_v50, %v4397_v42 }
 0x160   : > { %v639_v57 = vrot.slane %v635_v52, 4  ;;  %v638_v62 = vrot.slane %v633_v48, 4  ;;  %v2454_v49 = vsel %vm393_vm8, %v4397_v42, %v4395_v15  ;;  %v3292_v60 = vpack.c.bf16 %v2461_v26, %v2460_v16 }
 0x161   : > { %2163 = vrot.lane.b32.xlu1 %v3282_v30, %s3346_s13  ;;  %2242 = vrot.lane.b32.xlu0 %v3284_v6, %s3345_s12  ;;  %v3291_v53 = vpack.c.bf16 %v2383_v24, %v2383_v24  ;;  %v2462_v50 = vmul.f32 %v2453_v43, %v3901_v34  ;;  %v2463_v35 = vmul.f32 %v2454_v49, %v3944_v11 }
 0x162   : > { %v641_v38 = vsel %vm391_vm10, %v638_v62, %v639_v57  ;;  %v3148_v15 = vcombine.high %v4523_v40, %v4523_v40 }
 0x163   : > { %v643_v39 = vsel %vm4670_vm5, %v633_v48, %v641_v38  ;;  %v637_v12 = vpop.permute.xlu1 %636  ;;  %v554_v47 = vpop.permute.xlu0 %553  ;;  %v3293_v25 = vpack.c.bf16 %v2463_v35, %v2462_v50 }
 0x164   : > { %v3153_v29 = vcombine.low %v560_v58, %v643_v39  ;;  %v3154_v21 = vcombine.high %v560_v58, %v643_v39  ;;  %v640_v23 = vrot.slane %v637_v12, 4  ;;  %v557_v28 = vrot.slane %v554_v47, 4  ;;  %v2555_v12 = vld [vmem:[%s4663_s3] sm:$0xff] }
 0x165   : > { %2321 = vrot.lane.b32.xlu1 %v3286_v4, %s3344_s11  ;;  %2244 = vrot.lane.b32.xlu0 %v3285_v0, %s3345_s12  ;;  %v3359_v39 = vmov 0  }
 0x166   : > { %v644_v27 = vsel %vm391_vm10, %v639_v57, %v640_v23  ;;  %v561_v17 = vsel %vm391_vm10, %v556_v22, %v557_v28  ;;  %2856 = vmatprep.subr.bf16.mxu0 %v3154_v21  ;;  %v3288_v22 = vpack.c.bf16 %v2302_v20, %v2302_v20  ;;  %v3294_v57 = vpack.c.bf16 %v2464_v18, %v2464_v18 }
 0x167   : > { %v718_v63 = vpop.permute.xlu1 %717  ;;  %2857 = vmatpush1.bf16.msra.mxu0 %v3153_v29  ;;  %v716_v10 = vpop.permute.xlu0 %715  ;;  %v562_v19 = vsel %vm559_vm6, %v552_v51, %v561_v17  ;;  %v645_v13 = vsel %vm4670_vm5, %v635_v52, %v644_v27  ;;  %v3290_v51 = vpack.c.bf16 %v2382_v2, %v2381_v61  ;;  %vm2837_vm5 = vcmask 719872   ;;  %3323 = vset.pattern.permute.xlu0 %v3359_v39  ;;  %v3329_v39 = vld [vmem:[%s3890_s5 + $0x8] sm:$0xff] }
 0x168   : > { %v722_v59 = vrot.slane %v718_v63, 4  ;;  %v721_v54 = vrot.slane %v716_v10, 4  ;;  %v3156_v32 = vcombine.high %v562_v19, %v645_v13  ;;  %v3155_v33 = vcombine.low %v562_v19, %v645_v13  ;;  %3206 = vmatprep.mubr.msk.bf16.mxu0 %vm2837_vm5, %v3148_v15  ;;  %3208 = vmatprep.mubr.msk.bf16.mxu1 %vm2837_vm5, %v3148_v15 }
 0x169   : > { %2402 = vrot.lane.b32.xlu1 %v3289_v7, %s3343_s10  ;;  %2323 = vrot.lane.b32.xlu0 %v3287_v56, %s3344_s11  ;;  %vm4671_vm5 = vcmask 982016  }
 0x16a   : > { %2897 = vmatprep.subr.bf16.mxu1 %v3156_v32  ;;  %v724_v44 = vsel %vm391_vm10, %v721_v54, %v722_v59 }
 0x16b   : > { %v801_v37 = vpop.permute.xlu1 %800  ;;  %2898 = vmatpush1.bf16.msra.mxu1 %v3155_v33  ;;  %v799_v36 = vpop.permute.xlu0 %798  ;;  %v726_v30 = vsel %vm683_vm4, %v716_v10, %v724_v44 }
 0x16c   : > { %v805_v45 = vrot.slane %v801_v37, 4  ;;  %v804_v41 = vrot.slane %v799_v36, 4 }
 0x16d   : > { %2325 = vrot.lane.b32.xlu1 %v3288_v22, %s3344_s11  ;;  %2404 = vrot.lane.b32.xlu0 %v3290_v51, %s3343_s10 }
 0x16e   : > { %v807_v42 = vsel %vm391_vm10, %v804_v41, %v805_v45 }
 0x16f   : > { %v809_v6 = vsel %vm600_vm3, %v799_v36, %v807_v42  ;;  %v803_v9 = vpop.permute.xlu1 %802  ;;  %v720_v52 = vpop.permute.xlu0 %719 }
 0x170   : > { %v3157_v34 = vcombine.low %v726_v30, %v809_v6  ;;  %v3158_v48 = vcombine.high %v726_v30, %v809_v6  ;;  %v806_v11 = vrot.slane %v803_v9, 4  ;;  %v723_v3 = vrot.slane %v720_v52, 4 }
 0x171   : > { %2483 = vrot.lane.b32.xlu1 %v3292_v60, %s3342_s9  ;;  %2406 = vrot.lane.b32.xlu0 %v3291_v53, %s3343_s10 }
 0x172   : > { %v810_v62 = vsel %vm391_vm10, %v805_v45, %v806_v11  ;;  %v727_v0 = vsel %vm391_vm10, %v722_v59, %v723_v3  ;;  %2858 = vmatprep.subr.bf16.mxu0 %v3158_v48 }
 0x173   : > { %v884_v46 = vpop.permute.xlu1 %883  ;;  %2859 = vmatpush1.bf16.msra.mxu0 %v3157_v34  ;;  %v882_v4 = vpop.permute.xlu0 %881  ;;  %v728_v5 = vsel %vm683_vm4, %v718_v63, %v727_v0  ;;  %v811_v8 = vsel %vm600_vm3, %v801_v37, %v810_v62  ;;  %v3327_v0 = vld [vmem:[%s4661_s1 + $0x28] sm:$0xff] }
 0x174   : > { %v888_v38 = vrot.slane %v884_v46, 4  ;;  %v887_v1 = vrot.slane %v882_v4, 4  ;;  %v3160_v55 = vcombine.high %v728_v5, %v811_v8  ;;  %v3159_v58 = vcombine.low %v728_v5, %v811_v8 }
 0x175   : > { %2487 = vrot.lane.b32.xlu1 %v3294_v57, %s3342_s9  ;;  %2485 = vrot.lane.b32.xlu0 %v3293_v25, %s3342_s9  ;;  %v3326_v57 = vld [vmem:[%s4661_s1 + $0x20] sm:$0xff]  ;;  %v1408_v25 = vrot.slane %v3327_v0, %v3504_v31 }
 0x176   : > { %2899 = vmatprep.subr.bf16.mxu1 %v3160_v55  ;;  %v890_v21 = vsel %vm391_vm10, %v887_v1, %v888_v38  ;;  %v1404_v62 = vrot.slane %v3326_v57, %v3504_v31  ;;  %v3328_v55 = vld [vmem:[%s3890_s5] sm:$0xff] }
 0x177   : > { %v967_v47 = vpop.permute.xlu1 %966  ;;  %2900 = vmatpush1.bf16.msra.mxu1 %v3159_v58  ;;  %v965_v29 = vpop.permute.xlu0 %964  ;;  %v892_v56 = vsel %vm517_vm2, %v882_v4, %v890_v21 }
 0x178   : > { %v971_v23 = vrot.slane %v967_v47, 4  ;;  %v970_v28 = vrot.slane %v965_v29, 4  ;;  %v1417_v58 = vmul.f32 %v3328_v55, %v1404_v62 }
 0x179   : > { %2558 = vperm.xlu0 %3323, %v2555_v12   ;;  %v1418_v12 = vmul.f32 %v3329_v39, %v1408_v25 }
 0x17a   : > { %v973_v20 = vsel %vm391_vm10, %v970_v28, %v971_v23  ;;  %v3330_v28 = vld [vmem:[%s4661_s1 + $0x30] sm:$0xff] }
 0x17b   : > { %v975_v7 = vsel %vm434_vm1, %v965_v29, %v973_v20  ;;  %v969_v14 = vpop.permute.xlu1 %968  ;;  %v886_v27 = vpop.permute.xlu0 %885  ;;  %v1412_v20 = vrot.slane %v3330_v28, %v3504_v31 }
 0x17c   : > { %v3161_v17 = vcombine.low %v892_v56, %v975_v7  ;;  %v3162_v61 = vcombine.high %v892_v56, %v975_v7  ;;  %v972_v2 = vrot.slane %v969_v14, 4  ;;  %v889_v63 = vrot.slane %v886_v27, 4  ;;  %v3331_v56 = vld [vmem:[%s4661_s1 + $0x38] sm:$0xff] }
 0x17d   : > { %v1416_v7 = vrot.slane %v3331_v56, %v3504_v31 }
 0x17e   : > { %v976_v10 = vsel %vm391_vm10, %v971_v23, %v972_v2  ;;  %v893_v19 = vsel %vm391_vm10, %v888_v38, %v889_v63  ;;  %2860 = vmatprep.subr.bf16.mxu0 %v3162_v61 }
 0x17f   : > { %v1050_v13 = vpop.permute.xlu1 %1049  ;;  %2861 = vmatpush1.bf16.msra.mxu0 %v3161_v17  ;;  %v1048_v59 = vpop.permute.xlu0 %1047  ;;  %v894_v54 = vsel %vm517_vm2, %v884_v46, %v893_v19  ;;  %v977_v32 = vsel %vm434_vm1, %v967_v47, %v976_v10  ;;  %v3254_v10 = vpack.c.bf16 %v1418_v12, %v1417_v58 }
 0x180   : > { %v1054_v33 = vrot.slane %v1050_v13, 4  ;;  %v1053_v24 = vrot.slane %v1048_v59, 4  ;;  %v3164_v16 = vcombine.high %v894_v54, %v977_v32  ;;  %v3163_v26 = vcombine.low %v894_v54, %v977_v32  ;;  %v3332_v32 = vld [vmem:[%s3890_s5 + $0x10] sm:$0xff] }
 0x181   : > { %v1419_v31 = vmul.f32 %v3332_v32, %v1412_v20 }
 0x182   : > { %2901 = vmatprep.subr.bf16.mxu1 %v3164_v16  ;;  %v1056_v43 = vsel %vm391_vm10, %v1053_v24, %v1054_v33 }
 0x183   : > { %v1133_v22 = vpop.permute.xlu1 %1132  ;;  %2902 = vmatpush1.bf16.msra.mxu1 %v3163_v26  ;;  %v1131_v51 = vpop.permute.xlu0 %1130  ;;  %v1058_v44 = vsel %vm350_vm0, %v1048_v59, %v1056_v43 }
 0x184   : > { %v1137_v49 = vrot.slane %v1133_v22, 4  ;;  %v1136_v37 = vrot.slane %v1131_v51, 4 }
 0x186   : > { %v1139_v36 = vsel %vm391_vm10, %v1136_v37, %v1137_v49 }
 0x187   : > { %v1141_v45 = vsel %vm1140_vm9, %v1131_v51, %v1139_v36  ;;  %v1135_v41 = vpop.permute.xlu1 %1134  ;;  %v1052_v53 = vpop.permute.xlu0 %1051 }
 0x188   : > { %v3165_v60 = vcombine.low %v1058_v44, %v1141_v45  ;;  %v3166_v18 = vcombine.high %v1058_v44, %v1141_v45  ;;  %v1138_v50 = vrot.slane %v1135_v41, 4  ;;  %v1055_v35 = vrot.slane %v1052_v53, 4 }
 0x18a   : > { %v1142_v42 = vsel %vm391_vm10, %v1137_v49, %v1138_v50  ;;  %v1059_v30 = vsel %vm391_vm10, %v1054_v33, %v1055_v35  ;;  %2862 = vmatprep.subr.bf16.mxu0 %v3166_v18  ;;  %v3333_v33 = vld [vmem:[%s3890_s5 + $0x18] sm:$0xff] }
 0x18b   : > { %v1216_v6 = vpop.permute.xlu1 %1215  ;;  %2863 = vmatpush1.bf16.msra.mxu0 %v3165_v60  ;;  %v1214_v9 = vpop.permute.xlu0 %1213  ;;  %v1060_v52 = vsel %vm350_vm0, %v1050_v13, %v1059_v30  ;;  %v1143_v15 = vsel %vm1140_vm9, %v1133_v22, %v1142_v42  ;;  %v1420_v24 = vmul.f32 %v3333_v33, %v1416_v7  ;;  %vm4672_vm9 = vcmask 973824  }
 0x18c   : > { %v1220_v34 = vrot.slane %v1216_v6, 4  ;;  %v1219_v48 = vrot.slane %v1214_v9, 4  ;;  %v3168_v11 = vcombine.high %v1060_v52, %v1143_v15  ;;  %v3167_v3 = vcombine.low %v1060_v52, %v1143_v15 }
 0x18d   : > { %v3255_v53 = vpack.c.bf16 %v1420_v24, %v1419_v31 }
 0x18e   : > { %2903 = vmatprep.subr.bf16.mxu1 %v3168_v11  ;;  %v1222_v5 = vsel %vm391_vm10, %v1219_v48, %v1220_v34 }
 0x18f   : > { %v1299_v46 = vpop.permute.xlu1 %1298  ;;  %2904 = vmatpush1.bf16.msra.mxu1 %v3167_v3  ;;  %v1297_v4 = vpop.permute.xlu0 %1296  ;;  %v1224_v47 = vsel %vm1223_vm15, %v1214_v9, %v1222_v5 }
 0x190   : > { %v1303_v8 = vrot.slane %v1299_v46, 4  ;;  %v1302_v38 = vrot.slane %v1297_v4, 4 }
 0x192   : > { %v1305_v1 = vsel %vm391_vm10, %v1302_v38, %v1303_v8 }
 0x193   : > { %v1307_v29 = vsel %vm1306_vm14, %v1297_v4, %v1305_v1  ;;  %v1301_v21 = vpop.permute.xlu1 %1300  ;;  %v1218_v23 = vpop.permute.xlu0 %1217 }
 0x194   : > { %v3169_v14 = vcombine.low %v1224_v47, %v1307_v29  ;;  %v3170_v27 = vcombine.high %v1224_v47, %v1307_v29  ;;  %v1304_v17 = vrot.slane %v1301_v21, 4  ;;  %v1221_v61 = vrot.slane %v1218_v23, 4 }
 0x196   : > { %v1308_v2 = vsel %vm391_vm10, %v1303_v8, %v1304_v17  ;;  %v1225_v63 = vsel %vm391_vm10, %v1220_v34, %v1221_v61  ;;  %2864 = vmatprep.subr.bf16.mxu0 %v3170_v27 }
 0x197   : > { %v1382_v19 = vpop.permute.xlu1 %1381  ;;  %2865 = vmatpush1.bf16.msra.mxu0 %v3169_v14  ;;  %v1380_v13 = vpop.permute.xlu0 %1379  ;;  %v1226_v59 = vsel %vm1223_vm15, %v1216_v6, %v1225_v63  ;;  %v1309_v54 = vsel %vm1306_vm14, %v1299_v46, %v1308_v2 }
 0x198   : > { %v1386_v16 = vrot.slane %v1382_v19, 4  ;;  %v1385_v26 = vrot.slane %v1380_v13, 4  ;;  %v3172_v22 = vcombine.high %v1226_v59, %v1309_v54  ;;  %v3171_v51 = vcombine.low %v1226_v59, %v1309_v54 }
 0x19a   : > { %v1388_v43 = vsel %vm391_vm10, %v1385_v26, %v1386_v16  ;;  %2905 = vmatprep.subr.bf16.mxu1 %v3172_v22 }
 0x19b   : > { %v1390_v49 = vsel %vm1389_vm13, %v1380_v13, %v1388_v43  ;;  %v1505_v37 = vpop.permute.xlu1 %1504  ;;  %2906 = vmatpush1.bf16.msra.mxu1 %v3171_v51  ;;  %v1384_v36 = vpop.permute.xlu0 %1383 }
 0x19c   : > { %v3173_v44 = vcombine.low %v1390_v49, %v3254_v10  ;;  %v3174_v45 = vcombine.high %v1390_v49, %v3254_v10  ;;  %v1387_v41 = vrot.slane %v1384_v36, 4  ;;  %v1510_v9 = vrot.slane %v1505_v37, 4 }
 0x19e   : > { %v1391_v60 = vsel %vm391_vm10, %v1386_v16, %v1387_v41  ;;  %2866 = vmatprep.subr.bf16.mxu0 %v3174_v45 }
 0x19f   : > { %v1588_v18 = vpop.permute.xlu1 %1587  ;;  %2867 = vmatpush1.bf16.msra.mxu0 %v3173_v44  ;;  %v1507_v50 = vpop.permute.xlu0 %1506  ;;  %v1392_v35 = vsel %vm1389_vm13, %v1382_v19, %v1391_v60 }
 0x1a0   : > { %v1511_v42 = vrot.slane %v1507_v50, 4  ;;  %v3176_v30 = vcombine.high %v1392_v35, %v3255_v53  ;;  %v3175_v6 = vcombine.low %v1392_v35, %v3255_v53  ;;  %v1593_v34 = vrot.slane %v1588_v18, 4 }
 0x1a2   : > { %2907 = vmatprep.subr.bf16.mxu1 %v3176_v30  ;;  %v1513_v48 = vsel %vm391_vm10, %v1510_v9, %v1511_v42 }
 0x1a3   : > { %v1509_v52 = vpop.permute.xlu1 %1508  ;;  %2908 = vmatpush1.bf16.msra.mxu1 %v3175_v6  ;;  %v1590_v15 = vpop.permute.xlu0 %1589  ;;  %v1515_v25 = vsel %vm1347_vm12, %v1505_v37, %v1513_v48 }
 0x1a4   : > { %v1512_v11 = vrot.slane %v1509_v52, 4  ;;  %v1594_v3 = vrot.slane %v1590_v15, 4 }
 0x1a6   : > { %v1596_v57 = vsel %vm391_vm10, %v1593_v34, %v1594_v3  ;;  %v1516_v4 = vsel %vm391_vm10, %v1511_v42, %v1512_v11 }
 0x1a7   : > { %v1671_v62 = vpop.permute.xlu1 %1670  ;;  %v1592_v0 = vpop.permute.xlu0 %1591  ;;  %v1598_v46 = vsel %vm1264_vm11, %v1588_v18, %v1596_v57  ;;  %v1517_v39 = vsel %vm1347_vm12, %v1507_v50, %v1516_v4  ;;  %vm4674_vm12 = vmmov %vm4672_vm9 }
 0x1a8   : > { %v1595_v5 = vrot.slane %v1592_v0, 4  ;;  %v3178_v8 = vcombine.high %v1515_v25, %v1598_v46  ;;  %v3177_v38 = vcombine.low %v1515_v25, %v1598_v46  ;;  %v1676_v23 = vrot.slane %v1671_v62, 4 }
 0x1aa   : > { %v1599_v1 = vsel %vm391_vm10, %v1594_v3, %v1595_v5  ;;  %2868 = vmatprep.subr.bf16.mxu0 %v3178_v8 }
 0x1ab   : > { %v1754_v55 = vpop.permute.xlu1 %1753  ;;  %2869 = vmatpush1.bf16.msra.mxu0 %v3177_v38  ;;  %v1673_v58 = vpop.permute.xlu0 %1672  ;;  %v1600_v12 = vsel %vm1264_vm11, %v1590_v15, %v1599_v1  ;;  %vm4673_vm11 = vmmov %vm4671_vm5 }
 0x1ac   : > { %v1677_v47 = vrot.slane %v1673_v58, 4  ;;  %v3180_v29 = vcombine.high %v1517_v39, %v1600_v12  ;;  %v3179_v21 = vcombine.low %v1517_v39, %v1600_v12  ;;  %v1759_v56 = vrot.slane %v1754_v55, 4 }
 0x1ae   : > { %2909 = vmatprep.subr.bf16.mxu1 %v3180_v29  ;;  %v1679_v7 = vsel %vm391_vm10, %v1676_v23, %v1677_v47 }
 0x1af   : > { %v1675_v28 = vpop.permute.xlu1 %1674  ;;  %2910 = vmatpush1.bf16.msra.mxu1 %v3179_v21  ;;  %v1756_v20 = vpop.permute.xlu0 %1755  ;;  %v1681_v63 = vsel %vm4671_vm5, %v1671_v62, %v1679_v7 }
 0x1b0   : > { %v1678_v14 = vrot.slane %v1675_v28, 4  ;;  %v1760_v27 = vrot.slane %v1756_v20, 4 }
 0x1b2   : > { %v1762_v17 = vsel %vm391_vm10, %v1759_v56, %v1760_v27  ;;  %v1682_v19 = vsel %vm391_vm10, %v1677_v47, %v1678_v14 }
 0x1b3   : > { %v1836_v61 = vpop.permute.xlu1 %1835  ;;  %v1758_v2 = vpop.permute.xlu0 %1757  ;;  %v1764_v10 = vsel %vm4672_vm9, %v1754_v55, %v1762_v17  ;;  %v1683_v24 = vsel %vm4673_vm11, %v1673_v58, %v1682_v19 }
 0x1b4   : > { %v1761_v13 = vrot.slane %v1758_v2, 4  ;;  %v3182_v59 = vcombine.high %v1681_v63, %v1764_v10  ;;  %v3181_v54 = vcombine.low %v1681_v63, %v1764_v10  ;;  %v1841_v43 = vrot.slane %v1836_v61, 4 }
 0x1b6   : > { %v1765_v32 = vsel %vm391_vm10, %v1760_v27, %v1761_v13  ;;  %2870 = vmatprep.subr.bf16.mxu0 %v3182_v59 }
 0x1b7   : > { %v1917_v31 = vpop.permute.xlu1 %1916  ;;  %2871 = vmatpush1.bf16.msra.mxu0 %v3181_v54  ;;  %v1838_v33 = vpop.permute.xlu0 %1837  ;;  %v1766_v16 = vsel %vm4674_vm12, %v1756_v20, %v1765_v32 }
 0x1b8   : > { %v1842_v26 = vrot.slane %v1838_v33, 4  ;;  %v3184_v22 = vcombine.high %v1683_v24, %v1766_v16  ;;  %v3183_v51 = vcombine.low %v1683_v24, %v1766_v16  ;;  %v1922_v36 = vrot.slane %v1917_v31, 4 }
 0x1ba   : > { %2911 = vmatprep.subr.bf16.mxu1 %v3184_v22  ;;  %v1844_v44 = vsel %vm391_vm10, %v1841_v43, %v1842_v26 }
 0x1bb   : > { %v1840_v49 = vpop.permute.xlu1 %1839  ;;  %2912 = vmatpush1.bf16.msra.mxu1 %v3183_v51  ;;  %v1919_v37 = vpop.permute.xlu0 %1918  ;;  %v1845_v50 = vsel %vm393_vm8, %v1836_v61, %v1844_v44 }
 0x1bc   : > { %v1843_v45 = vrot.slane %v1840_v49, 4  ;;  %v1923_v41 = vrot.slane %v1919_v37, 4 }
 0x1be   : > { %v1925_v53 = vsel %vm391_vm10, %v1922_v36, %v1923_v41  ;;  %v1846_v42 = vsel %vm391_vm10, %v1842_v26, %v1843_v45 }
 0x1bf   : > { %v1998_v60 = vpop.permute.xlu1 %1997  ;;  %v1921_v18 = vpop.permute.xlu0 %1920  ;;  %v1926_v35 = vsel %vm476_vm7, %v1917_v31, %v1925_v53  ;;  %v1847_v48 = vsel %vm393_vm8, %v1838_v33, %v1846_v42 }
 0x1c0   : > { %v1924_v30 = vrot.slane %v1921_v18, 4  ;;  %v3186_v6 = vcombine.high %v1845_v50, %v1926_v35  ;;  %v3185_v9 = vcombine.low %v1845_v50, %v1926_v35  ;;  %v2003_v0 = vrot.slane %v1998_v60, 4 }
 0x1c2   : > { %v1927_v52 = vsel %vm391_vm10, %v1923_v41, %v1924_v30  ;;  %2872 = vmatprep.subr.bf16.mxu0 %v3186_v6 }
 0x1c3   : > { %v2079_v15 = vpop.permute.xlu1 %2078  ;;  %2873 = vmatpush1.bf16.msra.mxu0 %v3185_v9  ;;  %v2000_v34 = vpop.permute.xlu0 %1999  ;;  %v1928_v11 = vsel %vm476_vm7, %v1919_v37, %v1927_v52  ;;  %vm4675_vm7 = vcmask 531456  }
 0x1c4   : > { %v2004_v3 = vrot.slane %v2000_v34, 4  ;;  %v3188_v57 = vcombine.high %v1847_v48, %v1928_v11  ;;  %v3187_v62 = vcombine.low %v1847_v48, %v1928_v11  ;;  %v2084_v4 = vrot.slane %v2079_v15, 4  ;;  %vm4676_vm8 = vmmov %vm4675_vm7 }
 0x1c6   : > { %2913 = vmatprep.subr.bf16.mxu1 %v3188_v57  ;;  %v2006_v5 = vsel %vm391_vm10, %v2003_v0, %v2004_v3 }
 0x1c7   : > { %v2002_v25 = vpop.permute.xlu1 %2001  ;;  %2914 = vmatpush1.bf16.msra.mxu1 %v3187_v62  ;;  %v2081_v46 = vpop.permute.xlu0 %2080  ;;  %v2007_v39 = vsel %vm559_vm6, %v1998_v60, %v2006_v5 }
 0x1c8   : > { %v2005_v8 = vrot.slane %v2002_v25, 4  ;;  %v2085_v38 = vrot.slane %v2081_v46, 4 }
 0x1ca   : > { %v2087_v1 = vsel %vm391_vm10, %v2084_v4, %v2085_v38  ;;  %v2008_v47 = vsel %vm391_vm10, %v2004_v3, %v2005_v8 }
 0x1cb   : > { %v2160_v55 = vpop.permute.xlu1 %2159  ;;  %v2083_v58 = vpop.permute.xlu0 %2082  ;;  %v2088_v12 = vsel %vm4675_vm7, %v2079_v15, %v2087_v1  ;;  %v2009_v7 = vsel %vm559_vm6, %v2000_v34, %v2008_v47 }
 0x1cc   : > { %v2086_v29 = vrot.slane %v2083_v58, 4  ;;  %v3190_v21 = vcombine.high %v2007_v39, %v2088_v12  ;;  %v3189_v23 = vcombine.low %v2007_v39, %v2088_v12  ;;  %v2165_v2 = vrot.slane %v2160_v55, 4 }
 0x1ce   : > { %v2089_v28 = vsel %vm391_vm10, %v2085_v38, %v2086_v29  ;;  %2874 = vmatprep.subr.bf16.mxu0 %v3190_v21 }
 0x1cf   : > { %v2241_v20 = vpop.permute.xlu1 %2240  ;;  %2875 = vmatpush1.bf16.msra.mxu0 %v3189_v23  ;;  %v2162_v56 = vpop.permute.xlu0 %2161  ;;  %v2090_v14 = vsel %vm4676_vm8, %v2081_v46, %v2089_v28 }
 0x1d0   : > { %v2166_v27 = vrot.slane %v2162_v56, 4  ;;  %v3192_v17 = vcombine.high %v2009_v7, %v2090_v14  ;;  %v3191_v61 = vcombine.low %v2009_v7, %v2090_v14  ;;  %v2246_v19 = vrot.slane %v2241_v20, 4 }
 0x1d2   : > { %2915 = vmatprep.subr.bf16.mxu1 %v3192_v17  ;;  %v2168_v13 = vsel %vm391_vm10, %v2165_v2, %v2166_v27 }
 0x1d3   : > { %v2164_v63 = vpop.permute.xlu1 %2163  ;;  %2916 = vmatpush1.bf16.msra.mxu1 %v3191_v61  ;;  %v2243_v10 = vpop.permute.xlu0 %2242  ;;  %v2169_v24 = vsel %vm683_vm4, %v2160_v55, %v2168_v13 }
 0x1d4   : > { %v2167_v59 = vrot.slane %v2164_v63, 4  ;;  %v2247_v54 = vrot.slane %v2243_v10, 4 }
 0x1d6   : > { %v2249_v32 = vsel %vm391_vm10, %v2246_v19, %v2247_v54  ;;  %v2170_v26 = vsel %vm391_vm10, %v2166_v27, %v2167_v59  ;;  %v3147_v27 = vcombine.low %v4523_v40, %v4523_v40 }
 0x1d7   : > { %v2322_v31 = vpop.permute.xlu1 %2321  ;;  %v2245_v33 = vpop.permute.xlu0 %2244  ;;  %v2250_v16 = vsel %vm600_vm3, %v2241_v20, %v2249_v32  ;;  %v2171_v44 = vsel %vm683_vm4, %v2162_v56, %v2170_v26 }
 0x1d8   : > { %v2248_v22 = vrot.slane %v2245_v33, 4  ;;  %v3194_v51 = vcombine.high %v2169_v24, %v2250_v16  ;;  %v3193_v43 = vcombine.low %v2169_v24, %v2250_v16  ;;  %v2327_v18 = vrot.slane %v2322_v31, 4 }
 0x1da   : > { %v2251_v49 = vsel %vm391_vm10, %v2247_v54, %v2248_v22  ;;  %2876 = vmatprep.subr.bf16.mxu0 %v3194_v51 }
 0x1db   : > { %v2403_v37 = vpop.permute.xlu1 %2402  ;;  %2877 = vmatpush1.bf16.msra.mxu0 %v3193_v43  ;;  %v2324_v36 = vpop.permute.xlu0 %2323  ;;  %v2252_v45 = vsel %vm600_vm3, %v2243_v10, %v2251_v49 }
 0x1dc   : > { %v2328_v41 = vrot.slane %v2324_v36, 4  ;;  %v3196_v53 = vcombine.high %v2171_v44, %v2252_v45  ;;  %v3195_v60 = vcombine.low %v2171_v44, %v2252_v45  ;;  %v2408_v42 = vrot.slane %v2403_v37, 4 }
 0x1de   : > { %2917 = vmatprep.subr.bf16.mxu1 %v3196_v53  ;;  %v2330_v30 = vsel %vm391_vm10, %v2327_v18, %v2328_v41 }
 0x1df   : > { %v2326_v50 = vpop.permute.xlu1 %2325  ;;  %2918 = vmatpush1.bf16.msra.mxu1 %v3195_v60  ;;  %v2405_v35 = vpop.permute.xlu0 %2404  ;;  %v2331_v48 = vsel %vm517_vm2, %v2322_v31, %v2330_v30 }
 0x1e0   : > { %v2329_v6 = vrot.slane %v2326_v50, 4  ;;  %v2409_v9 = vrot.slane %v2405_v35, 4 }
 0x1e2   : > { %v2411_v52 = vsel %vm391_vm10, %v2408_v42, %v2409_v9  ;;  %v2332_v3 = vsel %vm391_vm10, %v2328_v41, %v2329_v6 }
 0x1e3   : > { %v2484_v15 = vpop.permute.xlu1 %2483  ;;  %v2407_v34 = vpop.permute.xlu0 %2406  ;;  %v2412_v11 = vsel %vm434_vm1, %v2403_v37, %v2411_v52  ;;  %v2333_v8 = vsel %vm517_vm2, %v2324_v36, %v2332_v3 }
 0x1e4   : > { %v2410_v57 = vrot.slane %v2407_v34, 4  ;;  %v3198_v62 = vcombine.high %v2331_v48, %v2412_v11  ;;  %v3197_v0 = vcombine.low %v2331_v48, %v2412_v11  ;;  %v2489_v46 = vrot.slane %v2484_v15, 4 }
 0x1e6   : > { %v2413_v25 = vsel %vm391_vm10, %v2409_v9, %v2410_v57  ;;  %2878 = vmatprep.subr.bf16.mxu0 %v3198_v62 }
 0x1e7   : > { %v2488_v4 = vpop.permute.xlu1 %2487  ;;  %2879 = vmatpush1.bf16.msra.mxu0 %v3197_v0  ;;  %v2486_v5 = vpop.permute.xlu0 %2485  ;;  %v2414_v38 = vsel %vm434_vm1, %v2405_v35, %v2413_v25 }
 0x1e8   : > { %v2491_v1 = vrot.slane %v2488_v4, 4  ;;  %v2490_v55 = vrot.slane %v2486_v5, 4  ;;  %v3200_v58 = vcombine.high %v2333_v8, %v2414_v38  ;;  %v3199_v39 = vcombine.low %v2333_v8, %v2414_v38 }
 0x1ea   : > { %v2492_v12 = vsel %vm391_vm10, %v2489_v46, %v2490_v55  ;;  %v2494_v47 = vsel %vm391_vm10, %v2490_v55, %v2491_v1  ;;  %2919 = vmatprep.subr.bf16.mxu1 %v3200_v58 }
 0x1eb   : > { %v2495_v29 = vsel %vm350_vm0, %v2486_v5, %v2494_v47  ;;  %2920 = vmatpush1.bf16.msra.mxu1 %v3199_v39  ;;  %v2493_v21 = vsel %vm350_vm0, %v2484_v15, %v2492_v12  ;;  %vm2969_vm0 = vcmask 15368  }
 0x1ec   : > { %v3203_v23 = vcombine.low %v2495_v29, %v2495_v29  ;;  %v3204_v28 = vcombine.high %v2495_v29, %v2495_v29  ;;  %v3202_v20 = vcombine.high %v2493_v21, %v2493_v21  ;;  %v3201_v56 = vcombine.low %v2493_v21, %v2493_v21 }
 0x1ee   : > { %3205 = vmatprep.subr.msk.bf16.mxu0 %vm391_vm10, %v3202_v20  ;;  %3207 = vmatprep.subr.msk.bf16.mxu1 %vm391_vm10, %v3204_v28  ;;  %v2843_v7 = vsel %vm391_vm10, %v3201_v56, 0  ;;  %v2849_v14 = vsel %vm391_vm10, %v3203_v23, 0 }
 0x1ef   : > { %2881 = vmatpush1.bf16.msra.mxu0 %v2843_v7  ;;  %2922 = vmatpush1.bf16.msra.mxu1 %v2849_v14 }
 0x1f2   : > { %2887 = vmatmul.mubr.bf16.vlgmr.msra.gmra.mrb[0].mxu0 %v3147_v27  ;;  %2928 = vmatmul.mubr.bf16.vlgmr.msra.gmra.mrb[0].mxu1 %v3147_v27 }
 0x1f8   : > { %v2559_v17 = vpop.permute.xlu0 %2558 }
 0x2c5   : > { %v2888_v61 = vpop.f32.mrb[0].mxu0  ;;  %v2929_v2 = vpop.f32.mrb[0].mxu1 }
 0x2c6   : > { %v2889_v63 = vadd.f32 %v2888_v61, %v2559_v17  ;;  %v2930_v10 = vadd.f32 %v2929_v2, %v2559_v17  ;;  %v2890_v19 = vpop.f32.mrb[1].mxu0  ;;  %v2931_v13 = vpop.f32.mrb[1].mxu1 }
 0x2c7   : > { %v2891_v59 = vadd.f32 %v2890_v19, %v2559_v17  ;;  %v2932_v54 = vadd.f32 %v2931_v13, %v2559_v17  ;;  %v2892_v32 = vpop.f32.mrb[2].mxu0  ;;  %v2933_v31 = vpop.f32.mrb[2].mxu1 }
 0x2c8   : > { %v2960_v40 = vmul.f32 %v2889_v63, %v2889_v63  ;;  %v2893_v33 = vpop.f32.mrb[3].mxu0  ;;  %v2934_v24 = vpop.f32.mrb[3].mxu1  ;;  %v2962_v37 = vmul.f32 %v2930_v10, %v2930_v10 }
 0x2c9   : > { %v3295_v16 = vpack.c.bf16 %v2891_v59, %v2889_v63  ;;  %v2954_v26 = vadd.f32 %v2891_v59, %v2889_v63  ;;  %v2961_v22 = vmul.f32 %v2891_v59, %v2891_v59  ;;  %v3296_v51 = vpack.c.bf16 %v2932_v54, %v2930_v10 }
 0x2ca   : > { %v2963_v36 = vmul.f32 %v2932_v54, %v2932_v54 }
 0x2cb   : > { %2952 = vst [vmem:[%s285_s17] sm:$0xff] %v3295_v16  ;;  %v2964_v43 = vadd.f32 %v2961_v22, %v2960_v40  ;;  %2953 = vst [vmem:[%s285_s17 + $0x8] sm:$0xff] %v3296_v51  ;;  %v2955_v49 = vadd.f32 %v2954_v26, %v2930_v10 }
 0x2cd   : > { %v2956_v44 = vadd.f32 %v2955_v49, %v2932_v54  ;;  %v2965_v45 = vadd.f32 %v2964_v43, %v2962_v37 }
 0x2cf   : > { %2957 = vadd.xlane.f32.xlu1 %v2956_v44  ;;  %v2966_v41 = vadd.f32 %v2965_v45, %v2963_v36 }
 0x2d1   : > { %2967 = vadd.xlane.f32.xlu0 %v2966_v41 }
 0x35c   : > { %v2958_v53 = vpop.xlane.xlu1 %2957 }
 0x35d   : > { %2959 = vst.msk [vmem:[%s289_s21] sm:$0xff] %vm1389_vm13, %v2958_v53 }
 0x35e   : > { %v2968_v60 = vpop.xlane.xlu0 %2967 }
 0x35f   : > { %2970 = vst.msk [vmem:[%s289_s21] sm:$0xff] %vm2969_vm0, %v2968_v60 }
 0x360 PF: > { %s18_s24 = sadd.s32 1, %s3340_s24  }
 0x361   : > { %p15_p4 = scmp.ge.s32.totalorder %s18_s24, 4  }
 0x363   :  { %17 = sbr.rel (!%p15_p4) target bundleno = 1 (0x1), region = 86 }

// kernel: conv_block_forward.4
= control target key start
LH: loop header
LB: loop body
LE: loop exit
PB: predicated region body
PF: predicated region fallthrough
CT: control target
= control target key end

     0   :  { %s3418_s24 = smov 0   ;;  %s4707_s0 = inlined_call_operand.vmem [shape: bf16[2,8,512], index: 0, kind: input, shape index: {}]   ;;  %s4708_s1 = inlined_call_operand.vmem [shape: f32[27,512], index: 1, kind: input, shape index: {}]   ;;  %s4709_s2 = inlined_call_operand.vmem [shape: bf16[8,216], index: 2, kind: input, shape index: {}]   ;;  %s4710_s3 = inlined_call_operand.vmem [shape: f32[8,1], index: 3, kind: input, shape index: {}]   ;;  %s4711_s4 = inlined_call_operand.vmem [shape: f32[8,1], index: 4, kind: input, shape index: {}]   ;;  %s4712_s5 = inlined_call_operand.vmem [shape: f32[8,1], index: 5, kind: input, shape index: {}]   ;;  %s4713_s6 = inlined_call_operand.vmem [shape: bf16[2,8,512], index: 6, kind: output, shape index: {0}]   ;;  %s4714_s7 = inlined_call_operand.vmem [shape: f32[2,8,2], index: 7, kind: output, shape index: {1}]  }
   0x1 LB: > { %s3083_s25 = sadd.s32 4294967295, %s3358_s24   ;;  %p3087_p0 = scmp.ge.s32.totalorder %s3358_s24, 1  ;;  %s3358_s24 = sphi %s3418_s24, %s18_s24  }
   0x2   : > { %p240_p1 = scmp.lt.s32.totalorder %s3358_s24, 3 }
   0x4   : > { %p241_p2 = pnand %p3087_p0, %p240_p1 }
   0x5   : > { %v297_v0 = vld [vmem:[%s4711_s4] sm:$0xff] (!%p241_p2)  ;;  %v348_v1 = vlaneseq (!%p241_p2)  ;;  %v3360_v2 = vmov (!%p241_p2), 0   ;;  %v3442_v6 = vld [vmem:[%s4708_s1 + $0x10] sm:$0xff] (!%p241_p2)  ;;  %v3450_v8 = vld [vmem:[%s4708_s1 + $0x8] sm:$0xff] (!%p241_p2)  ;;  %s3361_s13 = smov (!%p241_p2), 55   ;;  %s3362_s16 = smov (!%p241_p2), 56  }
   0x6   : > { %244 = sbr.rel (%p241_p2) target bundleno = 875 (0x36b), region = 44  ;;  %3349 = vset.pattern.permute.xlu0 (!%p241_p2), %v3360_v2  ;;  %v307_v4 = vld [vmem:[%s4712_s5] sm:$0xff] (!%p241_p2)  ;;  %v3465_v13 = vld [vmem:[%s4708_s1 + $0x18] sm:$0xff] (!%p241_p2)  ;;  %s3363_s17 = smov (!%p241_p2), 57   ;;  %v3508_v26 = vld [vmem:[%s4708_s1 + $0x30] sm:$0xff] (!%p241_p2)  ;;  %vm376_vm0 = vcmask (!%p241_p2), 449536  }
   0x7   : > { %300 = vperm.xlu0 (!%p241_p2), %3349, %v297_v0   ;;  %v3429_v3 = vshrl.u32 (!%p241_p2), %v348_v1, 7  ;;  %v3437_v5 = vld [vmem:[%s4708_s1] sm:$0xff] (!%p241_p2)  ;;  %v3513_v27 = vld [vmem:[%s4708_s1 + $0x28] sm:$0xff] (!%p241_p2)  ;;  %v3521_v29 = vld [vmem:[%s4708_s1 + $0x38] sm:$0xff] (!%p241_p2)  ;;  %s3364_s28 = smov (!%p241_p2), 63   ;;  %s3365_s29 = smov (!%p241_p2), 64  }
   0x8   : > { %v3503_v25 = vld [vmem:[%s4708_s1 + $0x20] sm:$0xff] (!%p241_p2)  ;;  %s3366_s30 = smov (!%p241_p2), 65   ;;  %s3367_s8 = smov (!%p241_p2), 71   ;;  %vm460_vm1 = vcmask (!%p241_p2), 457728   ;;  %vm543_vm2 = vcmask (!%p241_p2), 465920   ;;  %vm626_vm3 = vcmask (!%p241_p2), 515072  }
   0x9   : > { %v3445_v7 = vsub.s32 (!%p241_p2), 0, %v3429_v3  ;;  %v3457_v11 = vsub.s32 (!%p241_p2), 1, %v3429_v3  ;;  %v3477_v17 = vsub.s32 (!%p241_p2), 2, %v3429_v3  ;;  %v3492_v22 = vsub.s32 (!%p241_p2), 3, %v3429_v3  ;;  %s3368_s9 = smov (!%p241_p2), 72   ;;  %s3369_s10 = smov (!%p241_p2), 73  }
   0xa   : > { %v3498_v24 = vsub.s32 (!%p241_p2), 5, %v3429_v3  ;;  %v3538_v36 = vsub.s32 (!%p241_p2), 4, %v3429_v3  ;;  %v3565_v45 = vsub.s32 (!%p241_p2), 6, %v3429_v3  ;;  %v3580_v50 = vsub.s32 (!%p241_p2), 7, %v3429_v3  ;;  %s3370_s11 = smov (!%p241_p2), 119   ;;  %s3371_s12 = smov (!%p241_p2), 120  }
   0xb   : > { %310 = vperm.xlu0 (!%p241_p2), %3349, %v307_v4   ;;  %v351_v9 = vrot.slane (!%p241_p2), %v3437_v5, %v3445_v7  ;;  %v359_v10 = vrot.slane (!%p241_p2), %v3442_v6, %v3445_v7  ;;  %v355_v12 = vrot.slane (!%p241_p2), %v3450_v8, %v3445_v7  ;;  %v435_v14 = vrot.slane (!%p241_p2), %v3437_v5, %v3457_v11  ;;  %s3372_s14 = smov (!%p241_p2), 121   ;;  %s3373_s15 = smov (!%p241_p2), 127  }
   0xc   : > { %v363_v15 = vrot.slane (!%p241_p2), %v3465_v13, %v3445_v7  ;;  %v443_v16 = vrot.slane (!%p241_p2), %v3442_v6, %v3457_v11  ;;  %v439_v18 = vrot.slane (!%p241_p2), %v3450_v8, %v3457_v11  ;;  %v518_v19 = vrot.slane (!%p241_p2), %v3437_v5, %v3477_v17  ;;  %s3374_s18 = smov (!%p241_p2), 1   ;;  %p276_p3 = scmp.lt.s32.totalorder (!%p241_p2), %s3083_s25, 1 }
   0xd   : > { %368 = vrot.lane.b32.xlu1 %v351_v9, %s3361_s13  ;;  %v447_v20 = vrot.slane %v3465_v13, %v3457_v11  ;;  %v526_v21 = vrot.slane %v3442_v6, %v3477_v17  ;;  %v522_v23 = vrot.slane %v3450_v8, %v3477_v17  ;;  %v601_v28 = vrot.slane %v3437_v5, %v3492_v22  ;;  %s3375_s19 = smov 7   ;;  %s3377_s22 = smov 9  }
   0xe   : > { %v1430_v30 = vrot.slane %v3503_v25, %v3498_v24  ;;  %v1434_v31 = vrot.slane %v3513_v27, %v3498_v24  ;;  %v1438_v32 = vrot.slane %v3508_v26, %v3498_v24  ;;  %v1442_v33 = vrot.slane %v3521_v29, %v3498_v24  ;;  %s4727_s25 = smov (!%p276_p3, %s3083_s25), 1 }
   0xf   : > { %372 = vrot.lane.b32.xlu0 %v359_v10, %s3361_s13  ;;  %v530_v34 = vrot.slane %v3465_v13, %v3477_v17  ;;  %v609_v35 = vrot.slane %v3442_v6, %v3492_v22  ;;  %v605_v37 = vrot.slane %v3450_v8, %v3492_v22  ;;  %v684_v38 = vrot.slane %v3437_v5, %v3538_v36  ;;  %s4715_s20 = sshll.u32 %s4727_s25, 4 }
  0x10   : > { %v613_v39 = vrot.slane %v3465_v13, %v3492_v22  ;;  %v692_v40 = vrot.slane %v3442_v6, %v3538_v36  ;;  %v688_v41 = vrot.slane %v3450_v8, %v3538_v36  ;;  %v767_v42 = vrot.slane %v3437_v5, %v3498_v24  ;;  %s280_s27 = scalar_lea.vmem %s4707_s0, %s4715_s20  ;;  %s3376_s20 = smov 8  }
  0x11   : > { %370 = vrot.lane.b32.xlu1 %v355_v12, %s3361_s13  ;;  %v696_v43 = vrot.slane %v3465_v13, %v3538_v36  ;;  %v775_v44 = vrot.slane %v3442_v6, %v3498_v24  ;;  %v771_v46 = vrot.slane %v3450_v8, %v3498_v24  ;;  %v850_v47 = vrot.slane %v3437_v5, %v3565_v45 }
  0x12   : > { %v779_v48 = vrot.slane %v3465_v13, %v3498_v24  ;;  %v858_v49 = vrot.slane %v3442_v6, %v3565_v45  ;;  %v854_v51 = vrot.slane %v3450_v8, %v3565_v45  ;;  %v933_v52 = vrot.slane %v3437_v5, %v3580_v50 }
  0x13   : > { %452 = vrot.lane.b32.xlu0 %v435_v14, %s3362_s16  ;;  %v862_v53 = vrot.slane %v3465_v13, %v3565_v45  ;;  %v941_v54 = vrot.slane %v3442_v6, %v3580_v50  ;;  %v937_v55 = vrot.slane %v3450_v8, %v3580_v50  ;;  %v1016_v56 = vrot.slane %v3503_v25, %v3445_v7 }
  0x14   : > { %v945_v57 = vrot.slane %v3465_v13, %v3580_v50  ;;  %v1024_v58 = vrot.slane %v3508_v26, %v3445_v7  ;;  %v1020_v59 = vrot.slane %v3513_v27, %v3445_v7  ;;  %v1099_v60 = vrot.slane %v3503_v25, %v3457_v11 }
  0x15   : > { %374 = vrot.lane.b32.xlu1 %v363_v15, %s3361_s13  ;;  %v1028_v61 = vrot.slane %v3521_v29, %v3445_v7  ;;  %v1107_v62 = vrot.slane %v3508_v26, %v3457_v11  ;;  %v1103_v63 = vrot.slane %v3513_v27, %v3457_v11  ;;  %v1182_v0 = vrot.slane %v3503_v25, %v3477_v17 }
  0x16   : > { %v1111_v1 = vrot.slane %v3521_v29, %v3457_v11  ;;  %v1190_v2 = vrot.slane %v3508_v26, %v3477_v17  ;;  %v1186_v3 = vrot.slane %v3513_v27, %v3477_v17  ;;  %v1265_v4 = vrot.slane %v3503_v25, %v3492_v22 }
  0x17   : > { %456 = vrot.lane.b32.xlu0 %v443_v16, %s3362_s16  ;;  %v1194_v5 = vrot.slane %v3521_v29, %v3477_v17  ;;  %v1273_v6 = vrot.slane %v3508_v26, %v3492_v22  ;;  %v1269_v8 = vrot.slane %v3513_v27, %v3492_v22  ;;  %v1348_v9 = vrot.slane %v3503_v25, %v3538_v36 }
  0x18   : > { %v1277_v10 = vrot.slane %v3521_v29, %v3492_v22  ;;  %v1356_v12 = vrot.slane %v3508_v26, %v3538_v36  ;;  %v1352_v13 = vrot.slane %v3513_v27, %v3538_v36  ;;  %v1473_v14 = vrot.slane %v3503_v25, %v3565_v45 }
  0x19   : > { %454 = vrot.lane.b32.xlu1 %v439_v18, %s3362_s16  ;;  %v1360_v15 = vrot.slane %v3521_v29, %v3538_v36  ;;  %v1481_v16 = vrot.slane %v3508_v26, %v3565_v45  ;;  %v1477_v18 = vrot.slane %v3513_v27, %v3565_v45  ;;  %vm709_vm4 = vcmask 523264  }
  0x1a   : > { %vm4718_vm5 = vcmask 531456   ;;  %vm585_vm6 = vcmask 580608   ;;  %vm502_vm7 = vcmask 588800   ;;  %vm419_vm8 = vcmask 596992  }
  0x1b   : > { %535 = vrot.lane.b32.xlu0 %v518_v19, %s3363_s17  ;;  %v1556_v19 = vrot.slane %v3503_v25, %v3580_v50  ;;  %vm4716_vm9 = vcmask 973824   ;;  %vm4717_vm10 = vcmask 982016   ;;  %vm1290_vm11 = vcmask 990208  }
  0x1c   : > { %vm1373_vm12 = vcmask 1039360   ;;  %vm1415_vm13 = vcmask 7168   ;;  %vm1332_vm14 = vcmask 56320   ;;  %vm1249_vm15 = vcmask 64512  }
  0x1d   : > { %458 = vrot.lane.b32.xlu1 %v447_v20, %s3362_s16  ;;  %v1485_v20 = vrot.slane %v3521_v29, %v3565_v45 }
  0x1f   : > { %539 = vrot.lane.b32.xlu0 %v526_v21, %s3363_s17  ;;  %v1564_v21 = vrot.slane %v3508_v26, %v3580_v50 }
  0x21   : > { %537 = vrot.lane.b32.xlu1 %v522_v23, %s3363_s17  ;;  %v3688_v23 = vld [vmem:[%s4708_s1 + $0x40] sm:$0xff] }
  0x23   : > { %618 = vrot.lane.b32.xlu0 %v601_v28, %s3364_s28  ;;  %v1560_v28 = vrot.slane %v3513_v27, %v3580_v50 }
  0x25   : > { %541 = vrot.lane.b32.xlu1 %v530_v34, %s3363_s17 }
  0x27   : > { %622 = vrot.lane.b32.xlu0 %v609_v35, %s3364_s28  ;;  %v1639_v35 = vrot.slane %v3688_v23, %v3445_v7 }
  0x29   : > { %620 = vrot.lane.b32.xlu1 %v605_v37, %s3364_s28  ;;  %v3706_v37 = vld [vmem:[%s4708_s1 + $0x50] sm:$0xff] }
  0x2a   : > { %v1813_v27 = vrot.slane %v3706_v37, %v3477_v17 }
  0x2b   : > { %701 = vrot.lane.b32.xlu0 %v684_v38, %s3365_s29  ;;  %v1568_v38 = vrot.slane %v3521_v29, %v3580_v50 }
  0x2d   : > { %624 = vrot.lane.b32.xlu1 %v613_v39, %s3364_s28  ;;  %v291_v39 = vld [vmem:[%s280_s27] sm:$0xff] }
  0x2f   : > { %705 = vrot.lane.b32.xlu0 %v692_v40, %s3365_s29  ;;  %v292_v40 = vld [vmem:[%s280_s27 + $0x8] sm:$0xff] }
  0x31   : > { %703 = vrot.lane.b32.xlu1 %v688_v41, %s3365_s29  ;;  %v3714_v41 = vld [vmem:[%s4708_s1 + $0x48] sm:$0xff] }
  0x32   : > { %v1809_v26 = vrot.slane %v3714_v41, %v3477_v17 }
  0x33   : > { %784 = vrot.lane.b32.xlu0 %v767_v42, %s3366_s30 }
  0x35   : > { %707 = vrot.lane.b32.xlu1 %v696_v43, %s3365_s29  ;;  %v1647_v43 = vrot.slane %v3706_v37, %v3445_v7 }
  0x37   : > { %788 = vrot.lane.b32.xlu0 %v775_v44, %s3366_s30  ;;  %v293_v44 = vunpack.c.l.bf16 %v291_v39 }
  0x39   : > { %786 = vrot.lane.b32.xlu1 %v771_v46, %s3366_s30  ;;  %v294_v46 = vunpack.c.h.bf16 %v291_v39 }
  0x3b   : > { %867 = vrot.lane.b32.xlu0 %v850_v47, %s3367_s8  ;;  %v295_v47 = vunpack.c.l.bf16 %v292_v40 }
  0x3d   : > { %790 = vrot.lane.b32.xlu1 %v779_v48, %s3366_s30  ;;  %v296_v48 = vunpack.c.h.bf16 %v292_v40 }
  0x3f   : > { %871 = vrot.lane.b32.xlu0 %v858_v49, %s3367_s8  ;;  %v1643_v49 = vrot.slane %v3714_v41, %v3445_v7 }
  0x41   : > { %869 = vrot.lane.b32.xlu1 %v854_v51, %s3367_s8  ;;  %v3727_v51 = vld [vmem:[%s4708_s1 + $0x58] sm:$0xff] }
  0x43   : > { %950 = vrot.lane.b32.xlu0 %v933_v52, %s3368_s9 }
  0x45   : > { %873 = vrot.lane.b32.xlu1 %v862_v53, %s3367_s8 }
  0x47   : > { %954 = vrot.lane.b32.xlu0 %v941_v54, %s3368_s9  ;;  %v1722_v54 = vrot.slane %v3688_v23, %v3457_v11 }
  0x49   : > { %952 = vrot.lane.b32.xlu1 %v937_v55, %s3368_s9  ;;  %v1651_v55 = vrot.slane %v3727_v51, %v3445_v7 }
  0x4b   : > { %1033 = vrot.lane.b32.xlu0 %v1016_v56, %s3369_s10 }
  0x4d   : > { %956 = vrot.lane.b32.xlu1 %v945_v57, %s3368_s9 }
  0x4f   : > { %1037 = vrot.lane.b32.xlu0 %v1024_v58, %s3369_s10 }
  0x51   : > { %1035 = vrot.lane.b32.xlu1 %v1020_v59, %s3369_s10 }
  0x53   : > { %1116 = vrot.lane.b32.xlu0 %v1099_v60, %s3370_s11 }
  0x55   : > { %1039 = vrot.lane.b32.xlu1 %v1028_v61, %s3369_s10  ;;  %v1730_v61 = vrot.slane %v3706_v37, %v3457_v11 }
  0x57   : > { %1120 = vrot.lane.b32.xlu0 %v1107_v62, %s3370_s11 }
  0x59   : > { %1118 = vrot.lane.b32.xlu1 %v1103_v63, %s3370_s11 }
  0x5b   : > { %1199 = vrot.lane.b32.xlu0 %v1182_v0, %s3371_s12 }
  0x5d   : > { %1122 = vrot.lane.b32.xlu1 %v1111_v1, %s3370_s11 }
  0x5f   : > { %1203 = vrot.lane.b32.xlu0 %v1190_v2, %s3371_s12 }
  0x61   : > { %1201 = vrot.lane.b32.xlu1 %v1186_v3, %s3371_s12 }
  0x63   : > { %1282 = vrot.lane.b32.xlu0 %v1265_v4, %s3372_s14 }
  0x65   : > { %1205 = vrot.lane.b32.xlu1 %v1194_v5, %s3371_s12 }
  0x67   : > { %1286 = vrot.lane.b32.xlu0 %v1273_v6, %s3372_s14  ;;  %v1726_v6 = vrot.slane %v3714_v41, %v3457_v11 }
  0x69   : > { %1284 = vrot.lane.b32.xlu1 %v1269_v8, %s3372_s14 }
  0x6b   : > { %1365 = vrot.lane.b32.xlu0 %v1348_v9, %s3373_s15 }
  0x6d   : > { %1288 = vrot.lane.b32.xlu1 %v1277_v10, %s3372_s14 }
  0x6f   : > { %1369 = vrot.lane.b32.xlu0 %v1356_v12, %s3373_s15  ;;  %v1805_v12 = vrot.slane %v3688_v23, %v3477_v17 }
  0x71   : > { %1367 = vrot.lane.b32.xlu1 %v1352_v13, %s3373_s15 }
  0x73   : > { %1490 = vrot.lane.b32.xlu0 %v1473_v14, %s3374_s18  ;;  %v1734_v14 = vrot.slane %v3727_v51, %v3457_v11 }
  0x75   : > { %1371 = vrot.lane.b32.xlu1 %v1360_v15, %s3373_s15 }
  0x77   : > { %1494 = vrot.lane.b32.xlu0 %v1481_v16, %s3374_s18 }
  0x79   : > { %1492 = vrot.lane.b32.xlu1 %v1477_v18, %s3374_s18 }
  0x7b   : > { %1573 = vrot.lane.b32.xlu0 %v1556_v19, %s3375_s19 }
  0x7d   : > { %1496 = vrot.lane.b32.xlu1 %v1485_v20, %s3374_s18  ;;  %v1817_v20 = vrot.slane %v3727_v51, %v3477_v17 }
  0x7f   : > { %v3698_v34 = vpop.permute.xlu1 %368  ;;  %1577 = vrot.lane.b32.xlu0 %v1564_v21, %s3375_s19 }
  0x81   : > { %1575 = vrot.lane.b32.xlu1 %v1560_v28, %s3375_s19 }
  0x83   : > { %v3716_v42 = vpop.permute.xlu1 %370  ;;  %1656 = vrot.lane.b32.xlu0 %v1639_v35, %s3376_s20  ;;  %v1894_v35 = vrot.slane %v3706_v37, %v3492_v22 }
  0x85   : > { %1579 = vrot.lane.b32.xlu1 %v1568_v38, %s3375_s19  ;;  %v1890_v38 = vrot.slane %v3714_v41, %v3492_v22 }
  0x86   : > { %v301_v52 = vpop.permute.xlu0 %300 }
  0x87   : > { %v3729_v53 = vpop.permute.xlu1 %374  ;;  %1660 = vrot.lane.b32.xlu0 %v1647_v43, %s3376_s20  ;;  %v303_v56 = vmul.f32 %v301_v52, %v293_v44  ;;  %v304_v57 = vmul.f32 %v301_v52, %v294_v46  ;;  %v305_v58 = vmul.f32 %v301_v52, %v295_v47  ;;  %v306_v59 = vmul.f32 %v301_v52, %v296_v48 }
  0x88   : > { %v1967_v43 = vrot.slane %v3688_v23, %v3538_v36  ;;  %v1898_v44 = vrot.slane %v3727_v51, %v3492_v22  ;;  %v1975_v48 = vrot.slane %v3706_v37, %v3538_v36 }
  0x89   : > { %1658 = vrot.lane.b32.xlu1 %v1643_v49, %s3376_s20  ;;  %v1971_v49 = vrot.slane %v3714_v41, %v3538_v36 }
  0x8a   : > { %v311_v60 = vpop.permute.xlu0 %310 }
  0x8b   : > { %v313_v62 = vadd.f32 %v311_v60, %v303_v56  ;;  %v314_v63 = vadd.f32 %v311_v60, %v304_v57  ;;  %v315_v0 = vadd.f32 %v311_v60, %v305_v58  ;;  %v316_v1 = vadd.f32 %v311_v60, %v306_v59  ;;  %v3739_v2 = vpop.permute.xlu1 %454  ;;  %1739 = vrot.lane.b32.xlu0 %v1722_v54, %s3377_s22 }
  0x8c   : > { %v2056_v58 = vrot.slane %v3706_v37, %v3498_v24  ;;  %v2052_v59 = vrot.slane %v3714_v41, %v3498_v24 }
  0x8d   : > { %v3742_v3 = vmax.f32 %v313_v62, 0.0  ;;  %v3744_v4 = vmax.f32 %v314_v63, 0.0  ;;  %v3746_v5 = vmax.f32 %v315_v0, 0.0  ;;  %1662 = vrot.lane.b32.xlu1 %v1651_v55, %s3376_s20  ;;  %v3751_v8 = vmax.f32 %v316_v1, 0.0 }
  0x8e   : > { %v3753_v9 = vpop.permute.xlu0 %372  ;;  %v1979_v55 = vrot.slane %v3727_v51, %v3538_v36  ;;  %v2129_v36 = vrot.slane %v3688_v23, %v3565_v45  ;;  %v2060_v62 = vrot.slane %v3727_v51, %v3498_v24  ;;  %v2137_v1 = vrot.slane %v3706_v37, %v3565_v45 }
  0x8f   : > { %v3755_v10 = vpop.permute.xlu1 %458  ;;  %1743 = vrot.lane.b32.xlu0 %v1730_v61, %s3377_s22  ;;  %v1443_v13 = vmul.f32 %v1430_v30, %v3742_v3  ;;  %v1444_v15 = vmul.f32 %v1434_v31, %v3744_v4  ;;  %v1445_v16 = vmul.f32 %v1438_v32, %v3746_v5  ;;  %v1446_v25 = vmul.f32 %v1442_v33, %v3751_v8 }
  0x90   : > { %v1886_v33 = vrot.slane %v3688_v23, %v3492_v22  ;;  %v2048_v22 = vrot.slane %v3688_v23, %v3498_v24  ;;  %v2210_v24 = vrot.slane %v3688_v23, %v3580_v50  ;;  %v2214_v23 = vrot.slane %v3714_v41, %v3580_v50 }
  0x91   : > { %1741 = vrot.lane.b32.xlu1 %v1726_v6, %s3377_s22  ;;  %v3786_v31 = vpack.c.bf16 %v1444_v15, %v1443_v13  ;;  %v3788_v19 = vpack.c.bf16 %v1446_v25, %v1445_v16  ;;  %v2133_v6 = vrot.slane %v3714_v41, %v3565_v45  ;;  %v2218_v25 = vrot.slane %v3706_v37, %v3580_v50  ;;  %v341_v37 = vld [vmem:[%s4708_s1 + $0x70] sm:$0x7]  ;;  %v340_v41 = vld [vmem:[%s4708_s1 + $0x68] sm:$0x7] }
  0x92   : > { %v3775_v18 = vpop.permute.xlu0 %452 }
  0x93   : > { %v3781_v30 = vpop.permute.xlu1 %537  ;;  %1822 = vrot.lane.b32.xlu0 %v1805_v12, %s3361_s13 }
  0x95   : > { %1745 = vrot.lane.b32.xlu1 %v1734_v14, %s3377_s22  ;;  %v2141_v14 = vrot.slane %v3727_v51, %v3565_v45 }
  0x96   : > { %v3793_v32 = vpop.permute.xlu0 %456 }
  0x97   : > { %v3795_v29 = vpop.permute.xlu1 %541  ;;  %1826 = vrot.lane.b32.xlu0 %v1813_v27, %s3361_s13  ;;  %v339_v27 = vld [vmem:[%s4708_s1 + $0x60] sm:$0x7] }
  0x99   : > { %1824 = vrot.lane.b32.xlu1 %v1809_v26, %s3361_s13 }
  0x9a   : > { %v3803_v21 = vpop.permute.xlu0 %535 }
  0x9b   : > { %v3805_v28 = vpop.permute.xlu1 %620  ;;  %1903 = vrot.lane.b32.xlu0 %v1886_v33, %s3362_s16  ;;  %v2291_v33 = vrot.slane %v339_v27, %v3445_v7 }
  0x9d   : > { %1828 = vrot.lane.b32.xlu1 %v1817_v20, %s3361_s13  ;;  %v2222_v20 = vrot.slane %v3727_v51, %v3580_v50  ;;  %v342_v50 = vld [vmem:[%s4708_s1 + $0x78] sm:$0x7] }
  0x9e   : > { %v3813_v39 = vpop.permute.xlu0 %539 }
  0x9f   : > { %v3815_v40 = vpop.permute.xlu1 %624  ;;  %1907 = vrot.lane.b32.xlu0 %v1894_v35, %s3362_s16 }
  0xa1   : > { %1905 = vrot.lane.b32.xlu1 %v1890_v38, %s3362_s16 }
  0xa2   : > { %v3823_v46 = vpop.permute.xlu0 %618 }
  0xa3   : > { %v3825_v47 = vpop.permute.xlu1 %703  ;;  %1984 = vrot.lane.b32.xlu0 %v1967_v43, %s3363_s17  ;;  %v2299_v43 = vrot.slane %v341_v37, %v3445_v7 }
  0xa5   : > { %1909 = vrot.lane.b32.xlu1 %v1898_v44, %s3362_s16  ;;  %v2295_v44 = vrot.slane %v340_v41, %v3445_v7 }
  0xa6   : > { %v3833_v52 = vpop.permute.xlu0 %622 }
  0xa7   : > { %v3835_v54 = vpop.permute.xlu1 %707  ;;  %1988 = vrot.lane.b32.xlu0 %v1975_v48, %s3363_s17 }
  0xa9   : > { %1986 = vrot.lane.b32.xlu1 %v1971_v49, %s3363_s17  ;;  %v2372_v49 = vrot.slane %v339_v27, %v3457_v11 }
  0xaa   : > { %v3843_v56 = vpop.permute.xlu0 %701 }
  0xab   : > { %v3845_v57 = vpop.permute.xlu1 %786  ;;  %2065 = vrot.lane.b32.xlu0 %v2048_v22, %s3364_s28  ;;  %v2303_v22 = vrot.slane %v342_v50, %v3445_v7  ;;  %v2453_v7 = vrot.slane %v339_v27, %v3477_v17  ;;  %v2457_v27 = vrot.slane %v340_v41, %v3477_v17 }
  0xad   : > { %1990 = vrot.lane.b32.xlu1 %v1979_v55, %s3363_s17 }
  0xae   : > { %v3853_v60 = vpop.permute.xlu0 %705 }
  0xaf   : > { %v3855_v61 = vpop.permute.xlu1 %790  ;;  %2069 = vrot.lane.b32.xlu0 %v2056_v58, %s3364_s28 }
  0xb1   : > { %2067 = vrot.lane.b32.xlu1 %v2052_v59, %s3364_s28  ;;  %v2380_v59 = vrot.slane %v341_v37, %v3457_v11 }
  0xb2   : > { %v3863_v63 = vpop.permute.xlu0 %784 }
  0xb3   : > { %v3865_v0 = vpop.permute.xlu1 %869  ;;  %2146 = vrot.lane.b32.xlu0 %v2129_v36, %s3365_s29  ;;  %v2376_v36 = vrot.slane %v340_v41, %v3457_v11  ;;  %v379_v41 = vsel %vm376_vm0, %v3753_v9, %v3729_v53 }
  0xb5   : > { %2071 = vrot.lane.b32.xlu1 %v2060_v62, %s3364_s28 }
  0xb6   : > { %v3873_v12 = vpop.permute.xlu0 %788 }
  0xb7   : > { %v3875_v13 = vpop.permute.xlu1 %873  ;;  %2150 = vrot.lane.b32.xlu0 %v2137_v1, %s3365_s29 }
  0xb9   : > { %2148 = vrot.lane.b32.xlu1 %v2133_v6, %s3365_s29  ;;  %v2384_v6 = vrot.slane %v342_v50, %v3457_v11  ;;  %v461_v11 = vsel %vm460_vm1, %v3775_v18, %v3739_v2 }
  0xba   : > { %v3883_v15 = vpop.permute.xlu0 %867 }
  0xbb   : > { %v3885_v16 = vpop.permute.xlu1 %952  ;;  %2227 = vrot.lane.b32.xlu0 %v2210_v24, %s3366_s30 }
  0xbd   : > { %2152 = vrot.lane.b32.xlu1 %v2141_v14, %s3365_s29 }
  0xbe   : > { %v3896_v26 = vpop.permute.xlu0 %871 }
  0xbf   : > { %v3898_v45 = vpop.permute.xlu1 %956  ;;  %2231 = vrot.lane.b32.xlu0 %v2218_v25, %s3366_s30  ;;  %v2461_v25 = vrot.slane %v341_v37, %v3477_v17  ;;  %v378_v37 = vsel %vm376_vm0, %v3716_v42, %v3753_v9  ;;  %v462_v9 = vsel %vm460_vm1, %v3739_v2, %v3793_v32 }
  0xc1   : > { %2229 = vrot.lane.b32.xlu1 %v2214_v23, %s3366_s30  ;;  %v377_v23 = vsel %vm376_vm0, %v3698_v34, %v3716_v42 }
  0xc2   : > { %v3908_v35 = vpop.permute.xlu0 %950 }
  0xc3   : > { %v3913_v38 = vpop.permute.xlu1 %1035  ;;  %2308 = vrot.lane.b32.xlu0 %v2291_v33, %s3367_s8  ;;  %v386_v33 = vmul.f32 %v377_v23, %v3742_v3 }
  0xc5   : > { %2233 = vrot.lane.b32.xlu1 %v2222_v20, %s3366_s30 }
  0xc6   : > { %v3919_v48 = vpop.permute.xlu0 %954 }
  0xc7   : > { %v3924_v51 = vpop.permute.xlu1 %1039  ;;  %2312 = vrot.lane.b32.xlu0 %v2299_v43, %s3367_s8  ;;  %v385_v43 = vmul.f32 0.0, %v3698_v34  ;;  %v2465_v34 = vrot.slane %v342_v50, %v3477_v17  ;;  %v389_v50 = vmul.f32 %v3729_v53, %v3751_v8 }
  0xc9   : > { %2310 = vrot.lane.b32.xlu1 %v2295_v44, %s3367_s8 }
  0xca   : > { %v3930_v55 = vpop.permute.xlu0 %1033 }
  0xcb   : > { %v3932_v58 = vpop.permute.xlu1 %1118  ;;  %2389 = vrot.lane.b32.xlu0 %v2372_v49, %s3368_s9  ;;  %v469_v49 = vmul.f32 0.0, %v3775_v18  ;;  %v463_v18 = vsel %vm460_vm1, %v3793_v32, %v3755_v10  ;;  %v552_v32 = vmul.f32 0.0, %v3803_v21 }
  0xcc   : > { %v472_v2 = vmul.f32 %v463_v18, %v3746_v5 }
  0xcd   : > { %2314 = vrot.lane.b32.xlu1 %v2303_v22, %s3367_s8  ;;  %v470_v22 = vmul.f32 %v461_v11, %v3742_v3 }
  0xce   : > { %v3938_v62 = vpop.permute.xlu0 %1037 }
  0xcf   : > { %v3940_v1 = vpop.permute.xlu1 %1122  ;;  %2393 = vrot.lane.b32.xlu0 %v2380_v59, %s3368_s9  ;;  %v3241_v59 = vpack.c.bf16 %v386_v33, %v385_v43  ;;  %v3244_v17 = vpack.c.bf16 %v470_v22, %v469_v49  ;;  %v471_v33 = vmul.f32 %v462_v9, %v3744_v4  ;;  %v3243_v43 = vpack.c.bf16 %v389_v50, %v389_v50 }
  0xd0   : > { %v473_v49 = vmul.f32 %v3755_v10, %v3751_v8 }
  0xd1   : > { %2391 = vrot.lane.b32.xlu1 %v2376_v36, %s3368_s9  ;;  %v3245_v22 = vpack.c.bf16 %v472_v2, %v471_v33  ;;  %v710_v33 = vsel %vm709_vm4, %v3843_v56, %v3825_v47 }
  0xd2   : > { %v3946_v24 = vpop.permute.xlu0 %1116  ;;  %v3246_v18 = vpack.c.bf16 %v473_v49, %v473_v49  ;;  %v793_v49 = vsel %vm4718_vm5, %v3863_v63, %v3845_v57 }
  0xd3   : > { %v3948_v14 = vpop.permute.xlu1 %1201  ;;  %2470 = vrot.lane.b32.xlu0 %v2453_v7, %s3369_s10  ;;  %v387_v7 = vmul.f32 %v378_v37, %v3744_v4  ;;  %v627_v37 = vsel %vm626_vm3, %v3823_v46, %v3805_v28 }
  0xd4   : > { %v636_v9 = vmul.f32 %v627_v37, %v3742_v3  ;;  %v719_v37 = vmul.f32 %v710_v33, %v3742_v3  ;;  %v876_v33 = vsel %vm585_vm6, %v3883_v15, %v3865_v0 }
  0xd5   : > { %2395 = vrot.lane.b32.xlu1 %v2384_v6, %s3368_s9  ;;  %v388_v6 = vmul.f32 %v379_v41, %v3746_v5 }
  0xd6   : > { %v3961_v20 = vpop.permute.xlu0 %1120 }
  0xd7   : > { %v3964_v44 = vpop.permute.xlu1 %1205  ;;  %2474 = vrot.lane.b32.xlu0 %v2461_v25, %s3369_s10  ;;  %v544_v25 = vsel %vm543_vm2, %v3803_v21, %v3781_v30  ;;  %v545_v21 = vsel %vm543_vm2, %v3781_v30, %v3813_v39 }
  0xd8   : > { %v553_v53 = vmul.f32 %v544_v25, %v3742_v3  ;;  %v556_v25 = vmul.f32 %v3795_v29, %v3751_v8 }
  0xd9   : > { %2472 = vrot.lane.b32.xlu1 %v2457_v27, %s3369_s10  ;;  %v3242_v27 = vpack.c.bf16 %v388_v6, %v387_v7  ;;  %v635_v6 = vmul.f32 0.0, %v3823_v46  ;;  %v629_v46 = vsel %vm626_vm3, %v3833_v52, %v3815_v40 }
  0xda   : > { %v3977_v36 = vpop.permute.xlu0 %1199  ;;  %v3247_v7 = vpack.c.bf16 %v553_v53, %v552_v32 }
  0xdb   : > { %v3981_v42 = vpop.permute.xlu1 %1284  ;;  %408 = vrot.lane.b32.xlu0 %v3241_v59, %s3369_s10 }
  0xdd   : > { %2476 = vrot.lane.b32.xlu1 %v2465_v34, %s3369_s10  ;;  %v546_v34 = vsel %vm543_vm2, %v3813_v39, %v3795_v29  ;;  %v628_v39 = vsel %vm626_vm3, %v3805_v28, %v3833_v52  ;;  %v638_v28 = vmul.f32 %v629_v46, %v3746_v5  ;;  %v3249_v29 = vpack.c.bf16 %v556_v25, %v556_v25 }
  0xde   : > { %v3996_v23 = vpop.permute.xlu0 %1203  ;;  %v555_v50 = vmul.f32 %v546_v34, %v3746_v5  ;;  %v637_v53 = vmul.f32 %v628_v39, %v3744_v4  ;;  %v718_v52 = vmul.f32 0.0, %v3843_v56  ;;  %v711_v56 = vsel %vm709_vm4, %v3825_v47, %v3853_v60 }
  0xdf   : > { %v4000_v11 = vpop.permute.xlu1 %1288  ;;  %492 = vrot.lane.b32.xlu0 %v3244_v17, %s3368_s9  ;;  %v554_v17 = vmul.f32 %v545_v21, %v3744_v4  ;;  %v639_v21 = vmul.f32 %v3815_v40, %v3751_v8  ;;  %v720_v39 = vmul.f32 %v711_v56, %v3744_v4  ;;  %v722_v25 = vmul.f32 %v3835_v54, %v3751_v8 }
  0xe0   : > { %v3251_v34 = vpack.c.bf16 %v638_v28, %v637_v53 }
  0xe1   : > { %410 = vrot.lane.b32.xlu1 %v3242_v27, %s3369_s10  ;;  %v3250_v27 = vpack.c.bf16 %v636_v9, %v635_v6  ;;  %v3248_v32 = vpack.c.bf16 %v555_v50, %v554_v17  ;;  %v712_v6 = vsel %vm709_vm4, %v3853_v60, %v3835_v54  ;;  %v3253_v9 = vpack.c.bf16 %v719_v37, %v718_v52 }
  0xe2   : > { %v4009_v41 = vpop.permute.xlu0 %1282  ;;  %v802_v17 = vmul.f32 %v793_v49, %v3742_v3  ;;  %v3252_v50 = vpack.c.bf16 %v639_v21, %v639_v21  ;;  %v721_v46 = vmul.f32 %v712_v6, %v3746_v5  ;;  %v794_v60 = vsel %vm4718_vm5, %v3845_v57, %v3873_v12 }
  0xe3   : > { %v4013_v59 = vpop.permute.xlu1 %1367  ;;  %412 = vrot.lane.b32.xlu0 %v3243_v43, %s3369_s10  ;;  %v803_v28 = vmul.f32 %v794_v60, %v3744_v4  ;;  %v3255_v54 = vpack.c.bf16 %v722_v25, %v722_v25  ;;  %v885_v52 = vmul.f32 %v876_v33, %v3742_v3  ;;  %v959_v37 = vsel %vm502_vm7, %v3908_v35, %v3885_v16 }
  0xe4   : > { %v3254_v53 = vpack.c.bf16 %v721_v46, %v720_v39  ;;  %v805_v21 = vmul.f32 %v3855_v61, %v3751_v8  ;;  %v878_v6 = vsel %vm585_vm6, %v3896_v26, %v3875_v13  ;;  %v888_v60 = vmul.f32 %v3875_v13, %v3751_v8 }
  0xe5   : > { %494 = vrot.lane.b32.xlu1 %v3245_v22, %s3368_s9  ;;  %v887_v46 = vmul.f32 %v878_v6, %v3746_v5  ;;  %v1042_v25 = vsel %vm419_vm8, %v3930_v55, %v3913_v38  ;;  %v1133_v6 = vmul.f32 0.0, %v3946_v24 }
  0xe6   : > { %v4025_v10 = vpop.permute.xlu0 %1286  ;;  %v3261_v13 = vpack.c.bf16 %v888_v60, %v888_v60 }
  0xe7   : > { %v4029_v30 = vpop.permute.xlu1 %1371  ;;  %575 = vrot.lane.b32.xlu0 %v3247_v7, %s3367_s8 }
  0xe9   : > { %496 = vrot.lane.b32.xlu1 %v3246_v18, %s3368_s9  ;;  %v801_v18 = vmul.f32 0.0, %v3863_v63  ;;  %v795_v63 = vsel %vm4718_vm5, %v3873_v12, %v3855_v61  ;;  %v884_v12 = vmul.f32 0.0, %v3883_v15  ;;  %v877_v15 = vsel %vm585_vm6, %v3865_v0, %v3896_v26 }
  0xea   : > { %v4044_v2 = vpop.permute.xlu0 %1365  ;;  %v804_v57 = vmul.f32 %v795_v63, %v3746_v5  ;;  %v886_v39 = vmul.f32 %v877_v15, %v3744_v4  ;;  %v960_v26 = vsel %vm502_vm7, %v3885_v16, %v3919_v48 }
  0xeb   : > { %v4048_v43 = vpop.permute.xlu1 %1492  ;;  %658 = vrot.lane.b32.xlu0 %v3250_v27, %s3366_s30  ;;  %v3256_v27 = vpack.c.bf16 %v802_v17, %v801_v18  ;;  %v967_v18 = vmul.f32 0.0, %v3908_v35  ;;  %v968_v17 = vmul.f32 %v959_v37, %v3742_v3  ;;  %v961_v35 = vsel %vm502_vm7, %v3919_v48, %v3898_v45 }
  0xec   : > { %v3260_v33 = vpack.c.bf16 %v887_v46, %v886_v39  ;;  %v970_v16 = vmul.f32 %v961_v35, %v3746_v5  ;;  %v1050_v48 = vmul.f32 0.0, %v3930_v55  ;;  %v1043_v55 = vsel %vm419_vm8, %v3913_v38, %v3938_v62 }
  0xed   : > { %577 = vrot.lane.b32.xlu1 %v3248_v32, %s3367_s8  ;;  %v3262_v63 = vpack.c.bf16 %v968_v17, %v967_v18  ;;  %v1052_v17 = vmul.f32 %v1043_v55, %v3744_v4  ;;  %v1054_v39 = vmul.f32 %v3924_v51, %v3751_v8 }
  0xee   : > { %v4057_v22 = vpop.permute.xlu0 %1369 }
  0xef   : > { %v4061_v7 = vpop.permute.xlu1 %1496  ;;  %579 = vrot.lane.b32.xlu0 %v3249_v29, %s3367_s8 }
  0xf1   : > { %660 = vrot.lane.b32.xlu1 %v3251_v34, %s3366_s30  ;;  %v3257_v34 = vpack.c.bf16 %v804_v57, %v803_v28  ;;  %v1051_v57 = vmul.f32 %v1042_v25, %v3742_v3 }
  0xf2   : > { %v4073_v40 = vpop.permute.xlu0 %1490 }
  0xf3   : > { %v4077_v47 = vpop.permute.xlu1 %1575  ;;  %741 = vrot.lane.b32.xlu0 %v3253_v9, %s3365_s29  ;;  %v3259_v9 = vpack.c.bf16 %v885_v52, %v884_v12  ;;  %v971_v52 = vmul.f32 %v3898_v45, %v3751_v8  ;;  %v3265_v15 = vpack.c.bf16 %v1051_v57, %v1050_v48 }
  0xf5   : > { %662 = vrot.lane.b32.xlu1 %v3252_v50, %s3366_s30  ;;  %v3258_v50 = vpack.c.bf16 %v805_v21, %v805_v21  ;;  %v3264_v18 = vpack.c.bf16 %v971_v52, %v971_v52 }
  0xf6   : > { %v4092_v32 = vpop.permute.xlu0 %1494 }
  0xf7   : > { %v4096_v29 = vpop.permute.xlu1 %1579  ;;  %824 = vrot.lane.b32.xlu0 %v3256_v27, %s3364_s28 }
  0xf9   : > { %743 = vrot.lane.b32.xlu1 %v3254_v53, %s3365_s29  ;;  %v969_v53 = vmul.f32 %v960_v26, %v3744_v4  ;;  %v1208_v26 = vsel %vm4717_vm10, %v3977_v36, %v3948_v14 }
  0xfa   : > { %v4105_v49 = vpop.permute.xlu0 %1573 }
  0xfb   : > { %v4109_v56 = vpop.permute.xlu1 %1658  ;;  %745 = vrot.lane.b32.xlu0 %v3255_v54, %s3365_s29  ;;  %v1125_v54 = vsel %vm4716_vm9, %v3946_v24, %v3932_v58  ;;  %v3263_v37 = vpack.c.bf16 %v970_v16, %v969_v53  ;;  %v1127_v24 = vsel %vm4716_vm9, %v3961_v20, %v3940_v1  ;;  %v1291_v53 = vsel %vm1290_vm11, %v4009_v41, %v3981_v42 }
  0xfc   : > { %v1300_v55 = vmul.f32 %v1291_v53, %v3742_v3  ;;  %v1501_v53 = vsel %vm1415_vm13, %v4092_v32, %v4061_v7 }
  0xfd   : > { %826 = vrot.lane.b32.xlu1 %v3257_v34, %s3364_s28  ;;  %v1044_v34 = vsel %vm419_vm8, %v3938_v62, %v3924_v51  ;;  %v1126_v62 = vsel %vm4716_vm9, %v3932_v58, %v3961_v20  ;;  %v1136_v58 = vmul.f32 %v1127_v24, %v3746_v5  ;;  %v3267_v51 = vpack.c.bf16 %v1054_v39, %v1054_v39 }
  0xfe   : > { %v4121_v61 = vpop.permute.xlu0 %1577  ;;  %v1216_v20 = vmul.f32 0.0, %v3977_v36  ;;  %v1209_v36 = vsel %vm4717_vm10, %v3948_v14, %v3996_v23  ;;  %vm1166_vm9 = vcmask 72704  }
  0xff   : > { %v4125_v0 = vpop.permute.xlu1 %1662  ;;  %907 = vrot.lane.b32.xlu0 %v3259_v9, %s3363_s17  ;;  %v1134_v9 = vmul.f32 %v1125_v54, %v3742_v3  ;;  %v1210_v54 = vsel %vm4717_vm10, %v3996_v23, %v3964_v44  ;;  %v1292_v23 = vsel %vm1290_vm11, %v3981_v42, %v4025_v10  ;;  %vm417_vm10 = vcmask 1043456  }
 0x100   : > { %v1301_v24 = vmul.f32 %v1292_v23, %v3744_v4 }
 0x101   : > { %828 = vrot.lane.b32.xlu1 %v3258_v50, %s3364_s28  ;;  %v1053_v50 = vmul.f32 %v1044_v34, %v3746_v5  ;;  %v3268_v46 = vpack.c.bf16 %v1134_v9, %v1133_v6  ;;  %v1219_v6 = vmul.f32 %v1210_v54, %v3746_v5  ;;  %v1220_v9 = vmul.f32 %v3964_v44, %v3751_v8 }
 0x102   : > { %v4140_v27 = vpop.permute.xlu0 %1656  ;;  %v1382_v44 = vmul.f32 0.0, %v4044_v2 }
 0x103   : > { %v4144_v28 = vpop.permute.xlu1 %1741  ;;  %990 = vrot.lane.b32.xlu0 %v3262_v63, %s3362_s16  ;;  %v3266_v60 = vpack.c.bf16 %v1053_v50, %v1052_v17  ;;  %v1135_v63 = vmul.f32 %v1126_v62, %v3744_v4  ;;  %v1374_v17 = vsel %vm1373_vm12, %v4044_v2, %v4013_v59  ;;  %v1376_v2 = vsel %vm1373_vm12, %v4057_v22, %v4029_v30 }
 0x105   : > { %909 = vrot.lane.b32.xlu1 %v3260_v33, %s3363_s17  ;;  %v1217_v33 = vmul.f32 %v1208_v26, %v3742_v3  ;;  %v3269_v48 = vpack.c.bf16 %v1136_v58, %v1135_v63 }
 0x106   : > { %v4153_v12 = vpop.permute.xlu0 %1660 }
 0x107   : > { %v4157_v21 = vpop.permute.xlu1 %1745  ;;  %911 = vrot.lane.b32.xlu0 %v3261_v13, %s3363_s17  ;;  %v1137_v13 = vmul.f32 %v3940_v1, %v3751_v8  ;;  %v3271_v52 = vpack.c.bf16 %v1217_v33, %v1216_v20  ;;  %v1386_v20 = vmul.f32 %v4029_v30, %v3751_v8 }
 0x109   : > { %992 = vrot.lane.b32.xlu1 %v3263_v37, %s3362_s16  ;;  %v1299_v37 = vmul.f32 0.0, %v4009_v41  ;;  %v3270_v34 = vpack.c.bf16 %v1137_v13, %v1137_v13  ;;  %v1293_v41 = vsel %vm1290_vm11, %v4025_v10, %v4000_v11  ;;  %v3273_v10 = vpack.c.bf16 %v1220_v9, %v1220_v9 }
 0x10a   : > { %v4169_v45 = vpop.permute.xlu0 %1739  ;;  %v1302_v42 = vmul.f32 %v1293_v41, %v3746_v5  ;;  %v3279_v54 = vpack.c.bf16 %v1386_v20, %v1386_v20  ;;  %v1582_v41 = vsel %vm1332_vm14, %v4105_v49, %v4077_v47 }
 0x10b   : > { %v4173_v38 = vpop.permute.xlu1 %1824  ;;  %1073 = vrot.lane.b32.xlu0 %v3265_v15, %s3361_s13  ;;  %v1218_v15 = vmul.f32 %v1209_v36, %v3744_v4  ;;  %v1499_v36 = vsel %vm1415_vm13, %v4073_v40, %v4048_v43 }
 0x10c   : > { %v3275_v63 = vpack.c.bf16 %v1302_v42, %v1301_v24  ;;  %v1591_v24 = vmul.f32 %v1582_v41, %v3744_v4  ;;  %v1677_v41 = vmul.f32 0.0, %v4125_v0 }
 0x10d   : > { %994 = vrot.lane.b32.xlu1 %v3264_v18, %s3362_s16  ;;  %v3274_v18 = vpack.c.bf16 %v1300_v55, %v1299_v37  ;;  %v3272_v62 = vpack.c.bf16 %v1219_v6, %v1218_v15  ;;  %v1583_v37 = vsel %vm1332_vm14, %v4077_v47, %v4121_v61  ;;  %v1584_v55 = vsel %vm1332_vm14, %v4121_v61, %v4096_v29 }
 0x10e   : > { %v4188_v35 = vpop.permute.xlu0 %1743  ;;  %v1508_v6 = vmul.f32 %v1499_v36, %v3744_v4  ;;  %v1593_v61 = vmul.f32 %v1584_v55, %v3751_v8  ;;  %v1594_v47 = vmul.f32 0.0, %v4096_v29  ;;  %v1665_v29 = vsel %vm1249_vm15, %v4140_v27, %v4109_v56 }
 0x10f   : > { %v4192_v25 = vpop.permute.xlu1 %1828  ;;  %1156 = vrot.lane.b32.xlu0 %v3268_v46, %s3377_s22  ;;  %v1383_v46 = vmul.f32 %v1374_v17, %v3742_v3 }
 0x111   : > { %1075 = vrot.lane.b32.xlu1 %v3266_v60, %s3361_s13  ;;  %v1303_v60 = vmul.f32 %v4000_v11, %v3751_v8  ;;  %v3277_v33 = vpack.c.bf16 %v1383_v46, %v1382_v44  ;;  %v1500_v11 = vsel %vm1415_vm13, %v4048_v43, %v4092_v32  ;;  %v1510_v32 = vmul.f32 %v1501_v53, %v3751_v8 }
 0x112   : > { %v4201_v16 = vpop.permute.xlu0 %1822  ;;  %v1507_v43 = vmul.f32 %v4073_v40, %v3742_v3  ;;  %v1666_v44 = vsel %vm1249_vm15, %v4109_v56, %v4153_v12  ;;  %v1673_v56 = vmul.f32 %v4140_v27, %v3742_v3 }
 0x113   : > { %v4205_v57 = vpop.permute.xlu1 %1905  ;;  %1077 = vrot.lane.b32.xlu0 %v3267_v51, %s3361_s13  ;;  %v1375_v51 = vsel %vm1373_vm12, %v4013_v59, %v4057_v22  ;;  %v3276_v13 = vpack.c.bf16 %v1303_v60, %v1303_v60  ;;  %v1511_v60 = vmul.f32 0.0, %v4061_v7  ;;  %v1675_v20 = vmul.f32 %v1666_v44, %v3746_v5 }
 0x114   : > { %v1384_v22 = vmul.f32 %v1375_v51, %v3744_v4  ;;  %v3282_v40 = vpack.c.bf16 %v1508_v6, %v1507_v43  ;;  %v1749_v7 = vsel %vm1166_vm9, %v4144_v28, %v4188_v35 }
 0x115   : > { %1158 = vrot.lane.b32.xlu1 %v3269_v48, %s3377_s22  ;;  %v1385_v48 = vmul.f32 %v1376_v2, %v3746_v5  ;;  %v3287_v2 = vpack.c.bf16 %v1594_v47, %v1594_v47  ;;  %v3284_v53 = vpack.c.bf16 %v1511_v60, %v1511_v60  ;;  %v3290_v47 = vpack.c.bf16 %v1677_v41, %v1677_v41 }
 0x116   : > { %v4217_v1 = vpop.permute.xlu0 %1826 }
 0x117   : > { %v4221_v14 = vpop.permute.xlu1 %1909  ;;  %1239 = vrot.lane.b32.xlu0 %v3271_v52, %s3376_s20  ;;  %v1509_v52 = vmul.f32 %v1500_v11, %v3746_v5  ;;  %v3278_v15 = vpack.c.bf16 %v1385_v48, %v1384_v22  ;;  %v1748_v48 = vsel %vm1166_vm9, %v4169_v45, %v4144_v28  ;;  %v1760_v28 = vmul.f32 0.0, %v4157_v21 }
 0x118   : > { %v1831_v43 = vsel %vm376_vm0, %v4173_v38, %v4217_v1  ;;  %v1832_v6 = vsel %vm376_vm0, %v4217_v1, %v4192_v25 }
 0x119   : > { %1160 = vrot.lane.b32.xlu1 %v3270_v34, %s3377_s22  ;;  %v3283_v9 = vpack.c.bf16 %v1510_v32, %v1509_v52  ;;  %v1756_v32 = vmul.f32 %v4169_v45, %v3742_v3 }
 0x11a   : > { %v4236_v50 = vpop.permute.xlu0 %1903 }
 0x11b   : > { %v4240_v39 = vpop.permute.xlu1 %1986  ;;  %1322 = vrot.lane.b32.xlu0 %v3274_v18, %s3375_s19  ;;  %v1592_v18 = vmul.f32 %v1583_v37, %v3746_v5  ;;  %v1757_v37 = vmul.f32 %v1748_v48, %v3744_v4 }
 0x11d   : > { %1241 = vrot.lane.b32.xlu1 %v3272_v62, %s3376_s20  ;;  %v1590_v62 = vmul.f32 %v4105_v49, %v3742_v3  ;;  %v1667_v49 = vsel %vm1249_vm15, %v4153_v12, %v4125_v0  ;;  %v1750_v12 = vsel %vm1166_vm9, %v4188_v35, %v4157_v21  ;;  %v1830_v21 = vsel %vm376_vm0, %v4201_v16, %v4173_v38 }
 0x11e   : > { %v4246_v26 = vpop.permute.xlu0 %1907  ;;  %v1759_v35 = vmul.f32 %v1750_v12, %v3751_v8  ;;  %v1838_v38 = vmul.f32 %v4201_v16, %v3742_v3 }
 0x11f   : > { %v4250_v58 = vpop.permute.xlu1 %1990  ;;  %1243 = vrot.lane.b32.xlu0 %v3273_v10, %s3376_s20  ;;  %v3286_v10 = vpack.c.bf16 %v1593_v61, %v1592_v18  ;;  %v3293_v61 = vpack.c.bf16 %v1760_v28, %v1760_v28  ;;  %v1912_v0 = vsel %vm460_vm1, %v4205_v57, %v4246_v26  ;;  %v1913_v1 = vsel %vm460_vm1, %v4246_v26, %v4221_v14 }
 0x120   : > { %v1922_v26 = vmul.f32 %v1913_v1, %v3751_v8  ;;  %v2004_v1 = vmul.f32 0.0, %v4250_v58 }
 0x121   : > { %1324 = vrot.lane.b32.xlu1 %v3275_v63, %s3375_s19  ;;  %v3285_v63 = vpack.c.bf16 %v1591_v24, %v1590_v62  ;;  %v1841_v62 = vmul.f32 %v1832_v6, %v3751_v8 }
 0x122   : > { %v4268_v59 = vpop.permute.xlu0 %1984 }
 0x123   : > { %v4272_v30 = vpop.permute.xlu1 %2067  ;;  %1405 = vrot.lane.b32.xlu0 %v3277_v33, %s3374_s18  ;;  %v1676_v33 = vmul.f32 %v1667_v49, %v3751_v8  ;;  %v1911_v49 = vsel %vm460_vm1, %v4236_v50, %v4205_v57  ;;  %v1923_v57 = vmul.f32 0.0, %v4221_v14  ;;  %v1992_v14 = vsel %vm543_vm2, %v4268_v59, %v4240_v39 }
 0x125   : > { %1326 = vrot.lane.b32.xlu1 %v3276_v13, %s3375_s19  ;;  %v1674_v13 = vmul.f32 %v1665_v29, %v3744_v4  ;;  %v3289_v36 = vpack.c.bf16 %v1676_v33, %v1675_v20  ;;  %v1920_v20 = vmul.f32 %v1911_v49, %v3744_v4 }
 0x126   : > { %v4287_v34 = vpop.permute.xlu0 %1988 }
 0x127   : > { %v4292_v23 = vpop.permute.xlu1 %2071  ;;  %1409 = vrot.lane.b32.xlu0 %v3279_v54, %s3374_s18  ;;  %v1758_v54 = vmul.f32 %v1749_v7, %v3746_v5  ;;  %v3288_v27 = vpack.c.bf16 %v1674_v13, %v1673_v56  ;;  %v1993_v12 = vsel %vm543_vm2, %v4240_v39, %v4287_v34  ;;  %v1842_v56 = vmul.f32 0.0, %v4192_v25 }
 0x128   : > { %v2000_v39 = vmul.f32 %v4268_v59, %v3742_v3 }
 0x129   : > { %1407 = vrot.lane.b32.xlu1 %v3278_v15, %s3374_s18  ;;  %v3292_v15 = vpack.c.bf16 %v1759_v35, %v1758_v54  ;;  %v2002_v54 = vmul.f32 %v1993_v12, %v3746_v5 }
 0x12a   : > { %v4301_v17 = vpop.permute.xlu0 %2065 }
 0x12b   : > { %v4306_v42 = vpop.permute.xlu1 %2148  ;;  %1532 = vrot.lane.b32.xlu0 %v3283_v9, %s3373_s15  ;;  %v3291_v9 = vpack.c.bf16 %v1757_v37, %v1756_v32  ;;  %v3296_v32 = vpack.c.bf16 %v1842_v56, %v1842_v56  ;;  %v2001_v37 = vmul.f32 %v1992_v14, %v3744_v4 }
 0x12d   : > { %1530 = vrot.lane.b32.xlu1 %v3282_v40, %s3373_s15  ;;  %v1840_v40 = vmul.f32 %v1831_v43, %v3746_v5  ;;  %v3300_v59 = vpack.c.bf16 %v2001_v37, %v2000_v39 }
 0x12e   : > { %v4317_v46 = vpop.permute.xlu0 %2069 }
 0x12f   : > { %v4320_v51 = vpop.permute.xlu1 %2152  ;;  %1615 = vrot.lane.b32.xlu0 %v3286_v10, %s3372_s14  ;;  %v1839_v10 = vmul.f32 %v1830_v21, %v3744_v4  ;;  %v3295_v60 = vpack.c.bf16 %v1841_v62, %v1840_v40  ;;  %v2074_v25 = vsel %vm626_vm3, %v4272_v30, %v4317_v46 }
 0x130   : > { %v2083_v6 = vmul.f32 %v2074_v25, %v3746_v5 }
 0x131   : > { %1613 = vrot.lane.b32.xlu1 %v3285_v63, %s3372_s14  ;;  %v1921_v63 = vmul.f32 %v1912_v0, %v3746_v5  ;;  %v3294_v16 = vpack.c.bf16 %v1839_v10, %v1838_v38 }
 0x132   : > { %v4335_v11 = vpop.permute.xlu0 %2146 }
 0x133   : > { %v4340_v22 = vpop.permute.xlu1 %2229  ;;  %1617 = vrot.lane.b32.xlu0 %v3287_v2, %s3372_s14  ;;  %v1919_v2 = vmul.f32 %v4236_v50, %v3742_v3  ;;  %v3298_v7 = vpack.c.bf16 %v1922_v26, %v1921_v63  ;;  %v3302_v26 = vpack.c.bf16 %v2004_v1, %v2004_v1 }
 0x135   : > { %1534 = vrot.lane.b32.xlu1 %v3284_v53, %s3373_s15  ;;  %v1994_v53 = vsel %vm543_vm2, %v4287_v34, %v4250_v58  ;;  %v3297_v13 = vpack.c.bf16 %v1920_v20, %v1919_v2  ;;  %v2075_v34 = vsel %vm626_vm3, %v4317_v46, %v4292_v23 }
 0x136   : > { %v4349_v52 = vpop.permute.xlu0 %2150  ;;  %v2003_v35 = vmul.f32 %v1994_v53, %v3751_v8  ;;  %v2084_v46 = vmul.f32 %v2075_v34, %v3751_v8 }
 0x137   : > { %v4354_v55 = vpop.permute.xlu1 %2233  ;;  %1698 = vrot.lane.b32.xlu0 %v3289_v36, %s3371_s12  ;;  %v3299_v36 = vpack.c.bf16 %v1923_v57, %v1923_v57  ;;  %v2155_v62 = vsel %vm709_vm4, %v4306_v42, %v4349_v52  ;;  %v2156_v0 = vsel %vm709_vm4, %v4349_v52, %v4320_v51 }
 0x138   : > { %v3301_v43 = vpack.c.bf16 %v2003_v35, %v2002_v54  ;;  %v3304_v40 = vpack.c.bf16 %v2084_v46, %v2083_v6  ;;  %v2164_v49 = vmul.f32 %v2155_v62, %v3746_v5 }
 0x139   : > { %1696 = vrot.lane.b32.xlu1 %v3288_v27, %s3371_s12 }
 0x13a   : > { %v4365_v45 = vpop.permute.xlu0 %2227 }
 0x13b   : > { %v4368_v18 = vpop.permute.xlu1 %2310  ;;  %1781 = vrot.lane.b32.xlu0 %v3292_v15, %s3370_s11  ;;  %v2073_v15 = vsel %vm626_vm3, %v4301_v17, %v4272_v30  ;;  %v2085_v30 = vmul.f32 0.0, %v4292_v23  ;;  %v2154_v23 = vsel %vm709_vm4, %v4335_v11, %v4306_v42  ;;  %v2162_v42 = vmul.f32 %v4335_v11, %v3742_v3 }
 0x13c   : > { %v2082_v21 = vmul.f32 %v2073_v15, %v3744_v4  ;;  %v2235_v2 = vsel %vm4718_vm5, %v4365_v45, %v4340_v22  ;;  %v2243_v12 = vmul.f32 %v4365_v45, %v3742_v3 }
 0x13d   : > { %1779 = vrot.lane.b32.xlu1 %v3291_v9, %s3370_s11  ;;  %v2081_v9 = vmul.f32 %v4301_v17, %v3742_v3  ;;  %v3305_v10 = vpack.c.bf16 %v2085_v30, %v2085_v30  ;;  %v2244_v11 = vmul.f32 %v2235_v2, %v3744_v4 }
 0x13e   : > { %v4383_v24 = vpop.permute.xlu0 %2231 }
 0x13f   : > { %v4388_v44 = vpop.permute.xlu1 %2314  ;;  %1783 = vrot.lane.b32.xlu0 %v3293_v61, %s3370_s11  ;;  %v2236_v58 = vsel %vm4718_vm5, %v4340_v22, %v4383_v24  ;;  %v2237_v52 = vsel %vm4718_vm5, %v4383_v24, %v4354_v55  ;;  %v2166_v22 = vmul.f32 0.0, %v4320_v51  ;;  %v3309_v34 = vpack.c.bf16 %v2244_v11, %v2243_v12 }
 0x140   : > { %v2246_v24 = vmul.f32 %v2237_v52, %v3751_v8 }
 0x141   : > { %1700 = vrot.lane.b32.xlu1 %v3290_v47, %s3371_s12  ;;  %v3303_v47 = vpack.c.bf16 %v2082_v21, %v2081_v9 }
 0x142   : > { %v4397_v29 = vpop.permute.xlu0 %2308 }
 0x143   : > { %v4402_v33 = vpop.permute.xlu1 %2391  ;;  %1863 = vrot.lane.b32.xlu0 %v3295_v60, %s3369_s10  ;;  %v2165_v60 = vmul.f32 %v2156_v0, %v3751_v8  ;;  %v2316_v51 = vsel %vm585_vm6, %v4397_v29, %v4368_v18  ;;  %v2324_v9 = vmul.f32 %v4397_v29, %v3742_v3 }
 0x145   : > { %1861 = vrot.lane.b32.xlu1 %v3294_v16, %s3369_s10  ;;  %v2163_v16 = vmul.f32 %v2154_v23, %v3744_v4  ;;  %v3307_v57 = vpack.c.bf16 %v2165_v60, %v2164_v49 }
 0x146   : > { %v4413_v50 = vpop.permute.xlu0 %2312 }
 0x147   : > { %v4416_v48 = vpop.permute.xlu1 %2395  ;;  %1944 = vrot.lane.b32.xlu0 %v3298_v7, %s3368_s9  ;;  %v2245_v7 = vmul.f32 %v2236_v58, %v3746_v5  ;;  %v3306_v56 = vpack.c.bf16 %v2163_v16, %v2162_v42  ;;  %v2317_v35 = vsel %vm585_vm6, %v4368_v18, %v4413_v50  ;;  %v2318_v45 = vsel %vm585_vm6, %v4413_v50, %v4388_v44 }
 0x148   : > { %v3308_v50 = vpack.c.bf16 %v2166_v22, %v2166_v22  ;;  %v2326_v46 = vmul.f32 %v2317_v35, %v3746_v5  ;;  %v2325_v18 = vmul.f32 %v2316_v51, %v3744_v4 }
 0x149   : > { %1942 = vrot.lane.b32.xlu1 %v3297_v13, %s3368_s9  ;;  %v3310_v54 = vpack.c.bf16 %v2246_v24, %v2245_v7 }
 0x14a   : > { %v4431_v27 = vpop.permute.xlu0 %2389  ;;  %v3312_v7 = vpack.c.bf16 %v2325_v18, %v2324_v9 }
 0x14b   : > { %v4436_v28 = vpop.permute.xlu1 %2472  ;;  %1946 = vrot.lane.b32.xlu0 %v3299_v36, %s3368_s9  ;;  %v2247_v36 = vmul.f32 0.0, %v4354_v55  ;;  %v2397_v21 = vsel %vm502_vm7, %v4431_v27, %v4402_v33 }
 0x14c   : > { %v2406_v42 = vmul.f32 %v2397_v21, %v3744_v4 }
 0x14d   : > { %1865 = vrot.lane.b32.xlu1 %v3296_v32, %s3369_s10  ;;  %v3311_v6 = vpack.c.bf16 %v2247_v36, %v2247_v36  ;;  %s3092_s10 = sshll.u32 %s4727_s25, 3 }
 0x14e   : > { %v4445_v41 = vpop.permute.xlu0 %2393  ;;  %s289_s14 = scalar_lea.vmem %s4714_s7, %s3092_s10 }
 0x14f   : > { %v4450_v61 = vpop.permute.xlu1 %2476  ;;  %2025 = vrot.lane.b32.xlu0 %v3301_v43, %s3367_s8  ;;  %v2399_v62 = vsel %vm502_vm7, %v4445_v41, %v4416_v48 }
 0x150   : > { %v2408_v52 = vmul.f32 %v2399_v62, %v3751_v8 }
 0x151   : > { %2023 = vrot.lane.b32.xlu1 %v3300_v59, %s3367_s8  ;;  %v2327_v59 = vmul.f32 %v2318_v45, %v3751_v8 }
 0x152   : > { %v4461_v17 = vpop.permute.xlu0 %2470 }
 0x153   : > { %v4464_v38 = vpop.permute.xlu1 %410  ;;  %2106 = vrot.lane.b32.xlu0 %v3304_v40, %s3366_s30  ;;  %v2398_v40 = vsel %vm502_vm7, %v4402_v33, %v4445_v41  ;;  %v3313_v58 = vpack.c.bf16 %v2327_v59, %v2326_v46 }
 0x154   : > { %v415_v25 = vrot.slane %v4464_v38, 4  ;;  %v2407_v33 = vmul.f32 %v2398_v40, %v3746_v5 }
 0x155   : > { %2104 = vrot.lane.b32.xlu1 %v3303_v47, %s3366_s30 }
 0x156   : > { %v4479_v63 = vpop.permute.xlu0 %2474 }
 0x157   : > { %v495_v20 = vpop.permute.xlu1 %494  ;;  %2108 = vrot.lane.b32.xlu0 %v3305_v10, %s3366_s30  ;;  %v2479_v22 = vsel %vm419_vm8, %v4436_v28, %v4479_v63 }
 0x158   : > { %v499_v32 = vrot.slane %v495_v20, 4 }
 0x159   : > { %2027 = vrot.lane.b32.xlu1 %v3302_v26, %s3367_s8  ;;  %v2405_v26 = vmul.f32 %v4431_v27, %v3742_v3  ;;  %v2409_v27 = vmul.f32 0.0, %v4416_v48 }
 0x15a   : > { %v409_v53 = vpop.permute.xlu0 %408 }
 0x15b   : > { %v414_v13 = vrot.slane %v409_v53, 4  ;;  %v497_v14 = vpop.permute.xlu1 %496  ;;  %2187 = vrot.lane.b32.xlu0 %v3307_v57, %s3365_s29  ;;  %v3317_v51 = vpack.c.bf16 %v2409_v27, %v2409_v27 }
 0x15c   : > { %v500_v39 = vrot.slane %v497_v14, 4 }
 0x15d   : > { %2185 = vrot.lane.b32.xlu1 %v3306_v56, %s3365_s29  ;;  %v418_v43 = vsel %vm417_vm10, %v414_v13, %v415_v25  ;;  %v2328_v56 = vmul.f32 0.0, %v4388_v44  ;;  %v3316_v13 = vpack.c.bf16 %v2408_v52, %v2407_v33  ;;  %v2480_v44 = vsel %vm419_vm8, %v4479_v63, %v4450_v61 }
 0x15e   : > { %v493_v55 = vpop.permute.xlu0 %492  ;;  %v420_v29 = vsel %vm419_vm8, %v409_v53, %v418_v43  ;;  %v504_v60 = vsel %vm417_vm10, %v499_v32, %v500_v39 }
 0x15f   : > { %v498_v37 = vrot.slane %v493_v55, 4  ;;  %v4508_v15 = vpop.permute.xlu1 %577  ;;  %2268 = vrot.lane.b32.xlu0 %v3310_v54, %s3364_s28  ;;  %v505_v57 = vsel %vm502_vm7, %v495_v20, %v504_v60  ;;  %v2478_v20 = vsel %vm419_vm8, %v4461_v17, %v4436_v28  ;;  %v2488_v28 = vmul.f32 %v2479_v22, %v3746_v5 }
 0x160   : > { %v582_v14 = vrot.slane %v4508_v15, 4  ;;  %v2487_v39 = vmul.f32 %v2478_v20, %v3744_v4 }
 0x161   : > { %2266 = vrot.lane.b32.xlu1 %v3309_v34, %s3364_s28  ;;  %v501_v30 = vsel %vm417_vm10, %v498_v37, %v499_v32  ;;  %v3314_v34 = vpack.c.bf16 %v2328_v56, %v2328_v56  ;;  %v2486_v32 = vmul.f32 %v4461_v17, %v3742_v3  ;;  %v2490_v3 = vmul.f32 0.0, %v4450_v61 }
 0x162   : > { %v413_v0 = vpop.permute.xlu0 %412  ;;  %v503_v1 = vsel %vm502_vm7, %v493_v55, %v501_v30  ;;  %v2489_v55 = vmul.f32 %v2480_v44, %v3751_v8 }
 0x163   : > { %v416_v47 = vrot.slane %v413_v0, 4  ;;  %v4530_v23 = vpop.permute.xlu1 %660  ;;  %2270 = vrot.lane.b32.xlu0 %v3311_v6, %s3364_s28  ;;  %v3176_v10 = vcombine.high %v420_v29, %v503_v1  ;;  %v3175_v49 = vcombine.low %v420_v29, %v503_v1  ;;  %v3318_v30 = vpack.c.bf16 %v2487_v39, %v2486_v32  ;;  %v2581_v1 = vld [vmem:[%s4710_s3] sm:$0xff] }
 0x164   : > { %v665_v36 = vrot.slane %v4530_v23, 4  ;;  %v3319_v9 = vpack.c.bf16 %v2489_v55, %v2488_v28 }
 0x165   : > { %2189 = vrot.lane.b32.xlu1 %v3308_v50, %s3365_s29  ;;  %2880 = vmatprep.subr.bf16.mxu0 %v3176_v10  ;;  %v421_v41 = vsel %vm417_vm10, %v415_v25, %v416_v47 }
 0x166   : > { %2881 = vmatpush1.bf16.msra.mxu0 %v3175_v49  ;;  %v576_v16 = vpop.permute.xlu0 %575  ;;  %v422_v2 = vsel %vm419_vm8, %v4464_v38, %v421_v41  ;;  %v3315_v38 = vpack.c.bf16 %v2406_v42, %v2405_v26 }
 0x167   : > { %v581_v24 = vrot.slane %v576_v16, 4  ;;  %v663_v12 = vpop.permute.xlu1 %662  ;;  %2349 = vrot.lane.b32.xlu0 %v3313_v58, %s3363_s17  ;;  %v3178_v11 = vcombine.high %v422_v2, %v505_v57  ;;  %v3177_v53 = vcombine.low %v422_v2, %v505_v57 }
 0x168   : > { %v666_v35 = vrot.slane %v663_v12, 4 }
 0x169   : > { %2347 = vrot.lane.b32.xlu1 %v3312_v7, %s3363_s17  ;;  %2921 = vmatprep.subr.bf16.mxu1 %v3178_v11  ;;  %v584_v54 = vsel %vm417_vm10, %v581_v24, %v582_v14 }
 0x16a   : > { %2922 = vmatpush1.bf16.msra.mxu1 %v3177_v53  ;;  %v659_v48 = vpop.permute.xlu0 %658  ;;  %v586_v37 = vsel %vm585_vm6, %v576_v16, %v584_v54  ;;  %v670_v6 = vsel %vm417_vm10, %v665_v36, %v666_v35  ;;  %v4596_v16 = vld [vmem:[%s4709_s2] sm:$0xff] }
 0x16b   : > { %v664_v45 = vrot.slane %v659_v48, 4  ;;  %v4560_v25 = vpop.permute.xlu1 %743  ;;  %2430 = vrot.lane.b32.xlu0 %v3316_v13, %s3362_s16  ;;  %v671_v21 = vsel %vm4718_vm5, %v4530_v23, %v670_v6  ;;  %v3320_v23 = vpack.c.bf16 %v2490_v3, %v2490_v3  ;;  %v3174_v12 = vcombine.high %v4596_v16, %v4596_v16 }
 0x16c   : > { %v748_v61 = vrot.slane %v4560_v25, 4 }
 0x16d   : > { %v667_v63 = vsel %vm417_vm10, %v664_v45, %v665_v36  ;;  %2428 = vrot.lane.b32.xlu1 %v3315_v38, %s3362_s16 }
 0x16e   : > { %v669_v43 = vsel %vm4718_vm5, %v659_v48, %v667_v63  ;;  %v580_v50 = vpop.permute.xlu0 %579  ;;  %vm2863_vm5 = vcmask 719872  }
 0x16f   : > { %v3179_v46 = vcombine.low %v586_v37, %v669_v43  ;;  %v3180_v5 = vcombine.high %v586_v37, %v669_v43  ;;  %v583_v59 = vrot.slane %v580_v50, 4  ;;  %v827_v8 = vpop.permute.xlu1 %826  ;;  %2432 = vrot.lane.b32.xlu0 %v3317_v51, %s3362_s16  ;;  %3232 = vmatprep.mubr.msk.bf16.mxu0 %vm2863_vm5, %v3174_v12 }
 0x170   : > { %v831_v10 = vrot.slane %v827_v8, 4  ;;  %3234 = vmatprep.mubr.msk.bf16.mxu1 %vm2863_vm5, %v3174_v12  ;;  %vm4719_vm5 = vcmask 982016  }
 0x171   : > { %v587_v18 = vsel %vm417_vm10, %v582_v14, %v583_v59  ;;  %2351 = vrot.lane.b32.xlu1 %v3314_v34, %s3363_s17  ;;  %2882 = vmatprep.subr.bf16.mxu0 %v3180_v5 }
 0x172   : > { %2883 = vmatpush1.bf16.msra.mxu0 %v3179_v46  ;;  %v742_v4 = vpop.permute.xlu0 %741  ;;  %v588_v17 = vsel %vm585_vm6, %v4508_v15, %v587_v18 }
 0x173   : > { %v747_v40 = vrot.slane %v742_v4, 4  ;;  %v829_v62 = vpop.permute.xlu1 %828  ;;  %2511 = vrot.lane.b32.xlu0 %v3319_v9, %s3361_s13  ;;  %v3182_v0 = vcombine.high %v588_v17, %v671_v21  ;;  %v3181_v29 = vcombine.low %v588_v17, %v671_v21 }
 0x174   : > { %v832_v15 = vrot.slane %v829_v62, 4 }
 0x175   : > { %2509 = vrot.lane.b32.xlu1 %v3318_v30, %s3361_s13  ;;  %2923 = vmatprep.subr.bf16.mxu1 %v3182_v0  ;;  %v750_v49 = vsel %vm417_vm10, %v747_v40, %v748_v61 }
 0x176   : > { %2924 = vmatpush1.bf16.msra.mxu1 %v3181_v29  ;;  %v825_v47 = vpop.permute.xlu0 %824  ;;  %v752_v52 = vsel %vm709_vm4, %v742_v4, %v750_v49  ;;  %v836_v41 = vsel %vm417_vm10, %v831_v10, %v832_v15 }
 0x177   : > { %v830_v60 = vrot.slane %v825_v47, 4  ;;  %v910_v58 = vpop.permute.xlu1 %909  ;;  %2584 = vperm.xlu0 %3349, %v2581_v1   ;;  %v837_v27 = vsel %vm626_vm3, %v827_v8, %v836_v41 }
 0x178   : > { %v914_v22 = vrot.slane %v910_v58, 4 }
 0x179   : > { %v833_v33 = vsel %vm417_vm10, %v830_v60, %v831_v10  ;;  %2513 = vrot.lane.b32.xlu1 %v3320_v23, %s3361_s13  ;;  %s4725_s13 = sshll.u32 %s4727_s25, 4 }
 0x17a   : > { %v835_v26 = vsel %vm626_vm3, %v825_v47, %v833_v33  ;;  %v746_v42 = vpop.permute.xlu0 %745  ;;  %s285_s9 = scalar_lea.vmem %s4713_s6, %s4725_s13 }
 0x17b   : > { %v3183_v2 = vcombine.low %v752_v52, %v835_v26  ;;  %v3184_v57 = vcombine.high %v752_v52, %v835_v26  ;;  %v749_v7 = vrot.slane %v746_v42, 4  ;;  %v993_v24 = vpop.permute.xlu1 %992 }
 0x17c   : > { %v997_v48 = vrot.slane %v993_v24, 4 }
 0x17d   : > { %v753_v11 = vsel %vm417_vm10, %v748_v61, %v749_v7  ;;  %2884 = vmatprep.subr.bf16.mxu0 %v3184_v57 }
 0x17e   : > { %2885 = vmatpush1.bf16.msra.mxu0 %v3183_v2  ;;  %v908_v53 = vpop.permute.xlu0 %907  ;;  %v754_v56 = vsel %vm709_vm4, %v4560_v25, %v753_v11 }
 0x17f   : > { %v913_v13 = vrot.slane %v908_v53, 4  ;;  %v995_v14 = vpop.permute.xlu1 %994  ;;  %v3186_v38 = vcombine.high %v754_v56, %v837_v27  ;;  %v3185_v20 = vcombine.low %v754_v56, %v837_v27 }
 0x180   : > { %v998_v54 = vrot.slane %v995_v14, 4 }
 0x181   : > { %2925 = vmatprep.subr.bf16.mxu1 %v3186_v38  ;;  %v916_v36 = vsel %vm417_vm10, %v913_v13, %v914_v22 }
 0x182   : > { %2926 = vmatpush1.bf16.msra.mxu1 %v3185_v20  ;;  %v991_v44 = vpop.permute.xlu0 %990  ;;  %v918_v34 = vsel %vm543_vm2, %v908_v53, %v916_v36  ;;  %v1002_v55 = vsel %vm417_vm10, %v997_v48, %v998_v54 }
 0x183   : > { %v996_v35 = vrot.slane %v991_v44, 4  ;;  %v1076_v45 = vpop.permute.xlu1 %1075  ;;  %v1003_v46 = vsel %vm460_vm1, %v993_v24, %v1002_v55 }
 0x184   : > { %v1080_v18 = vrot.slane %v1076_v45, 4 }
 0x185   : > { %v999_v25 = vsel %vm417_vm10, %v996_v35, %v997_v48 }
 0x186   : > { %v1001_v51 = vsel %vm460_vm1, %v991_v44, %v999_v25  ;;  %v912_v28 = vpop.permute.xlu0 %911 }
 0x187   : > { %v3187_v63 = vcombine.low %v918_v34, %v1001_v51  ;;  %v3188_v32 = vcombine.high %v918_v34, %v1001_v51  ;;  %v915_v39 = vrot.slane %v912_v28, 4  ;;  %v1159_v37 = vpop.permute.xlu1 %1158 }
 0x188   : > { %v1163_v4 = vrot.slane %v1159_v37, 4 }
 0x189   : > { %v919_v43 = vsel %vm417_vm10, %v914_v22, %v915_v39  ;;  %2886 = vmatprep.subr.bf16.mxu0 %v3188_v32 }
 0x18a   : > { %2887 = vmatpush1.bf16.msra.mxu0 %v3187_v63  ;;  %v1074_v50 = vpop.permute.xlu0 %1073  ;;  %v920_v6 = vsel %vm543_vm2, %v910_v58, %v919_v43 }
 0x18b   : > { %v1079_v5 = vrot.slane %v1074_v50, 4  ;;  %v1161_v59 = vpop.permute.xlu1 %1160  ;;  %v3190_v8 = vcombine.high %v920_v6, %v1003_v46  ;;  %v3189_v9 = vcombine.low %v920_v6, %v1003_v46 }
 0x18c   : > { %v1164_v21 = vrot.slane %v1161_v59, 4 }
 0x18d   : > { %2927 = vmatprep.subr.bf16.mxu1 %v3190_v8  ;;  %v1082_v17 = vsel %vm417_vm10, %v1079_v5, %v1080_v18 }
 0x18e   : > { %2928 = vmatpush1.bf16.msra.mxu1 %v3189_v9  ;;  %v1157_v3 = vpop.permute.xlu0 %1156  ;;  %v1084_v0 = vsel %vm376_vm0, %v1074_v50, %v1082_v17  ;;  %v1168_v61 = vsel %vm417_vm10, %v1163_v4, %v1164_v21 }
 0x18f   : > { %v1162_v30 = vrot.slane %v1157_v3, 4  ;;  %v1242_v40 = vpop.permute.xlu1 %1241  ;;  %v1169_v33 = vsel %vm1166_vm9, %v1159_v37, %v1168_v61 }
 0x190   : > { %v1246_v2 = vrot.slane %v1242_v40, 4 }
 0x191   : > { %v1165_v62 = vsel %vm417_vm10, %v1162_v30, %v1163_v4 }
 0x192   : > { %v1167_v29 = vsel %vm1166_vm9, %v1157_v3, %v1165_v62  ;;  %v1078_v1 = vpop.permute.xlu0 %1077  ;;  %vm4720_vm9 = vcmask 973824  }
 0x193   : > { %v3191_v15 = vcombine.low %v1084_v0, %v1167_v29  ;;  %v3192_v47 = vcombine.high %v1084_v0, %v1167_v29  ;;  %v1081_v23 = vrot.slane %v1078_v1, 4  ;;  %v1325_v10 = vpop.permute.xlu1 %1324 }
 0x194   : > { %v1329_v7 = vrot.slane %v1325_v10, 4 }
 0x195   : > { %v1085_v49 = vsel %vm417_vm10, %v1080_v18, %v1081_v23  ;;  %2888 = vmatprep.subr.bf16.mxu0 %v3192_v47 }
 0x196   : > { %2889 = vmatpush1.bf16.msra.mxu0 %v3191_v15  ;;  %v1240_v60 = vpop.permute.xlu0 %1239  ;;  %v1086_v58 = vsel %vm376_vm0, %v1076_v45, %v1085_v49 }
 0x197   : > { %v1245_v52 = vrot.slane %v1240_v60, 4  ;;  %v1327_v41 = vpop.permute.xlu1 %1326  ;;  %v3194_v26 = vcombine.high %v1086_v58, %v1169_v33  ;;  %v3193_v42 = vcombine.low %v1086_v58, %v1169_v33 }
 0x198   : > { %v1330_v12 = vrot.slane %v1327_v41, 4 }
 0x199   : > { %2929 = vmatprep.subr.bf16.mxu1 %v3194_v26  ;;  %v1248_v24 = vsel %vm417_vm10, %v1245_v52, %v1246_v2 }
 0x19a   : > { %2930 = vmatpush1.bf16.msra.mxu1 %v3193_v42  ;;  %v1323_v57 = vpop.permute.xlu0 %1322  ;;  %v1250_v27 = vsel %vm1249_vm15, %v1240_v60, %v1248_v24  ;;  %v1334_v38 = vsel %vm417_vm10, %v1329_v7, %v1330_v12 }
 0x19b   : > { %v1328_v11 = vrot.slane %v1323_v57, 4  ;;  %v1408_v53 = vpop.permute.xlu1 %1407  ;;  %v1335_v45 = vsel %vm1332_vm14, %v1325_v10, %v1334_v38 }
 0x19c   : > { %v1412_v25 = vrot.slane %v1408_v53, 4 }
 0x19d   : > { %v1331_v56 = vsel %vm417_vm10, %v1328_v11, %v1329_v7 }
 0x19e   : > { %v1333_v13 = vsel %vm1332_vm14, %v1323_v57, %v1331_v56  ;;  %v1244_v14 = vpop.permute.xlu0 %1243 }
 0x19f   : > { %v3195_v20 = vcombine.low %v1250_v27, %v1333_v13  ;;  %v3196_v22 = vcombine.high %v1250_v27, %v1333_v13  ;;  %v1247_v44 = vrot.slane %v1244_v14, 4  ;;  %v1531_v48 = vpop.permute.xlu1 %1530 }
 0x1a0   : > { %v1536_v4 = vrot.slane %v1531_v48, 4 }
 0x1a1   : > { %v1251_v36 = vsel %vm417_vm10, %v1246_v2, %v1247_v44  ;;  %2890 = vmatprep.subr.bf16.mxu0 %v3196_v22 }
 0x1a2   : > { %2891 = vmatpush1.bf16.msra.mxu0 %v3195_v20  ;;  %v1406_v54 = vpop.permute.xlu0 %1405  ;;  %v1252_v35 = vsel %vm1249_vm15, %v1242_v40, %v1251_v36 }
 0x1a3   : > { %v1411_v34 = vrot.slane %v1406_v54, 4  ;;  %v1614_v51 = vpop.permute.xlu1 %1613  ;;  %v3198_v28 = vcombine.high %v1252_v35, %v1335_v45  ;;  %v3197_v55 = vcombine.low %v1252_v35, %v1335_v45 }
 0x1a5   : > { %v1414_v63 = vsel %vm417_vm10, %v1411_v34, %v1412_v25  ;;  %2931 = vmatprep.subr.bf16.mxu1 %v3198_v28 }
 0x1a6   : > { %v1416_v32 = vsel %vm1415_vm13, %v1406_v54, %v1414_v63  ;;  %2932 = vmatpush1.bf16.msra.mxu1 %v3197_v55  ;;  %v1410_v39 = vpop.permute.xlu0 %1409 }
 0x1a7   : > { %v3199_v37 = vcombine.low %v1416_v32, %v3786_v31  ;;  %v3200_v43 = vcombine.high %v1416_v32, %v3786_v31  ;;  %v1413_v50 = vrot.slane %v1410_v39, 4  ;;  %v1535_v6 = vpop.permute.xlu1 %1534  ;;  %v1619_v31 = vrot.slane %v1614_v51, 4 }
 0x1a8   : > { %v1538_v62 = vrot.slane %v1535_v6, 4 }
 0x1a9   : > { %v1417_v46 = vsel %vm417_vm10, %v1412_v25, %v1413_v50  ;;  %2892 = vmatprep.subr.bf16.mxu0 %v3200_v43 }
 0x1aa   : > { %2893 = vmatpush1.bf16.msra.mxu0 %v3199_v37  ;;  %v1533_v5 = vpop.permute.xlu0 %1532  ;;  %v1418_v59 = vsel %vm1415_vm13, %v1408_v53, %v1417_v46 }
 0x1ab   : > { %v1537_v8 = vrot.slane %v1533_v5, 4  ;;  %v1697_v9 = vpop.permute.xlu1 %1696  ;;  %v3202_v18 = vcombine.high %v1418_v59, %v3788_v19  ;;  %v3201_v3 = vcombine.low %v1418_v59, %v3788_v19 }
 0x1ac   : > { %v1702_v2 = vrot.slane %v1697_v9, 4 }
 0x1ad   : > { %2933 = vmatprep.subr.bf16.mxu1 %v3202_v18  ;;  %v1539_v21 = vsel %vm417_vm10, %v1536_v4, %v1537_v8  ;;  %v1542_v15 = vsel %vm417_vm10, %v1537_v8, %v1538_v62 }
 0x1ae   : > { %2934 = vmatpush1.bf16.msra.mxu1 %v3201_v3  ;;  %v1616_v17 = vpop.permute.xlu0 %1615  ;;  %v1541_v1 = vsel %vm1373_vm12, %v1531_v48, %v1539_v21  ;;  %v1543_v60 = vsel %vm1373_vm12, %v1533_v5, %v1542_v15  ;;  %vm4722_vm12 = vmmov %vm4720_vm9 }
 0x1af   : > { %v1620_v30 = vrot.slane %v1616_v17, 4  ;;  %v1780_v40 = vpop.permute.xlu1 %1779 }
 0x1b0   : > { %v1785_v7 = vrot.slane %v1780_v40, 4 }
 0x1b1   : > { %v1622_v0 = vsel %vm417_vm10, %v1619_v31, %v1620_v30 }
 0x1b2   : > { %v1618_v29 = vpop.permute.xlu0 %1617  ;;  %v1624_v61 = vsel %vm1290_vm11, %v1614_v51, %v1622_v0 }
 0x1b3   : > { %v1621_v19 = vrot.slane %v1618_v29, 4  ;;  %v1701_v47 = vpop.permute.xlu1 %1700  ;;  %v3204_v23 = vcombine.high %v1541_v1, %v1624_v61  ;;  %v3203_v10 = vcombine.low %v1541_v1, %v1624_v61 }
 0x1b4   : > { %v1704_v53 = vrot.slane %v1701_v47, 4 }
 0x1b5   : > { %v1625_v49 = vsel %vm417_vm10, %v1620_v30, %v1621_v19  ;;  %2894 = vmatprep.subr.bf16.mxu0 %v3204_v23 }
 0x1b6   : > { %2895 = vmatpush1.bf16.msra.mxu0 %v3203_v10  ;;  %v1699_v58 = vpop.permute.xlu0 %1698  ;;  %v1626_v33 = vsel %vm1290_vm11, %v1616_v17, %v1625_v49  ;;  %vm4721_vm11 = vmmov %vm4719_vm5 }
 0x1b7   : > { %v1703_v52 = vrot.slane %v1699_v58, 4  ;;  %v1862_v41 = vpop.permute.xlu1 %1861  ;;  %v3206_v26 = vcombine.high %v1543_v60, %v1626_v33  ;;  %v3205_v42 = vcombine.low %v1543_v60, %v1626_v33 }
 0x1b8   : > { %v1867_v55 = vrot.slane %v1862_v41, 4 }
 0x1b9   : > { %2935 = vmatprep.subr.bf16.mxu1 %v3206_v26  ;;  %v1705_v24 = vsel %vm417_vm10, %v1702_v2, %v1703_v52  ;;  %v1708_v38 = vsel %vm417_vm10, %v1703_v52, %v1704_v53 }
 0x1ba   : > { %2936 = vmatpush1.bf16.msra.mxu1 %v3205_v42  ;;  %v1782_v57 = vpop.permute.xlu0 %1781  ;;  %v1707_v13 = vsel %vm4719_vm5, %v1697_v9, %v1705_v24  ;;  %v1709_v54 = vsel %vm4721_vm11, %v1699_v58, %v1708_v38 }
 0x1bb   : > { %v1786_v12 = vrot.slane %v1782_v57, 4  ;;  %v1943_v11 = vpop.permute.xlu1 %1942 }
 0x1bc   : > { %v1948_v32 = vrot.slane %v1943_v11, 4 }
 0x1bd   : > { %v1788_v56 = vsel %vm417_vm10, %v1785_v7, %v1786_v12 }
 0x1be   : > { %v1784_v27 = vpop.permute.xlu0 %1783  ;;  %v1790_v14 = vsel %vm4720_vm9, %v1780_v40, %v1788_v56 }
 0x1bf   : > { %v1787_v20 = vrot.slane %v1784_v27, 4  ;;  %v1866_v22 = vpop.permute.xlu1 %1865  ;;  %v3208_v44 = vcombine.high %v1707_v13, %v1790_v14  ;;  %v3207_v48 = vcombine.low %v1707_v13, %v1790_v14 }
 0x1c0   : > { %v1869_v50 = vrot.slane %v1866_v22, 4 }
 0x1c1   : > { %v1791_v36 = vsel %vm417_vm10, %v1786_v12, %v1787_v20  ;;  %2896 = vmatprep.subr.bf16.mxu0 %v3208_v44 }
 0x1c2   : > { %2897 = vmatpush1.bf16.msra.mxu0 %v3207_v48  ;;  %v1864_v35 = vpop.permute.xlu0 %1863  ;;  %v1792_v45 = vsel %vm4722_vm12, %v1782_v57, %v1791_v36 }
 0x1c3   : > { %v1868_v25 = vrot.slane %v1864_v35, 4  ;;  %v2024_v34 = vpop.permute.xlu1 %2023  ;;  %v3210_v51 = vcombine.high %v1709_v54, %v1792_v45  ;;  %v3209_v28 = vcombine.low %v1709_v54, %v1792_v45 }
 0x1c4   : > { %v2029_v1 = vrot.slane %v2024_v34, 4 }
 0x1c5   : > { %2937 = vmatprep.subr.bf16.mxu1 %v3210_v51  ;;  %v1870_v39 = vsel %vm417_vm10, %v1867_v55, %v1868_v25  ;;  %v1872_v8 = vsel %vm417_vm10, %v1868_v25, %v1869_v50 }
 0x1c6   : > { %2938 = vmatpush1.bf16.msra.mxu1 %v3209_v28  ;;  %v1945_v63 = vpop.permute.xlu0 %1944  ;;  %v1871_v5 = vsel %vm419_vm8, %v1862_v41, %v1870_v39  ;;  %v1873_v31 = vsel %vm419_vm8, %v1864_v35, %v1872_v8 }
 0x1c7   : > { %v1949_v37 = vrot.slane %v1945_v63, 4  ;;  %v2105_v43 = vpop.permute.xlu1 %2104 }
 0x1c8   : > { %v2110_v15 = vrot.slane %v2105_v43, 4 }
 0x1c9   : > { %v1951_v6 = vsel %vm417_vm10, %v1948_v32, %v1949_v37 }
 0x1ca   : > { %v1947_v46 = vpop.permute.xlu0 %1946  ;;  %v1952_v59 = vsel %vm502_vm7, %v1943_v11, %v1951_v6 }
 0x1cb   : > { %v1950_v9 = vrot.slane %v1947_v46, 4  ;;  %v2028_v18 = vpop.permute.xlu1 %2027  ;;  %v3212_v3 = vcombine.high %v1871_v5, %v1952_v59  ;;  %v3211_v4 = vcombine.low %v1871_v5, %v1952_v59 }
 0x1cc   : > { %v2031_v10 = vrot.slane %v2028_v18, 4 }
 0x1cd   : > { %v1953_v17 = vsel %vm417_vm10, %v1949_v37, %v1950_v9  ;;  %2898 = vmatprep.subr.bf16.mxu0 %v3212_v3 }
 0x1ce   : > { %2899 = vmatpush1.bf16.msra.mxu0 %v3211_v4  ;;  %v2026_v21 = vpop.permute.xlu0 %2025  ;;  %v1954_v30 = vsel %vm502_vm7, %v1945_v63, %v1953_v17  ;;  %vm4723_vm7 = vcmask 531456  }
 0x1cf   : > { %v2030_v40 = vrot.slane %v2026_v21, 4  ;;  %v2186_v62 = vpop.permute.xlu1 %2185  ;;  %v3214_v0 = vcombine.high %v1873_v31, %v1954_v30  ;;  %v3213_v29 = vcombine.low %v1873_v31, %v1954_v30  ;;  %vm4724_vm8 = vmmov %vm4723_vm7 }
 0x1d0   : > { %v2191_v13 = vrot.slane %v2186_v62, 4 }
 0x1d1   : > { %2939 = vmatprep.subr.bf16.mxu1 %v3214_v0  ;;  %v2032_v19 = vsel %vm417_vm10, %v2029_v1, %v2030_v40  ;;  %v2034_v52 = vsel %vm417_vm10, %v2030_v40, %v2031_v10 }
 0x1d2   : > { %2940 = vmatpush1.bf16.msra.mxu1 %v3213_v29  ;;  %v2107_v61 = vpop.permute.xlu0 %2106  ;;  %v2033_v58 = vsel %vm585_vm6, %v2024_v34, %v2032_v19  ;;  %v2035_v7 = vsel %vm585_vm6, %v2026_v21, %v2034_v52 }
 0x1d3   : > { %v2111_v47 = vrot.slane %v2107_v61, 4  ;;  %v2267_v23 = vpop.permute.xlu1 %2266 }
 0x1d4   : > { %v2272_v38 = vrot.slane %v2267_v23, 4 }
 0x1d5   : > { %v2113_v49 = vsel %vm417_vm10, %v2110_v15, %v2111_v47 }
 0x1d6   : > { %v2109_v60 = vpop.permute.xlu0 %2108  ;;  %v2114_v33 = vsel %vm4723_vm7, %v2105_v43, %v2113_v49 }
 0x1d7   : > { %v2112_v41 = vrot.slane %v2109_v60, 4  ;;  %v2190_v26 = vpop.permute.xlu1 %2189  ;;  %v3216_v42 = vcombine.high %v2033_v58, %v2114_v33  ;;  %v3215_v2 = vcombine.low %v2033_v58, %v2114_v33 }
 0x1d8   : > { %v2193_v48 = vrot.slane %v2190_v26, 4 }
 0x1d9   : > { %v2115_v57 = vsel %vm417_vm10, %v2111_v47, %v2112_v41  ;;  %2900 = vmatprep.subr.bf16.mxu0 %v3216_v42 }
 0x1da   : > { %2901 = vmatpush1.bf16.msra.mxu0 %v3215_v2  ;;  %v2188_v24 = vpop.permute.xlu0 %2187  ;;  %v2116_v12 = vsel %vm4724_vm8, %v2107_v61, %v2115_v57 }
 0x1db   : > { %v2192_v11 = vrot.slane %v2188_v24, 4  ;;  %v2348_v53 = vpop.permute.xlu1 %2347  ;;  %v3218_v56 = vcombine.high %v2035_v7, %v2116_v12  ;;  %v3217_v27 = vcombine.low %v2035_v7, %v2116_v12  ;;  %v3173_v12 = vcombine.low %v4596_v16, %v4596_v16 }
 0x1dc   : > { %v2353_v46 = vrot.slane %v2348_v53, 4 }
 0x1dd   : > { %2941 = vmatprep.subr.bf16.mxu1 %v3218_v56  ;;  %v2194_v20 = vsel %vm417_vm10, %v2191_v13, %v2192_v11  ;;  %v2196_v25 = vsel %vm417_vm10, %v2192_v11, %v2193_v48 }
 0x1de   : > { %2942 = vmatpush1.bf16.msra.mxu1 %v3217_v27  ;;  %v2269_v14 = vpop.permute.xlu0 %2268  ;;  %v2195_v35 = vsel %vm709_vm4, %v2186_v62, %v2194_v20  ;;  %v2197_v32 = vsel %vm709_vm4, %v2188_v24, %v2196_v25 }
 0x1df   : > { %v2273_v22 = vrot.slane %v2269_v14, 4  ;;  %v2429_v44 = vpop.permute.xlu1 %2428 }
 0x1e0   : > { %v2434_v8 = vrot.slane %v2429_v44, 4 }
 0x1e1   : > { %v2275_v36 = vsel %vm417_vm10, %v2272_v38, %v2273_v22 }
 0x1e2   : > { %v2271_v54 = vpop.permute.xlu0 %2270  ;;  %v2276_v45 = vsel %vm626_vm3, %v2267_v23, %v2275_v36 }
 0x1e3   : > { %v2274_v34 = vrot.slane %v2271_v54, 4  ;;  %v3220_v51 = vcombine.high %v2195_v35, %v2276_v45  ;;  %v3219_v28 = vcombine.low %v2195_v35, %v2276_v45  ;;  %v2352_v55 = vpop.permute.xlu1 %2351 }
 0x1e4   : > { %v2355_v3 = vrot.slane %v2352_v55, 4 }
 0x1e5   : > { %v2277_v63 = vsel %vm417_vm10, %v2273_v22, %v2274_v34  ;;  %2902 = vmatprep.subr.bf16.mxu0 %v3220_v51 }
 0x1e6   : > { %2903 = vmatpush1.bf16.msra.mxu0 %v3219_v28  ;;  %v2350_v39 = vpop.permute.xlu0 %2349  ;;  %v2278_v37 = vsel %vm626_vm3, %v2269_v14, %v2277_v63 }
 0x1e7   : > { %v2354_v43 = vrot.slane %v2350_v39, 4  ;;  %v3222_v50 = vcombine.high %v2197_v32, %v2278_v37  ;;  %v3221_v6 = vcombine.low %v2197_v32, %v2278_v37  ;;  %v2510_v5 = vpop.permute.xlu1 %2509 }
 0x1e8   : > { %v2515_v15 = vrot.slane %v2510_v5, 4 }
 0x1e9   : > { %2943 = vmatprep.subr.bf16.mxu1 %v3222_v50  ;;  %v2356_v9 = vsel %vm417_vm10, %v2353_v46, %v2354_v43  ;;  %v2358_v30 = vsel %vm417_vm10, %v2354_v43, %v2355_v3 }
 0x1ea   : > { %2944 = vmatpush1.bf16.msra.mxu1 %v3221_v6  ;;  %v2431_v59 = vpop.permute.xlu0 %2430  ;;  %v2357_v31 = vsel %vm543_vm2, %v2348_v53, %v2356_v9  ;;  %v2359_v61 = vsel %vm543_vm2, %v2350_v39, %v2358_v30 }
 0x1eb   : > { %v2435_v18 = vrot.slane %v2431_v59, 4  ;;  %v2514_v29 = vpop.permute.xlu1 %2513 }
 0x1ec   : > { %v2517_v23 = vrot.slane %v2514_v29, 4 }
 0x1ed   : > { %v2437_v4 = vsel %vm417_vm10, %v2434_v8, %v2435_v18 }
 0x1ee   : > { %v2433_v17 = vpop.permute.xlu0 %2432  ;;  %v2438_v21 = vsel %vm460_vm1, %v2429_v44, %v2437_v4 }
 0x1ef   : > { %v2436_v40 = vrot.slane %v2433_v17, 4  ;;  %v3224_v62 = vcombine.high %v2357_v31, %v2438_v21  ;;  %v3223_v0 = vcombine.low %v2357_v31, %v2438_v21 }
 0x1f1   : > { %v2439_v1 = vsel %vm417_vm10, %v2435_v18, %v2436_v40  ;;  %2904 = vmatprep.subr.bf16.mxu0 %v3224_v62 }
 0x1f2   : > { %2905 = vmatpush1.bf16.msra.mxu0 %v3223_v0  ;;  %v2512_v19 = vpop.permute.xlu0 %2511  ;;  %v2440_v47 = vsel %vm460_vm1, %v2431_v59, %v2439_v1 }
 0x1f3   : > { %v2516_v10 = vrot.slane %v2512_v19, 4  ;;  %v3226_v49 = vcombine.high %v2359_v61, %v2440_v47  ;;  %v3225_v60 = vcombine.low %v2359_v61, %v2440_v47 }
 0x1f5   : > { %v2518_v58 = vsel %vm417_vm10, %v2515_v15, %v2516_v10  ;;  %v2520_v33 = vsel %vm417_vm10, %v2516_v10, %v2517_v23  ;;  %2945 = vmatprep.subr.bf16.mxu1 %v3226_v49 }
 0x1f6   : > { %v2521_v52 = vsel %vm376_vm0, %v2512_v19, %v2520_v33  ;;  %2946 = vmatpush1.bf16.msra.mxu1 %v3225_v60  ;;  %v2519_v41 = vsel %vm376_vm0, %v2510_v5, %v2518_v58  ;;  %v2585_v11 = vpop.permute.xlu0 %2584  ;;  %vm2995_vm0 = vcmask 15368  }
 0x1f7   : > { %v3229_v26 = vcombine.low %v2521_v52, %v2521_v52  ;;  %v3230_v42 = vcombine.high %v2521_v52, %v2521_v52  ;;  %v3228_v2 = vcombine.high %v2519_v41, %v2519_v41  ;;  %v3227_v57 = vcombine.low %v2519_v41, %v2519_v41 }
 0x1f9   : > { %3231 = vmatprep.subr.msk.bf16.mxu0 %vm417_vm10, %v3228_v2  ;;  %3233 = vmatprep.subr.msk.bf16.mxu1 %vm417_vm10, %v3230_v42  ;;  %v2869_v7 = vsel %vm417_vm10, %v3227_v57, 0  ;;  %v2875_v24 = vsel %vm417_vm10, %v3229_v26, 0 }
 0x1fa   : > { %2907 = vmatpush1.bf16.msra.mxu0 %v2869_v7  ;;  %2948 = vmatpush1.bf16.msra.mxu1 %v2875_v24 }
 0x1fd   : > { %2913 = vmatmul.mubr.bf16.vlgmr.msra.gmra.mrb[0].mxu0 %v3173_v12  ;;  %2954 = vmatmul.mubr.bf16.vlgmr.msra.gmra.mrb[0].mxu1 %v3173_v12 }
 0x2d0   : > { %v2914_v53 = vpop.f32.mrb[0].mxu0  ;;  %v2955_v56 = vpop.f32.mrb[0].mxu1 }
 0x2d1   : > { %v2915_v27 = vadd.f32 %v2914_v53, %v2585_v11  ;;  %v2956_v13 = vadd.f32 %v2955_v56, %v2585_v11  ;;  %v2916_v14 = vpop.f32.mrb[1].mxu0  ;;  %v2957_v38 = vpop.f32.mrb[1].mxu1 }
 0x2d2   : > { %v2917_v20 = vadd.f32 %v2916_v14, %v2585_v11  ;;  %v2958_v22 = vadd.f32 %v2957_v38, %v2585_v11  ;;  %v2918_v44 = vpop.f32.mrb[2].mxu0  ;;  %v2959_v48 = vpop.f32.mrb[2].mxu1 }
 0x2d3   : > { %v2986_v36 = vmul.f32 %v2915_v27, %v2915_v27  ;;  %v2919_v16 = vpop.f32.mrb[3].mxu0  ;;  %v2960_v54 = vpop.f32.mrb[3].mxu1  ;;  %v2988_v51 = vmul.f32 %v2956_v13, %v2956_v13 }
 0x2d4   : > { %v3321_v35 = vpack.c.bf16 %v2917_v20, %v2915_v27  ;;  %v2980_v45 = vadd.f32 %v2917_v20, %v2915_v27  ;;  %v2987_v25 = vmul.f32 %v2917_v20, %v2917_v20  ;;  %v3322_v34 = vpack.c.bf16 %v2958_v22, %v2956_v13 }
 0x2d5   : > { %v2989_v63 = vmul.f32 %v2958_v22, %v2958_v22 }
 0x2d6   : > { %2978 = vst [vmem:[%s285_s9] sm:$0xff] %v3321_v35  ;;  %v2990_v28 = vadd.f32 %v2987_v25, %v2986_v36  ;;  %2979 = vst [vmem:[%s285_s9 + $0x8] sm:$0xff] %v3322_v34  ;;  %v2981_v55 = vadd.f32 %v2980_v45, %v2956_v13 }
 0x2d8   : > { %v2982_v32 = vadd.f32 %v2981_v55, %v2958_v22  ;;  %v2991_v39 = vadd.f32 %v2990_v28, %v2988_v51 }
 0x2da   : > { %2983 = vadd.xlane.f32.xlu1 %v2982_v32  ;;  %v2992_v37 = vadd.f32 %v2991_v39, %v2989_v63 }
 0x2dc   : > { %2993 = vadd.xlane.f32.xlu0 %v2992_v37 }
 0x367   : > { %v2984_v43 = vpop.xlane.xlu1 %2983 }
 0x368   : > { %2985 = vst.msk [vmem:[%s289_s14] sm:$0xff] %vm1415_vm13, %v2984_v43 }
 0x369   : > { %v2994_v50 = vpop.xlane.xlu0 %2993 }
 0x36a   : > { %2996 = vst.msk [vmem:[%s289_s14] sm:$0xff] %vm2995_vm0, %v2994_v50 }
 0x36b PF: > { %s18_s24 = sadd.s32 1, %s3358_s24  }
 0x36c   : > { %p15_p4 = scmp.ge.s32.totalorder %s18_s24, 4  }
 0x36e   :  { %17 = sbr.rel (!%p15_p4) target bundleno = 1 (0x1), region = 86 }

</bundles_post_ra>
